<compile_context>
chip_gen: v7x
topology: tpu7x:2x2x1
jax: 0.10.0
libtpu: 0.0.40
codegen_flags: <defaults>
</compile_context>

<pallas_src>
import math

import numpy as np

import jax
import jax.numpy as jnp
from jax.experimental import pallas as pl
from jax.experimental.pallas import tpu as pltpu

# ----- hyperparameters consistent with the PyTorch module -----
VOCAB = 16            # target_size
D_MODEL = 32          # cfg.TRANSFORMER_D_MODEL
N_HEADS = 4           # cfg.TRANSFORMER_N_HEADS
N_ENC_LAYERS = 2      # cfg.TRANSFORMER_ENCODER_LAYERS
N_DEC_LAYERS = 2      # cfg.TRANSFORMER_DECODER_LAYERS
D_FF = 64             # cfg.TRANSFORMER_DIM_FEEDFORWARD
S_IN = 8              # cfg.SEQUENCE_IN_MAX_LEN
S_OUT = 8             # cfg.SEQUENCE_OUT_MAX_LEN
BATCH = 2
LN_EPS = 1e-5
NEG = -1e9            # finite "masked" value (no NaN on fully-masked rows)

H = N_HEADS
DH = D_MODEL // N_HEADS
LANE = 128
SUBLANE = 8


# --------------------------------------------------------------------------
# Shared forward math.  `slab` is either a Pallas Ref (inside the kernel) or a
# plain array (pure-JAX reference); static slices work identically on both.
# `layout` maps parameter name -> (row_offset, n_rows, n_cols) in the slab.
# --------------------------------------------------------------------------
def _forward_math(slab, layout, src_in, tgt_emb, in_add, tgt_add, *, recip):
    B, S_in, D = src_in.shape
    S_out = tgt_emb.shape[1]

    def g(name):
        row, r, c = layout[name]
        return slab[row:row + r, :c]          # static slice (free on a Ref)

    def dot(a, b):
        return jnp.dot(a, b, preferred_element_type=jnp.float32)

    def layernorm(x2, pref):
        mu = jnp.mean(x2, axis=-1, keepdims=True)
        var = jnp.mean(jnp.square(x2 - mu), axis=-1, keepdims=True)
        return (x2 - mu) * jax.lax.rsqrt(var + LN_EPS) * g(pref + "_g") + g(pref + "_b")

    def ffn(x2, pref):
        hdn = jnp.maximum(dot(x2, g(pref + ".w1")) + g(pref + ".b1"), 0.0)
        return dot(hdn, g(pref + ".w2")) + g(pref + ".b2")

    def to_heads(z2, S):
        # [B*S, D] -> [H*B, S, DH]; only lane slices + leading-dim reshapes + one
        # leading-dim concat (no per-head matmuls, no minor-dim transposes).
        return jnp.concatenate(
            [z2[:, h * DH:(h + 1) * DH].reshape(B, S, DH) for h in range(H)],
            axis=0)

    def from_heads(o, S):
        # [H*B, S, DH] -> [B*S, D] with heads back in contiguous feature columns.
        return jnp.concatenate(
            [o[h * B:(h + 1) * B].reshape(B * S, DH) for h in range(H)],
            axis=-1)

    def attend(q, k, v, add_mask, pref, Sq):
        # q: [H*B, Sq, DH], k/v: [H*B, Sk, DH].  Q already carries 1/sqrt(DH)
        # (folded into the packed weights), so no score scaling here.
        s = jnp.einsum('bqd,bkd->bqk', q, k, preferred_element_type=jnp.float32)
        if add_mask is not None:                      # cross-attn: no mask at all
            s = s + add_mask
        s = s - jnp.max(s, axis=-1, keepdims=True)
        e = jnp.exp(s)
        p = e * recip(jnp.sum(e, axis=-1, keepdims=True))
        o = jnp.einsum('bqk,bkd->bqd', p, v, preferred_element_type=jnp.float32)
        # single full [D, D] output projection (not per-head)
        return dot(from_heads(o, Sq), g(pref + ".wo")) + g(pref + ".bo")

    def self_attention(x2, pref, add_mask, S):
        qkv = dot(x2, g(pref + ".wqkv")) + g(pref + ".bqkv")     # one fused QKV matmul
        q = to_heads(qkv[:, :D], S)
        k = to_heads(qkv[:, D:2 * D], S)
        v = to_heads(qkv[:, 2 * D:], S)
        return attend(q, k, v, add_mask, pref, S)

    # positional encoding (dropout p=0.1 -> identity, eval semantics);
    # flatten activations to 2D once and keep them 2D from here on.
    x2 = (src_in + g("pe_in")[None, :, :]).reshape(B * S_in, D)
    y2 = (tgt_emb + g("pe_out")[None, :, :]).reshape(B * S_out, D)

    # additive attention masks, batch index ordered h*B + b to match to_heads().
    # src_mask in the reference module is all-zero -> only key padding matters.
    enc_mask = jnp.broadcast_to(in_add[None, :, None, :],
                                (H, B, 1, S_in)).reshape(H * B, 1, S_in)
    row = jax.lax.broadcasted_iota(jnp.int32, (S_out, S_out), 0)
    col = jax.lax.broadcasted_iota(jnp.int32, (S_out, S_out), 1)
    causal = jnp.where(col > row, NEG, 0.0).astype(jnp.float32)
    dec_mask = causal[None, :, :] + jnp.broadcast_to(
        tgt_add[None, :, None, :], (H, B, 1, S_out)).reshape(H * B, 1, S_out)

    # ---- encoder (post-norm, relu) ----
    for l in range(N_ENC_LAYERS):
        pref = f"enc{l}"
        a = self_attention(x2, pref, enc_mask, S_in)
        x2 = layernorm(x2 + a, pref + ".ln1")
        x2 = layernorm(x2 + ffn(x2, pref), pref + ".ln2")
    mem2 = layernorm(x2, "enc_norm")                       # [B*S_in, D]

    # ---- decoder ----
    for l in range(N_DEC_LAYERS):
        pref = f"dec{l}"
        a = self_attention(y2, pref + ".sa", dec_mask, S_out)
        y2 = layernorm(y2 + a, pref + ".ln1")
        # cross-attention: memory_key_padding_mask is None in the reference module,
        # so no mask is applied here (matches nn.Transformer defaults).
        q = to_heads(dot(y2, g(pref + ".ca.wq")) + g(pref + ".ca.bq"), S_out)
        kv = dot(mem2, g(pref + ".ca.wkv")) + g(pref + ".ca.bkv")   # fused KV matmul
        k = to_heads(kv[:, :D], S_in)
        v = to_heads(kv[:, D:], S_in)
        c = attend(q, k, v, None, pref + ".ca", S_out)
        y2 = layernorm(y2 + c, pref + ".ln2")
        y2 = layernorm(y2 + ffn(y2, pref), pref + ".ln3")
    y2 = layernorm(y2, "dec_norm")

    # generator -> 2D logits [B*S_out, VOCAB]; wrapper reshapes to [B, S_out, VOCAB]
    return dot(y2, g("gen_w")) + g("gen_b")


# --------------------------------------------------------------------------
# Single fused grid-less Pallas kernel
# --------------------------------------------------------------------------
def _make_kernel(layout):
    def kernel(src_ref, tgt_ref, in_add_ref, tgt_add_ref, slab_ref, out_ref):
        logits = _forward_math(
            slab_ref, layout,
            src_ref[...], tgt_ref[...], in_add_ref[...], tgt_add_ref[...],
            recip=lambda x: pl.reciprocal(x, approx=True))
        out_ref[...] = logits.astype(out_ref.dtype)
    return kernel


def make_forward_fn(layout):
    """Mirrors Transformer.forward (eval semantics: dropout = identity)."""
    kernel = _make_kernel(layout)

    def forward(slab, embedding, batch_inputs, batch_targets,
                batch_in_pad_masks, batch_tgt_pad_masks):
        B, S_in, D = batch_inputs.shape
        S_out = batch_targets.shape[1]

        # plain-JAX glue: embedding gather + bool -> additive float masks
        tgt_emb = jnp.take(embedding, batch_targets, axis=0)
        in_add = jnp.where(batch_in_pad_masks, NEG, 0.0).astype(jnp.float32)
        tgt_add = jnp.where(batch_tgt_pad_masks, NEG, 0.0).astype(jnp.float32)

        logits2d = pl.pallas_call(
            kernel,
            out_shape=jax.ShapeDtypeStruct((B * S_out, VOCAB), jnp.float32),
            # no grid: single invocation, everything VMEM-resident (<1 MiB)
            in_specs=[pl.BlockSpec(memory_space=pltpu.MemorySpace.VMEM)] * 5,
            out_specs=pl.BlockSpec(memory_space=pltpu.MemorySpace.VMEM),
        )(batch_inputs, tgt_emb, in_add, tgt_add, slab)
        return logits2d.reshape(B, S_out, VOCAB)

    return forward


# --------------------------------------------------------------------------
# Pure-JAX reference (same math / same packed slab, exact reciprocal)
# --------------------------------------------------------------------------
def make_ref_fn(layout):
    def reference(slab, embedding, batch_inputs, batch_targets,
                  batch_in_pad_masks, batch_tgt_pad_masks):
        B = batch_inputs.shape[0]
        S_out = batch_targets.shape[1]
        tgt_emb = jnp.take(embedding, batch_targets, axis=0)
        in_add = jnp.where(batch_in_pad_masks, NEG, 0.0).astype(jnp.float32)
        tgt_add = jnp.where(batch_tgt_pad_masks, NEG, 0.0).astype(jnp.float32)
        with jax.default_matmul_precision("highest"):
            logits2d = _forward_math(slab, layout, batch_inputs, tgt_emb,
                                     in_add, tgt_add, recip=lambda x: 1.0 / x)
        return logits2d.reshape(B, S_out, VOCAB)
    return reference


# --------------------------------------------------------------------------
# Parameter init + host-side packing into one lane-dense [R, 128] f32 slab
# --------------------------------------------------------------------------
def sinusoidal_pe(seq_len, d_model):
    pos = np.arange(seq_len, dtype=np.float32)[:, None]
    div = np.exp(np.arange(0, d_model, 2, dtype=np.float32)
                 * (-math.log(10000.0) / d_model))
    pe = np.zeros((seq_len, d_model), np.float32)
    pe[:, 0::2] = np.sin(pos * div)
    pe[:, 1::2] = np.cos(pos * div)
    return jnp.asarray(pe)


def init_raw_params(key):
    keys = iter(jax.random.split(key, 256))

    def nrm(shape, scale=0.05):
        return scale * jax.random.normal(next(keys), shape, jnp.float32)

    qscale = 1.0 / math.sqrt(DH)   # folded into Q weights at pack time
    raw = {}
    raw["pe_in"] = sinusoidal_pe(S_IN, D_MODEL)
    raw["pe_out"] = sinusoidal_pe(S_OUT, D_MODEL)

    def add_self_attn(prefix):
        wqkv = nrm((D_MODEL, 3 * D_MODEL))
        bqkv = jnp.zeros((1, 3 * D_MODEL), jnp.float32)
        wqkv = wqkv.at[:, :D_MODEL].multiply(qscale)      # fold 1/sqrt(Dh) into Q
        bqkv = bqkv.at[:, :D_MODEL].multiply(qscale)
        raw[prefix + ".wqkv"] = wqkv
        raw[prefix + ".bqkv"] = bqkv
        raw[prefix + ".wo"] = nrm((D_MODEL, D_MODEL))
        raw[prefix + ".bo"] = jnp.zeros((1, D_MODEL), jnp.float32)

    def add_cross_attn(prefix):
        raw[prefix + ".wq"] = nrm((D_MODEL, D_MODEL)) * qscale
        raw[prefix + ".bq"] = jnp.zeros((1, D_MODEL), jnp.float32)
        raw[prefix + ".wkv"] = nrm((D_MODEL, 2 * D_MODEL))
        raw[prefix + ".bkv"] = jnp.zeros((1, 2 * D_MODEL), jnp.float32)
        raw[prefix + ".wo"] = nrm((D_MODEL, D_MODEL))
        raw[prefix + ".bo"] = jnp.zeros((1, D_MODEL), jnp.float32)

    def add_ffn(prefix):
        raw[prefix + ".w1"] = nrm((D_MODEL, D_FF))
        raw[prefix + ".b1"] = jnp.zeros((1, D_FF), jnp.float32)
        raw[prefix + ".w2"] = nrm((D_FF, D_MODEL))
        raw[prefix + ".b2"] = jnp.zeros((1, D_MODEL), jnp.float32)

    def add_ln(name):
        raw[name + "_g"] = jnp.ones((1, D_MODEL), jnp.float32)
        raw[name + "_b"] = jnp.zeros((1, D_MODEL), jnp.float32)

    for l in range(N_ENC_LAYERS):
        p = f"enc{l}"
        add_self_attn(p); add_ffn(p); add_ln(p + ".ln1"); add_ln(p + ".ln2")
    add_ln("enc_norm")
    for l in range(N_DEC_LAYERS):
        p = f"dec{l}"
        add_self_attn(p + ".sa"); add_cross_attn(p + ".ca"); add_ffn(p)
        add_ln(p + ".ln1"); add_ln(p + ".ln2"); add_ln(p + ".ln3")
    add_ln("dec_norm")
    raw["gen_w"] = nrm((D_MODEL, VOCAB))
    raw["gen_b"] = jnp.zeros((1, VOCAB), jnp.float32)

    embedding = nrm((VOCAB, D_MODEL), 0.1)
    return raw, embedding


def pack_params(raw):
    """Concatenate every parameter into one [R, 128] f32 slab (each parameter
    starts on an 8-row boundary; columns padded to 128 lanes)."""
    layout = {}
    off = 0
    for name, a in raw.items():
        r, c = a.shape
        assert c <= LANE, name
        layout[name] = (off, r, c)
        off += ((r + SUBLANE - 1) // SUBLANE) * SUBLANE
    slab = np.zeros((off, LANE), np.float32)
    for name, a in raw.items():
        row, r, c = layout[name]
        slab[row:row + r, :c] = np.asarray(a, dtype=np.float32)
    return jnp.asarray(slab), layout


# --------------------------------------------------------------------------
if __name__ == "__main__":
    key = jax.random.PRNGKey(0)
    k_in, k_tgt, k_param = jax.random.split(key, 3)

    batch_inputs = jax.random.normal(k_in, (BATCH, S_IN, D_MODEL), jnp.float32)
    batch_targets = jax.random.randint(k_tgt, (BATCH, S_OUT), 0, VOCAB)
    batch_in_pad_masks = jnp.array([[False] * S_IN,
                                    [False] * (S_IN - 2) + [True] * 2])
    batch_tgt_pad_masks = jnp.array([[False] * S_OUT,
                                     [False] * (S_OUT - 3) + [True] * 3])

    raw, embedding = init_raw_params(k_param)
    slab, layout = pack_params(raw)

    # TODO(synk): dropout (p=0.1 in PositionalEncoding and nn.Transformer) is treated
    # as identity (eval-mode semantics); no RNG-exact PyTorch dropout match.
    fwd = jax.jit(make_forward_fn(layout))
    out = jax.block_until_ready(fwd(slab, embedding, batch_inputs, batch_targets,
                                    batch_in_pad_masks, batch_tgt_pad_masks))

    assert out.shape == (BATCH, S_OUT, VOCAB), out.shape
    assert bool(jnp.isfinite(out).all()), "non-finite output"

    # sanity check against the pure-JAX reference (tolerance covers the
    # approx-reciprocal softmax and MXU vs XLA matmul rounding)
    ref = make_ref_fn(layout)(slab, embedding, batch_inputs, batch_targets,
                              batch_in_pad_masks, batch_tgt_pad_masks)
    max_diff = float(jnp.max(jnp.abs(out - ref)))
    assert max_diff < 0.1, f"kernel vs reference mismatch: {max_diff}"

    print("KERNEL_OK")
</pallas_src>

<mosaic_0001>
module attributes {stable_mosaic.version = 11 : i64} {
  func.func @kernel(%arg0: memref<2x8x32xf32, #tpu.memory_space<vmem>>, %arg1: memref<2x8x32xf32, #tpu.memory_space<vmem>>, %arg2: memref<2x8xf32, #tpu.memory_space<vmem>>, %arg3: memref<2x8xf32, #tpu.memory_space<vmem>>, %arg4: memref<1256x128xf32, #tpu.memory_space<vmem>>, %arg5: memref<16x16xf32, #tpu.memory_space<vmem>>) attributes {dimension_semantics = [], scalar_prefetch = 0 : i64, scratch_operands = 0 : i64, tpu.core_type = #tpu.core_type<tc>} {
    %c0 = arith.constant 0 : index
    %c0_0 = arith.constant 0 : index
    %c0_1 = arith.constant 0 : index
    %0 = vector.load %arg0[%c0, %c0_0, %c0_1] : memref<2x8x32xf32, #tpu.memory_space<vmem>>, vector<2x8x32xf32>
    %c0_2 = arith.constant 0 : index
    %c0_3 = arith.constant 0 : index
    %c0_4 = arith.constant 0 : index
    %1 = vector.load %arg1[%c0_2, %c0_3, %c0_4] : memref<2x8x32xf32, #tpu.memory_space<vmem>>, vector<2x8x32xf32>
    %c0_5 = arith.constant 0 : index
    %c0_6 = arith.constant 0 : index
    %2 = vector.load %arg2[%c0_5, %c0_6] : memref<2x8xf32, #tpu.memory_space<vmem>>, vector<2x8xf32>
    %c0_7 = arith.constant 0 : index
    %c0_8 = arith.constant 0 : index
    %3 = vector.load %arg3[%c0_7, %c0_8] : memref<2x8xf32, #tpu.memory_space<vmem>>, vector<2x8xf32>
    %c0_9 = arith.constant 0 : index
    %c0_10 = arith.constant 0 : index
    %4 = vector.load %arg4[%c0_9, %c0_10] : memref<1256x128xf32, #tpu.memory_space<vmem>>, vector<8x32xf32>
    %5 = vector.shape_cast %4 : vector<8x32xf32> to vector<1x8x32xf32>
    %6 = vector.broadcast %5 : vector<1x8x32xf32> to vector<2x8x32xf32>
    %7 = arith.addf %0, %6 : vector<2x8x32xf32>
    %8 = vector.shape_cast %7 : vector<2x8x32xf32> to vector<16x32xf32>
    %c8 = arith.constant 8 : index
    %c0_11 = arith.constant 0 : index
    %9 = vector.load %arg4[%c8, %c0_11] : memref<1256x128xf32, #tpu.memory_space<vmem>>, vector<8x32xf32>
    %10 = vector.shape_cast %9 : vector<8x32xf32> to vector<1x8x32xf32>
    %11 = vector.broadcast %10 : vector<1x8x32xf32> to vector<2x8x32xf32>
    %12 = arith.addf %1, %11 : vector<2x8x32xf32>
    %13 = vector.shape_cast %12 : vector<2x8x32xf32> to vector<16x32xf32>
    %14 = vector.shape_cast %2 : vector<2x8xf32> to vector<1x2x1x8xf32>
    %15 = vector.shape_cast %14 : vector<1x2x1x8xf32> to vector<1x2x1x8xf32>
    %16 = vector.broadcast %15 : vector<1x2x1x8xf32> to vector<4x2x1x8xf32>
    %17 = vector.shape_cast %16 : vector<4x2x1x8xf32> to vector<8x1x8xf32>
    %18 = tpu.iota {dimensions = array<i32: 0>} : vector<8x8xi32>
    %19 = tpu.iota {dimensions = array<i32: 1>} : vector<8x8xi32>
    %20 = arith.cmpi sgt, %19, %18 : vector<8x8xi32>
    %cst = arith.constant -1.000000e+09 : f32
    %cst_12 = arith.constant 0.000000e+00 : f32
    %21 = vector.broadcast %cst : f32 to vector<8x8xf32>
    %22 = vector.broadcast %cst_12 : f32 to vector<8x8xf32>
    %23 = arith.select %20, %21, %22 : vector<8x8xi1>, vector<8x8xf32>
    %24 = vector.shape_cast %23 : vector<8x8xf32> to vector<1x8x8xf32>
    %25 = vector.shape_cast %3 : vector<2x8xf32> to vector<1x2x1x8xf32>
    %26 = vector.shape_cast %25 : vector<1x2x1x8xf32> to vector<1x2x1x8xf32>
    %27 = vector.broadcast %26 : vector<1x2x1x8xf32> to vector<4x2x1x8xf32>
    %28 = vector.shape_cast %27 : vector<4x2x1x8xf32> to vector<8x1x8xf32>
    %29 = vector.broadcast %24 : vector<1x8x8xf32> to vector<8x8x8xf32>
    %30 = vector.broadcast %28 : vector<8x1x8xf32> to vector<8x8x8xf32>
    %31 = arith.addf %29, %30 : vector<8x8x8xf32>
    %c16 = arith.constant 16 : index
    %c0_13 = arith.constant 0 : index
    %32 = vector.load %arg4[%c16, %c0_13] : memref<1256x128xf32, #tpu.memory_space<vmem>>, vector<32x96xf32>
    %cst_14 = arith.constant dense<0.000000e+00> : vector<16x96xf32>
    %33 = tpu.matmul %8, %32, %cst_14 {dimension_numbers = #tpu.dot_dimension_numbers<[1], [0], [0], [1], [0, 0, 1, 1], [], []>} : vector<16x32xf32>, vector<32x96xf32>, vector<16x96xf32> -> vector<16x96xf32>
    %c48 = arith.constant 48 : index
    %c0_15 = arith.constant 0 : index
    %34 = vector.load %arg4[%c48, %c0_15] : memref<1256x128xf32, #tpu.memory_space<vmem>>, vector<1x96xf32>
    %35 = vector.broadcast %34 : vector<1x96xf32> to vector<16x96xf32>
    %36 = arith.addf %33, %35 : vector<16x96xf32>
    %37 = vector.extract_strided_slice %36 {offsets = [0, 0], sizes = [16, 32], strides = [1, 1]} : vector<16x96xf32> to vector<16x32xf32>
    %38 = vector.extract_strided_slice %37 {offsets = [0, 0], sizes = [16, 8], strides = [1, 1]} : vector<16x32xf32> to vector<16x8xf32>
    %39 = vector.shape_cast %38 : vector<16x8xf32> to vector<2x8x8xf32>
    %40 = vector.extract_strided_slice %37 {offsets = [0, 8], sizes = [16, 8], strides = [1, 1]} : vector<16x32xf32> to vector<16x8xf32>
    %41 = vector.shape_cast %40 : vector<16x8xf32> to vector<2x8x8xf32>
    %42 = vector.extract_strided_slice %37 {offsets = [0, 16], sizes = [16, 8], strides = [1, 1]} : vector<16x32xf32> to vector<16x8xf32>
    %43 = vector.shape_cast %42 : vector<16x8xf32> to vector<2x8x8xf32>
    %44 = vector.extract_strided_slice %37 {offsets = [0, 24], sizes = [16, 8], strides = [1, 1]} : vector<16x32xf32> to vector<16x8xf32>
    %45 = vector.shape_cast %44 : vector<16x8xf32> to vector<2x8x8xf32>
    %46 = tpu.concatenate %39, %41, %43, %45 in 0 : vector<2x8x8xf32>, vector<2x8x8xf32>, vector<2x8x8xf32>, vector<2x8x8xf32> -> vector<8x8x8xf32>
    %47 = vector.extract_strided_slice %36 {offsets = [0, 32], sizes = [16, 32], strides = [1, 1]} : vector<16x96xf32> to vector<16x32xf32>
    %48 = vector.extract_strided_slice %47 {offsets = [0, 0], sizes = [16, 8], strides = [1, 1]} : vector<16x32xf32> to vector<16x8xf32>
    %49 = vector.shape_cast %48 : vector<16x8xf32> to vector<2x8x8xf32>
    %50 = vector.extract_strided_slice %47 {offsets = [0, 8], sizes = [16, 8], strides = [1, 1]} : vector<16x32xf32> to vector<16x8xf32>
    %51 = vector.shape_cast %50 : vector<16x8xf32> to vector<2x8x8xf32>
    %52 = vector.extract_strided_slice %47 {offsets = [0, 16], sizes = [16, 8], strides = [1, 1]} : vector<16x32xf32> to vector<16x8xf32>
    %53 = vector.shape_cast %52 : vector<16x8xf32> to vector<2x8x8xf32>
    %54 = vector.extract_strided_slice %47 {offsets = [0, 24], sizes = [16, 8], strides = [1, 1]} : vector<16x32xf32> to vector<16x8xf32>
    %55 = vector.shape_cast %54 : vector<16x8xf32> to vector<2x8x8xf32>
    %56 = tpu.concatenate %49, %51, %53, %55 in 0 : vector<2x8x8xf32>, vector<2x8x8xf32>, vector<2x8x8xf32>, vector<2x8x8xf32> -> vector<8x8x8xf32>
    %57 = vector.extract_strided_slice %36 {offsets = [0, 64], sizes = [16, 32], strides = [1, 1]} : vector<16x96xf32> to vector<16x32xf32>
    %58 = vector.extract_strided_slice %57 {offsets = [0, 0], sizes = [16, 8], strides = [1, 1]} : vector<16x32xf32> to vector<16x8xf32>
    %59 = vector.shape_cast %58 : vector<16x8xf32> to vector<2x8x8xf32>
    %60 = vector.extract_strided_slice %57 {offsets = [0, 8], sizes = [16, 8], strides = [1, 1]} : vector<16x32xf32> to vector<16x8xf32>
    %61 = vector.shape_cast %60 : vector<16x8xf32> to vector<2x8x8xf32>
    %62 = vector.extract_strided_slice %57 {offsets = [0, 16], sizes = [16, 8], strides = [1, 1]} : vector<16x32xf32> to vector<16x8xf32>
    %63 = vector.shape_cast %62 : vector<16x8xf32> to vector<2x8x8xf32>
    %64 = vector.extract_strided_slice %57 {offsets = [0, 24], sizes = [16, 8], strides = [1, 1]} : vector<16x32xf32> to vector<16x8xf32>
    %65 = vector.shape_cast %64 : vector<16x8xf32> to vector<2x8x8xf32>
    %66 = tpu.concatenate %59, %61, %63, %65 in 0 : vector<2x8x8xf32>, vector<2x8x8xf32>, vector<2x8x8xf32>, vector<2x8x8xf32> -> vector<8x8x8xf32>
    "tpu.trace_start"() <{level = 10 : i32, message = "bqd,bkd->bqk"}> : () -> ()
    %cst_16 = arith.constant dense<0.000000e+00> : vector<8x8x8xf32>
    %67 = tpu.matmul %46, %56, %cst_16 {dimension_numbers = #tpu.dot_dimension_numbers<[2], [2], [1], [1], [0, 0, 0, 1, 1, 1], [0], [0]>} : vector<8x8x8xf32>, vector<8x8x8xf32>, vector<8x8x8xf32> -> vector<8x8x8xf32>
    "tpu.trace_stop"() : () -> ()
    %68 = vector.broadcast %17 : vector<8x1x8xf32> to vector<8x8x8xf32>
    %69 = arith.addf %67, %68 : vector<8x8x8xf32>
    %cst_17 = arith.constant dense<0xFF800000> : vector<8x8xf32>
    %70 = vector.multi_reduction <maximumf>, %69, %cst_17 [2] : vector<8x8x8xf32> to vector<8x8xf32>
    %71 = vector.shape_cast %70 : vector<8x8xf32> to vector<8x8x1xf32>
    %72 = vector.broadcast %71 : vector<8x8x1xf32> to vector<8x8x8xf32>
    %73 = arith.subf %69, %72 : vector<8x8x8xf32>
    %74 = math.exp %73 : vector<8x8x8xf32>
    %cst_18 = arith.constant dense<0.000000e+00> : vector<8x8xf32>
    %75 = vector.multi_reduction <add>, %74, %cst_18 [2] : vector<8x8x8xf32> to vector<8x8xf32>
    %76 = vector.shape_cast %75 : vector<8x8xf32> to vector<8x8x1xf32>
    %77 = tpu.reciprocal %76 {approx = true} : vector<8x8x1xf32> -> vector<8x8x1xf32>
    %78 = vector.broadcast %77 : vector<8x8x1xf32> to vector<8x8x8xf32>
    %79 = arith.mulf %74, %78 : vector<8x8x8xf32>
    "tpu.trace_start"() <{level = 10 : i32, message = "bqk,bkd->bqd"}> : () -> ()
    %cst_19 = arith.constant dense<0.000000e+00> : vector<8x8x8xf32>
    %80 = tpu.matmul %79, %66, %cst_19 {dimension_numbers = #tpu.dot_dimension_numbers<[2], [1], [1], [2], [0, 0, 0, 1, 1, 2], [0], [0]>} : vector<8x8x8xf32>, vector<8x8x8xf32>, vector<8x8x8xf32> -> vector<8x8x8xf32>
    "tpu.trace_stop"() : () -> ()
    %81 = vector.extract_strided_slice %80 {offsets = [0, 0, 0], sizes = [2, 8, 8], strides = [1, 1, 1]} : vector<8x8x8xf32> to vector<2x8x8xf32>
    %82 = vector.shape_cast %81 : vector<2x8x8xf32> to vector<16x8xf32>
    %83 = vector.extract_strided_slice %80 {offsets = [2, 0, 0], sizes = [2, 8, 8], strides = [1, 1, 1]} : vector<8x8x8xf32> to vector<2x8x8xf32>
    %84 = vector.shape_cast %83 : vector<2x8x8xf32> to vector<16x8xf32>
    %85 = vector.extract_strided_slice %80 {offsets = [4, 0, 0], sizes = [2, 8, 8], strides = [1, 1, 1]} : vector<8x8x8xf32> to vector<2x8x8xf32>
    %86 = vector.shape_cast %85 : vector<2x8x8xf32> to vector<16x8xf32>
    %87 = vector.extract_strided_slice %80 {offsets = [6, 0, 0], sizes = [2, 8, 8], strides = [1, 1, 1]} : vector<8x8x8xf32> to vector<2x8x8xf32>
    %88 = vector.shape_cast %87 : vector<2x8x8xf32> to vector<16x8xf32>
    %89 = tpu.concatenate %82, %84, %86, %88 in 1 : vector<16x8xf32>, vector<16x8xf32>, vector<16x8xf32>, vector<16x8xf32> -> vector<16x32xf32>
    %c56 = arith.constant 56 : index
    %c0_20 = arith.constant 0 : index
    %90 = vector.load %arg4[%c56, %c0_20] : memref<1256x128xf32, #tpu.memory_space<vmem>>, vector<32x32xf32>
    %cst_21 = arith.constant dense<0.000000e+00> : vector<16x32xf32>
    %91 = tpu.matmul %89, %90, %cst_21 {dimension_numbers = #tpu.dot_dimension_numbers<[1], [0], [0], [1], [0, 0, 1, 1], [], []>} : vector<16x32xf32>, vector<32x32xf32>, vector<16x32xf32> -> vector<16x32xf32>
    %c88 = arith.constant 88 : index
    %c0_22 = arith.constant 0 : index
    %92 = vector.load %arg4[%c88, %c0_22] : memref<1256x128xf32, #tpu.memory_space<vmem>>, vector<1x32xf32>
    %93 = vector.broadcast %92 : vector<1x32xf32> to vector<16x32xf32>
    %94 = arith.addf %91, %93 : vector<16x32xf32>
    %95 = arith.addf %8, %94 : vector<16x32xf32>
    %cst_23 = arith.constant dense<0.000000e+00> : vector<16xf32>
    %96 = vector.multi_reduction <add>, %95, %cst_23 [1] : vector<16x32xf32> to vector<16xf32>
    %97 = vector.shape_cast %96 : vector<16xf32> to vector<16x1xf32>
    %cst_24 = arith.constant 3.200000e+01 : f32
    %98 = vector.broadcast %cst_24 : f32 to vector<16x1xf32>
    %99 = arith.divf %97, %98 : vector<16x1xf32>
    %100 = vector.broadcast %99 : vector<16x1xf32> to vector<16x32xf32>
    %101 = arith.subf %95, %100 : vector<16x32xf32>
    %102 = arith.mulf %101, %101 : vector<16x32xf32>
    %cst_25 = arith.constant dense<0.000000e+00> : vector<16xf32>
    %103 = vector.multi_reduction <add>, %102, %cst_25 [1] : vector<16x32xf32> to vector<16xf32>
    %104 = vector.shape_cast %103 : vector<16xf32> to vector<16x1xf32>
    %cst_26 = arith.constant 3.200000e+01 : f32
    %105 = vector.broadcast %cst_26 : f32 to vector<16x1xf32>
    %106 = arith.divf %104, %105 : vector<16x1xf32>
    %107 = vector.broadcast %99 : vector<16x1xf32> to vector<16x32xf32>
    %108 = arith.subf %95, %107 : vector<16x32xf32>
    %cst_27 = arith.constant 9.99999974E-6 : f32
    %109 = vector.broadcast %cst_27 : f32 to vector<16x1xf32>
    %110 = arith.addf %106, %109 : vector<16x1xf32>
    %111 = math.rsqrt %110 : vector<16x1xf32>
    %112 = vector.broadcast %111 : vector<16x1xf32> to vector<16x32xf32>
    %113 = arith.mulf %108, %112 : vector<16x32xf32>
    %c208 = arith.constant 208 : index
    %c0_28 = arith.constant 0 : index
    %114 = vector.load %arg4[%c208, %c0_28] : memref<1256x128xf32, #tpu.memory_space<vmem>>, vector<1x32xf32>
    %115 = vector.broadcast %114 : vector<1x32xf32> to vector<16x32xf32>
    %116 = arith.mulf %113, %115 : vector<16x32xf32>
    %c216 = arith.constant 216 : index
    %c0_29 = arith.constant 0 : index
    %117 = vector.load %arg4[%c216, %c0_29] : memref<1256x128xf32, #tpu.memory_space<vmem>>, vector<1x32xf32>
    %118 = vector.broadcast %117 : vector<1x32xf32> to vector<16x32xf32>
    %119 = arith.addf %116, %118 : vector<16x32xf32>
    %c96 = arith.constant 96 : index
    %c0_30 = arith.constant 0 : index
    %120 = vector.load %arg4[%c96, %c0_30] : memref<1256x128xf32, #tpu.memory_space<vmem>>, vector<32x64xf32>
    %cst_31 = arith.constant dense<0.000000e+00> : vector<16x64xf32>
    %121 = tpu.matmul %119, %120, %cst_31 {dimension_numbers = #tpu.dot_dimension_numbers<[1], [0], [0], [1], [0, 0, 1, 1], [], []>} : vector<16x32xf32>, vector<32x64xf32>, vector<16x64xf32> -> vector<16x64xf32>
    %c128 = arith.constant 128 : index
    %c0_32 = arith.constant 0 : index
    %122 = vector.load %arg4[%c128, %c0_32] : memref<1256x128xf32, #tpu.memory_space<vmem>>, vector<1x64xf32>
    %123 = vector.broadcast %122 : vector<1x64xf32> to vector<16x64xf32>
    %124 = arith.addf %121, %123 : vector<16x64xf32>
    %cst_33 = arith.constant 0.000000e+00 : f32
    %125 = vector.broadcast %cst_33 : f32 to vector<16x64xf32>
    %126 = arith.maximumf %124, %125 : vector<16x64xf32>
    %c136 = arith.constant 136 : index
    %c0_34 = arith.constant 0 : index
    %127 = vector.load %arg4[%c136, %c0_34] : memref<1256x128xf32, #tpu.memory_space<vmem>>, vector<64x32xf32>
    %cst_35 = arith.constant dense<0.000000e+00> : vector<16x32xf32>
    %128 = tpu.matmul %126, %127, %cst_35 {dimension_numbers = #tpu.dot_dimension_numbers<[1], [0], [0], [1], [0, 0, 1, 1], [], []>} : vector<16x64xf32>, vector<64x32xf32>, vector<16x32xf32> -> vector<16x32xf32>
    %c200 = arith.constant 200 : index
    %c0_36 = arith.constant 0 : index
    %129 = vector.load %arg4[%c200, %c0_36] : memref<1256x128xf32, #tpu.memory_space<vmem>>, vector<1x32xf32>
    %130 = vector.broadcast %129 : vector<1x32xf32> to vector<16x32xf32>
    %131 = arith.addf %128, %130 : vector<16x32xf32>
    %132 = arith.addf %119, %131 : vector<16x32xf32>
    %cst_37 = arith.constant dense<0.000000e+00> : vector<16xf32>
    %133 = vector.multi_reduction <add>, %132, %cst_37 [1] : vector<16x32xf32> to vector<16xf32>
    %134 = vector.shape_cast %133 : vector<16xf32> to vector<16x1xf32>
    %cst_38 = arith.constant 3.200000e+01 : f32
    %135 = vector.broadcast %cst_38 : f32 to vector<16x1xf32>
    %136 = arith.divf %134, %135 : vector<16x1xf32>
    %137 = vector.broadcast %136 : vector<16x1xf32> to vector<16x32xf32>
    %138 = arith.subf %132, %137 : vector<16x32xf32>
    %139 = arith.mulf %138, %138 : vector<16x32xf32>
    %cst_39 = arith.constant dense<0.000000e+00> : vector<16xf32>
    %140 = vector.multi_reduction <add>, %139, %cst_39 [1] : vector<16x32xf32> to vector<16xf32>
    %141 = vector.shape_cast %140 : vector<16xf32> to vector<16x1xf32>
    %cst_40 = arith.constant 3.200000e+01 : f32
    %142 = vector.broadcast %cst_40 : f32 to vector<16x1xf32>
    %143 = arith.divf %141, %142 : vector<16x1xf32>
    %144 = vector.broadcast %136 : vector<16x1xf32> to vector<16x32xf32>
    %145 = arith.subf %132, %144 : vector<16x32xf32>
    %cst_41 = arith.constant 9.99999974E-6 : f32
    %146 = vector.broadcast %cst_41 : f32 to vector<16x1xf32>
    %147 = arith.addf %143, %146 : vector<16x1xf32>
    %148 = math.rsqrt %147 : vector<16x1xf32>
    %149 = vector.broadcast %148 : vector<16x1xf32> to vector<16x32xf32>
    %150 = arith.mulf %145, %149 : vector<16x32xf32>
    %c224 = arith.constant 224 : index
    %c0_42 = arith.constant 0 : index
    %151 = vector.load %arg4[%c224, %c0_42] : memref<1256x128xf32, #tpu.memory_space<vmem>>, vector<1x32xf32>
    %152 = vector.broadcast %151 : vector<1x32xf32> to vector<16x32xf32>
    %153 = arith.mulf %150, %152 : vector<16x32xf32>
    %c232 = arith.constant 232 : index
    %c0_43 = arith.constant 0 : index
    %154 = vector.load %arg4[%c232, %c0_43] : memref<1256x128xf32, #tpu.memory_space<vmem>>, vector<1x32xf32>
    %155 = vector.broadcast %154 : vector<1x32xf32> to vector<16x32xf32>
    %156 = arith.addf %153, %155 : vector<16x32xf32>
    %c240 = arith.constant 240 : index
    %c0_44 = arith.constant 0 : index
    %157 = vector.load %arg4[%c240, %c0_44] : memref<1256x128xf32, #tpu.memory_space<vmem>>, vector<32x96xf32>
    %cst_45 = arith.constant dense<0.000000e+00> : vector<16x96xf32>
    %158 = tpu.matmul %156, %157, %cst_45 {dimension_numbers = #tpu.dot_dimension_numbers<[1], [0], [0], [1], [0, 0, 1, 1], [], []>} : vector<16x32xf32>, vector<32x96xf32>, vector<16x96xf32> -> vector<16x96xf32>
    %c272 = arith.constant 272 : index
    %c0_46 = arith.constant 0 : index
    %159 = vector.load %arg4[%c272, %c0_46] : memref<1256x128xf32, #tpu.memory_space<vmem>>, vector<1x96xf32>
    %160 = vector.broadcast %159 : vector<1x96xf32> to vector<16x96xf32>
    %161 = arith.addf %158, %160 : vector<16x96xf32>
    %162 = vector.extract_strided_slice %161 {offsets = [0, 0], sizes = [16, 32], strides = [1, 1]} : vector<16x96xf32> to vector<16x32xf32>
    %163 = vector.extract_strided_slice %162 {offsets = [0, 0], sizes = [16, 8], strides = [1, 1]} : vector<16x32xf32> to vector<16x8xf32>
    %164 = vector.shape_cast %163 : vector<16x8xf32> to vector<2x8x8xf32>
    %165 = vector.extract_strided_slice %162 {offsets = [0, 8], sizes = [16, 8], strides = [1, 1]} : vector<16x32xf32> to vector<16x8xf32>
    %166 = vector.shape_cast %165 : vector<16x8xf32> to vector<2x8x8xf32>
    %167 = vector.extract_strided_slice %162 {offsets = [0, 16], sizes = [16, 8], strides = [1, 1]} : vector<16x32xf32> to vector<16x8xf32>
    %168 = vector.shape_cast %167 : vector<16x8xf32> to vector<2x8x8xf32>
    %169 = vector.extract_strided_slice %162 {offsets = [0, 24], sizes = [16, 8], strides = [1, 1]} : vector<16x32xf32> to vector<16x8xf32>
    %170 = vector.shape_cast %169 : vector<16x8xf32> to vector<2x8x8xf32>
    %171 = tpu.concatenate %164, %166, %168, %170 in 0 : vector<2x8x8xf32>, vector<2x8x8xf32>, vector<2x8x8xf32>, vector<2x8x8xf32> -> vector<8x8x8xf32>
    %172 = vector.extract_strided_slice %161 {offsets = [0, 32], sizes = [16, 32], strides = [1, 1]} : vector<16x96xf32> to vector<16x32xf32>
    %173 = vector.extract_strided_slice %172 {offsets = [0, 0], sizes = [16, 8], strides = [1, 1]} : vector<16x32xf32> to vector<16x8xf32>
    %174 = vector.shape_cast %173 : vector<16x8xf32> to vector<2x8x8xf32>
    %175 = vector.extract_strided_slice %172 {offsets = [0, 8], sizes = [16, 8], strides = [1, 1]} : vector<16x32xf32> to vector<16x8xf32>
    %176 = vector.shape_cast %175 : vector<16x8xf32> to vector<2x8x8xf32>
    %177 = vector.extract_strided_slice %172 {offsets = [0, 16], sizes = [16, 8], strides = [1, 1]} : vector<16x32xf32> to vector<16x8xf32>
    %178 = vector.shape_cast %177 : vector<16x8xf32> to vector<2x8x8xf32>
    %179 = vector.extract_strided_slice %172 {offsets = [0, 24], sizes = [16, 8], strides = [1, 1]} : vector<16x32xf32> to vector<16x8xf32>
    %180 = vector.shape_cast %179 : vector<16x8xf32> to vector<2x8x8xf32>
    %181 = tpu.concatenate %174, %176, %178, %180 in 0 : vector<2x8x8xf32>, vector<2x8x8xf32>, vector<2x8x8xf32>, vector<2x8x8xf32> -> vector<8x8x8xf32>
    %182 = vector.extract_strided_slice %161 {offsets = [0, 64], sizes = [16, 32], strides = [1, 1]} : vector<16x96xf32> to vector<16x32xf32>
    %183 = vector.extract_strided_slice %182 {offsets = [0, 0], sizes = [16, 8], strides = [1, 1]} : vector<16x32xf32> to vector<16x8xf32>
    %184 = vector.shape_cast %183 : vector<16x8xf32> to vector<2x8x8xf32>
    %185 = vector.extract_strided_slice %182 {offsets = [0, 8], sizes = [16, 8], strides = [1, 1]} : vector<16x32xf32> to vector<16x8xf32>
    %186 = vector.shape_cast %185 : vector<16x8xf32> to vector<2x8x8xf32>
    %187 = vector.extract_strided_slice %182 {offsets = [0, 16], sizes = [16, 8], strides = [1, 1]} : vector<16x32xf32> to vector<16x8xf32>
    %188 = vector.shape_cast %187 : vector<16x8xf32> to vector<2x8x8xf32>
    %189 = vector.extract_strided_slice %182 {offsets = [0, 24], sizes = [16, 8], strides = [1, 1]} : vector<16x32xf32> to vector<16x8xf32>
    %190 = vector.shape_cast %189 : vector<16x8xf32> to vector<2x8x8xf32>
    %191 = tpu.concatenate %184, %186, %188, %190 in 0 : vector<2x8x8xf32>, vector<2x8x8xf32>, vector<2x8x8xf32>, vector<2x8x8xf32> -> vector<8x8x8xf32>
    "tpu.trace_start"() <{level = 10 : i32, message = "bqd,bkd->bqk"}> : () -> ()
    %cst_47 = arith.constant dense<0.000000e+00> : vector<8x8x8xf32>
    %192 = tpu.matmul %171, %181, %cst_47 {dimension_numbers = #tpu.dot_dimension_numbers<[2], [2], [1], [1], [0, 0, 0, 1, 1, 1], [0], [0]>} : vector<8x8x8xf32>, vector<8x8x8xf32>, vector<8x8x8xf32> -> vector<8x8x8xf32>
    "tpu.trace_stop"() : () -> ()
    %193 = vector.broadcast %17 : vector<8x1x8xf32> to vector<8x8x8xf32>
    %194 = arith.addf %192, %193 : vector<8x8x8xf32>
    %cst_48 = arith.constant dense<0xFF800000> : vector<8x8xf32>
    %195 = vector.multi_reduction <maximumf>, %194, %cst_48 [2] : vector<8x8x8xf32> to vector<8x8xf32>
    %196 = vector.shape_cast %195 : vector<8x8xf32> to vector<8x8x1xf32>
    %197 = vector.broadcast %196 : vector<8x8x1xf32> to vector<8x8x8xf32>
    %198 = arith.subf %194, %197 : vector<8x8x8xf32>
    %199 = math.exp %198 : vector<8x8x8xf32>
    %cst_49 = arith.constant dense<0.000000e+00> : vector<8x8xf32>
    %200 = vector.multi_reduction <add>, %199, %cst_49 [2] : vector<8x8x8xf32> to vector<8x8xf32>
    %201 = vector.shape_cast %200 : vector<8x8xf32> to vector<8x8x1xf32>
    %202 = tpu.reciprocal %201 {approx = true} : vector<8x8x1xf32> -> vector<8x8x1xf32>
    %203 = vector.broadcast %202 : vector<8x8x1xf32> to vector<8x8x8xf32>
    %204 = arith.mulf %199, %203 : vector<8x8x8xf32>
    "tpu.trace_start"() <{level = 10 : i32, message = "bqk,bkd->bqd"}> : () -> ()
    %cst_50 = arith.constant dense<0.000000e+00> : vector<8x8x8xf32>
    %205 = tpu.matmul %204, %191, %cst_50 {dimension_numbers = #tpu.dot_dimension_numbers<[2], [1], [1], [2], [0, 0, 0, 1, 1, 2], [0], [0]>} : vector<8x8x8xf32>, vector<8x8x8xf32>, vector<8x8x8xf32> -> vector<8x8x8xf32>
    "tpu.trace_stop"() : () -> ()
    %206 = vector.extract_strided_slice %205 {offsets = [0, 0, 0], sizes = [2, 8, 8], strides = [1, 1, 1]} : vector<8x8x8xf32> to vector<2x8x8xf32>
    %207 = vector.shape_cast %206 : vector<2x8x8xf32> to vector<16x8xf32>
    %208 = vector.extract_strided_slice %205 {offsets = [2, 0, 0], sizes = [2, 8, 8], strides = [1, 1, 1]} : vector<8x8x8xf32> to vector<2x8x8xf32>
    %209 = vector.shape_cast %208 : vector<2x8x8xf32> to vector<16x8xf32>
    %210 = vector.extract_strided_slice %205 {offsets = [4, 0, 0], sizes = [2, 8, 8], strides = [1, 1, 1]} : vector<8x8x8xf32> to vector<2x8x8xf32>
    %211 = vector.shape_cast %210 : vector<2x8x8xf32> to vector<16x8xf32>
    %212 = vector.extract_strided_slice %205 {offsets = [6, 0, 0], sizes = [2, 8, 8], strides = [1, 1, 1]} : vector<8x8x8xf32> to vector<2x8x8xf32>
    %213 = vector.shape_cast %212 : vector<2x8x8xf32> to vector<16x8xf32>
    %214 = tpu.concatenate %207, %209, %211, %213 in 1 : vector<16x8xf32>, vector<16x8xf32>, vector<16x8xf32>, vector<16x8xf32> -> vector<16x32xf32>
    %c280 = arith.constant 280 : index
    %c0_51 = arith.constant 0 : index
    %215 = vector.load %arg4[%c280, %c0_51] : memref<1256x128xf32, #tpu.memory_space<vmem>>, vector<32x32xf32>
    %cst_52 = arith.constant dense<0.000000e+00> : vector<16x32xf32>
    %216 = tpu.matmul %214, %215, %cst_52 {dimension_numbers = #tpu.dot_dimension_numbers<[1], [0], [0], [1], [0, 0, 1, 1], [], []>} : vector<16x32xf32>, vector<32x32xf32>, vector<16x32xf32> -> vector<16x32xf32>
    %c312 = arith.constant 312 : index
    %c0_53 = arith.constant 0 : index
    %217 = vector.load %arg4[%c312, %c0_53] : memref<1256x128xf32, #tpu.memory_space<vmem>>, vector<1x32xf32>
    %218 = vector.broadcast %217 : vector<1x32xf32> to vector<16x32xf32>
    %219 = arith.addf %216, %218 : vector<16x32xf32>
    %220 = arith.addf %156, %219 : vector<16x32xf32>
    %cst_54 = arith.constant dense<0.000000e+00> : vector<16xf32>
    %221 = vector.multi_reduction <add>, %220, %cst_54 [1] : vector<16x32xf32> to vector<16xf32>
    %222 = vector.shape_cast %221 : vector<16xf32> to vector<16x1xf32>
    %cst_55 = arith.constant 3.200000e+01 : f32
    %223 = vector.broadcast %cst_55 : f32 to vector<16x1xf32>
    %224 = arith.divf %222, %223 : vector<16x1xf32>
    %225 = vector.broadcast %224 : vector<16x1xf32> to vector<16x32xf32>
    %226 = arith.subf %220, %225 : vector<16x32xf32>
    %227 = arith.mulf %226, %226 : vector<16x32xf32>
    %cst_56 = arith.constant dense<0.000000e+00> : vector<16xf32>
    %228 = vector.multi_reduction <add>, %227, %cst_56 [1] : vector<16x32xf32> to vector<16xf32>
    %229 = vector.shape_cast %228 : vector<16xf32> to vector<16x1xf32>
    %cst_57 = arith.constant 3.200000e+01 : f32
    %230 = vector.broadcast %cst_57 : f32 to vector<16x1xf32>
    %231 = arith.divf %229, %230 : vector<16x1xf32>
    %232 = vector.broadcast %224 : vector<16x1xf32> to vector<16x32xf32>
    %233 = arith.subf %220, %232 : vector<16x32xf32>
    %cst_58 = arith.constant 9.99999974E-6 : f32
    %234 = vector.broadcast %cst_58 : f32 to vector<16x1xf32>
    %235 = arith.addf %231, %234 : vector<16x1xf32>
    %236 = math.rsqrt %235 : vector<16x1xf32>
    %237 = vector.broadcast %236 : vector<16x1xf32> to vector<16x32xf32>
    %238 = arith.mulf %233, %237 : vector<16x32xf32>
    %c432 = arith.constant 432 : index
    %c0_59 = arith.constant 0 : index
    %239 = vector.load %arg4[%c432, %c0_59] : memref<1256x128xf32, #tpu.memory_space<vmem>>, vector<1x32xf32>
    %240 = vector.broadcast %239 : vector<1x32xf32> to vector<16x32xf32>
    %241 = arith.mulf %238, %240 : vector<16x32xf32>
    %c440 = arith.constant 440 : index
    %c0_60 = arith.constant 0 : index
    %242 = vector.load %arg4[%c440, %c0_60] : memref<1256x128xf32, #tpu.memory_space<vmem>>, vector<1x32xf32>
    %243 = vector.broadcast %242 : vector<1x32xf32> to vector<16x32xf32>
    %244 = arith.addf %241, %243 : vector<16x32xf32>
    %c320 = arith.constant 320 : index
    %c0_61 = arith.constant 0 : index
    %245 = vector.load %arg4[%c320, %c0_61] : memref<1256x128xf32, #tpu.memory_space<vmem>>, vector<32x64xf32>
    %cst_62 = arith.constant dense<0.000000e+00> : vector<16x64xf32>
    %246 = tpu.matmul %244, %245, %cst_62 {dimension_numbers = #tpu.dot_dimension_numbers<[1], [0], [0], [1], [0, 0, 1, 1], [], []>} : vector<16x32xf32>, vector<32x64xf32>, vector<16x64xf32> -> vector<16x64xf32>
    %c352 = arith.constant 352 : index
    %c0_63 = arith.constant 0 : index
    %247 = vector.load %arg4[%c352, %c0_63] : memref<1256x128xf32, #tpu.memory_space<vmem>>, vector<1x64xf32>
    %248 = vector.broadcast %247 : vector<1x64xf32> to vector<16x64xf32>
    %249 = arith.addf %246, %248 : vector<16x64xf32>
    %cst_64 = arith.constant 0.000000e+00 : f32
    %250 = vector.broadcast %cst_64 : f32 to vector<16x64xf32>
    %251 = arith.maximumf %249, %250 : vector<16x64xf32>
    %c360 = arith.constant 360 : index
    %c0_65 = arith.constant 0 : index
    %252 = vector.load %arg4[%c360, %c0_65] : memref<1256x128xf32, #tpu.memory_space<vmem>>, vector<64x32xf32>
    %cst_66 = arith.constant dense<0.000000e+00> : vector<16x32xf32>
    %253 = tpu.matmul %251, %252, %cst_66 {dimension_numbers = #tpu.dot_dimension_numbers<[1], [0], [0], [1], [0, 0, 1, 1], [], []>} : vector<16x64xf32>, vector<64x32xf32>, vector<16x32xf32> -> vector<16x32xf32>
    %c424 = arith.constant 424 : index
    %c0_67 = arith.constant 0 : index
    %254 = vector.load %arg4[%c424, %c0_67] : memref<1256x128xf32, #tpu.memory_space<vmem>>, vector<1x32xf32>
    %255 = vector.broadcast %254 : vector<1x32xf32> to vector<16x32xf32>
    %256 = arith.addf %253, %255 : vector<16x32xf32>
    %257 = arith.addf %244, %256 : vector<16x32xf32>
    %cst_68 = arith.constant dense<0.000000e+00> : vector<16xf32>
    %258 = vector.multi_reduction <add>, %257, %cst_68 [1] : vector<16x32xf32> to vector<16xf32>
    %259 = vector.shape_cast %258 : vector<16xf32> to vector<16x1xf32>
    %cst_69 = arith.constant 3.200000e+01 : f32
    %260 = vector.broadcast %cst_69 : f32 to vector<16x1xf32>
    %261 = arith.divf %259, %260 : vector<16x1xf32>
    %262 = vector.broadcast %261 : vector<16x1xf32> to vector<16x32xf32>
    %263 = arith.subf %257, %262 : vector<16x32xf32>
    %264 = arith.mulf %263, %263 : vector<16x32xf32>
    %cst_70 = arith.constant dense<0.000000e+00> : vector<16xf32>
    %265 = vector.multi_reduction <add>, %264, %cst_70 [1] : vector<16x32xf32> to vector<16xf32>
    %266 = vector.shape_cast %265 : vector<16xf32> to vector<16x1xf32>
    %cst_71 = arith.constant 3.200000e+01 : f32
    %267 = vector.broadcast %cst_71 : f32 to vector<16x1xf32>
    %268 = arith.divf %266, %267 : vector<16x1xf32>
    %269 = vector.broadcast %261 : vector<16x1xf32> to vector<16x32xf32>
    %270 = arith.subf %257, %269 : vector<16x32xf32>
    %cst_72 = arith.constant 9.99999974E-6 : f32
    %271 = vector.broadcast %cst_72 : f32 to vector<16x1xf32>
    %272 = arith.addf %268, %271 : vector<16x1xf32>
    %273 = math.rsqrt %272 : vector<16x1xf32>
    %274 = vector.broadcast %273 : vector<16x1xf32> to vector<16x32xf32>
    %275 = arith.mulf %270, %274 : vector<16x32xf32>
    %c448 = arith.constant 448 : index
    %c0_73 = arith.constant 0 : index
    %276 = vector.load %arg4[%c448, %c0_73] : memref<1256x128xf32, #tpu.memory_space<vmem>>, vector<1x32xf32>
    %277 = vector.broadcast %276 : vector<1x32xf32> to vector<16x32xf32>
    %278 = arith.mulf %275, %277 : vector<16x32xf32>
    %c456 = arith.constant 456 : index
    %c0_74 = arith.constant 0 : index
    %279 = vector.load %arg4[%c456, %c0_74] : memref<1256x128xf32, #tpu.memory_space<vmem>>, vector<1x32xf32>
    %280 = vector.broadcast %279 : vector<1x32xf32> to vector<16x32xf32>
    %281 = arith.addf %278, %280 : vector<16x32xf32>
    %cst_75 = arith.constant dense<0.000000e+00> : vector<16xf32>
    %282 = vector.multi_reduction <add>, %281, %cst_75 [1] : vector<16x32xf32> to vector<16xf32>
    %283 = vector.shape_cast %282 : vector<16xf32> to vector<16x1xf32>
    %cst_76 = arith.constant 3.200000e+01 : f32
    %284 = vector.broadcast %cst_76 : f32 to vector<16x1xf32>
    %285 = arith.divf %283, %284 : vector<16x1xf32>
    %286 = vector.broadcast %285 : vector<16x1xf32> to vector<16x32xf32>
    %287 = arith.subf %281, %286 : vector<16x32xf32>
    %288 = arith.mulf %287, %287 : vector<16x32xf32>
    %cst_77 = arith.constant dense<0.000000e+00> : vector<16xf32>
    %289 = vector.multi_reduction <add>, %288, %cst_77 [1] : vector<16x32xf32> to vector<16xf32>
    %290 = vector.shape_cast %289 : vector<16xf32> to vector<16x1xf32>
    %cst_78 = arith.constant 3.200000e+01 : f32
    %291 = vector.broadcast %cst_78 : f32 to vector<16x1xf32>
    %292 = arith.divf %290, %291 : vector<16x1xf32>
    %293 = vector.broadcast %285 : vector<16x1xf32> to vector<16x32xf32>
    %294 = arith.subf %281, %293 : vector<16x32xf32>
    %cst_79 = arith.constant 9.99999974E-6 : f32
    %295 = vector.broadcast %cst_79 : f32 to vector<16x1xf32>
    %296 = arith.addf %292, %295 : vector<16x1xf32>
    %297 = math.rsqrt %296 : vector<16x1xf32>
    %298 = vector.broadcast %297 : vector<16x1xf32> to vector<16x32xf32>
    %299 = arith.mulf %294, %298 : vector<16x32xf32>
    %c464 = arith.constant 464 : index
    %c0_80 = arith.constant 0 : index
    %300 = vector.load %arg4[%c464, %c0_80] : memref<1256x128xf32, #tpu.memory_space<vmem>>, vector<1x32xf32>
    %301 = vector.broadcast %300 : vector<1x32xf32> to vector<16x32xf32>
    %302 = arith.mulf %299, %301 : vector<16x32xf32>
    %c472 = arith.constant 472 : index
    %c0_81 = arith.constant 0 : index
    %303 = vector.load %arg4[%c472, %c0_81] : memref<1256x128xf32, #tpu.memory_space<vmem>>, vector<1x32xf32>
    %304 = vector.broadcast %303 : vector<1x32xf32> to vector<16x32xf32>
    %305 = arith.addf %302, %304 : vector<16x32xf32>
    %c480 = arith.constant 480 : index
    %c0_82 = arith.constant 0 : index
    %306 = vector.load %arg4[%c480, %c0_82] : memref<1256x128xf32, #tpu.memory_space<vmem>>, vector<32x96xf32>
    %cst_83 = arith.constant dense<0.000000e+00> : vector<16x96xf32>
    %307 = tpu.matmul %13, %306, %cst_83 {dimension_numbers = #tpu.dot_dimension_numbers<[1], [0], [0], [1], [0, 0, 1, 1], [], []>} : vector<16x32xf32>, vector<32x96xf32>, vector<16x96xf32> -> vector<16x96xf32>
    %c512 = arith.constant 512 : index
    %c0_84 = arith.constant 0 : index
    %308 = vector.load %arg4[%c512, %c0_84] : memref<1256x128xf32, #tpu.memory_space<vmem>>, vector<1x96xf32>
    %309 = vector.broadcast %308 : vector<1x96xf32> to vector<16x96xf32>
    %310 = arith.addf %307, %309 : vector<16x96xf32>
    %311 = vector.extract_strided_slice %310 {offsets = [0, 0], sizes = [16, 32], strides = [1, 1]} : vector<16x96xf32> to vector<16x32xf32>
    %312 = vector.extract_strided_slice %311 {offsets = [0, 0], sizes = [16, 8], strides = [1, 1]} : vector<16x32xf32> to vector<16x8xf32>
    %313 = vector.shape_cast %312 : vector<16x8xf32> to vector<2x8x8xf32>
    %314 = vector.extract_strided_slice %311 {offsets = [0, 8], sizes = [16, 8], strides = [1, 1]} : vector<16x32xf32> to vector<16x8xf32>
    %315 = vector.shape_cast %314 : vector<16x8xf32> to vector<2x8x8xf32>
    %316 = vector.extract_strided_slice %311 {offsets = [0, 16], sizes = [16, 8], strides = [1, 1]} : vector<16x32xf32> to vector<16x8xf32>
    %317 = vector.shape_cast %316 : vector<16x8xf32> to vector<2x8x8xf32>
    %318 = vector.extract_strided_slice %311 {offsets = [0, 24], sizes = [16, 8], strides = [1, 1]} : vector<16x32xf32> to vector<16x8xf32>
    %319 = vector.shape_cast %318 : vector<16x8xf32> to vector<2x8x8xf32>
    %320 = tpu.concatenate %313, %315, %317, %319 in 0 : vector<2x8x8xf32>, vector<2x8x8xf32>, vector<2x8x8xf32>, vector<2x8x8xf32> -> vector<8x8x8xf32>
    %321 = vector.extract_strided_slice %310 {offsets = [0, 32], sizes = [16, 32], strides = [1, 1]} : vector<16x96xf32> to vector<16x32xf32>
    %322 = vector.extract_strided_slice %321 {offsets = [0, 0], sizes = [16, 8], strides = [1, 1]} : vector<16x32xf32> to vector<16x8xf32>
    %323 = vector.shape_cast %322 : vector<16x8xf32> to vector<2x8x8xf32>
    %324 = vector.extract_strided_slice %321 {offsets = [0, 8], sizes = [16, 8], strides = [1, 1]} : vector<16x32xf32> to vector<16x8xf32>
    %325 = vector.shape_cast %324 : vector<16x8xf32> to vector<2x8x8xf32>
    %326 = vector.extract_strided_slice %321 {offsets = [0, 16], sizes = [16, 8], strides = [1, 1]} : vector<16x32xf32> to vector<16x8xf32>
    %327 = vector.shape_cast %326 : vector<16x8xf32> to vector<2x8x8xf32>
    %328 = vector.extract_strided_slice %321 {offsets = [0, 24], sizes = [16, 8], strides = [1, 1]} : vector<16x32xf32> to vector<16x8xf32>
    %329 = vector.shape_cast %328 : vector<16x8xf32> to vector<2x8x8xf32>
    %330 = tpu.concatenate %323, %325, %327, %329 in 0 : vector<2x8x8xf32>, vector<2x8x8xf32>, vector<2x8x8xf32>, vector<2x8x8xf32> -> vector<8x8x8xf32>
    %331 = vector.extract_strided_slice %310 {offsets = [0, 64], sizes = [16, 32], strides = [1, 1]} : vector<16x96xf32> to vector<16x32xf32>
    %332 = vector.extract_strided_slice %331 {offsets = [0, 0], sizes = [16, 8], strides = [1, 1]} : vector<16x32xf32> to vector<16x8xf32>
    %333 = vector.shape_cast %332 : vector<16x8xf32> to vector<2x8x8xf32>
    %334 = vector.extract_strided_slice %331 {offsets = [0, 8], sizes = [16, 8], strides = [1, 1]} : vector<16x32xf32> to vector<16x8xf32>
    %335 = vector.shape_cast %334 : vector<16x8xf32> to vector<2x8x8xf32>
    %336 = vector.extract_strided_slice %331 {offsets = [0, 16], sizes = [16, 8], strides = [1, 1]} : vector<16x32xf32> to vector<16x8xf32>
    %337 = vector.shape_cast %336 : vector<16x8xf32> to vector<2x8x8xf32>
    %338 = vector.extract_strided_slice %331 {offsets = [0, 24], sizes = [16, 8], strides = [1, 1]} : vector<16x32xf32> to vector<16x8xf32>
    %339 = vector.shape_cast %338 : vector<16x8xf32> to vector<2x8x8xf32>
    %340 = tpu.concatenate %333, %335, %337, %339 in 0 : vector<2x8x8xf32>, vector<2x8x8xf32>, vector<2x8x8xf32>, vector<2x8x8xf32> -> vector<8x8x8xf32>
    "tpu.trace_start"() <{level = 10 : i32, message = "bqd,bkd->bqk"}> : () -> ()
    %cst_85 = arith.constant dense<0.000000e+00> : vector<8x8x8xf32>
    %341 = tpu.matmul %320, %330, %cst_85 {dimension_numbers = #tpu.dot_dimension_numbers<[2], [2], [1], [1], [0, 0, 0, 1, 1, 1], [0], [0]>} : vector<8x8x8xf32>, vector<8x8x8xf32>, vector<8x8x8xf32> -> vector<8x8x8xf32>
    "tpu.trace_stop"() : () -> ()
    %342 = arith.addf %341, %31 : vector<8x8x8xf32>
    %cst_86 = arith.constant dense<0xFF800000> : vector<8x8xf32>
    %343 = vector.multi_reduction <maximumf>, %342, %cst_86 [2] : vector<8x8x8xf32> to vector<8x8xf32>
    %344 = vector.shape_cast %343 : vector<8x8xf32> to vector<8x8x1xf32>
    %345 = vector.broadcast %344 : vector<8x8x1xf32> to vector<8x8x8xf32>
    %346 = arith.subf %342, %345 : vector<8x8x8xf32>
    %347 = math.exp %346 : vector<8x8x8xf32>
    %cst_87 = arith.constant dense<0.000000e+00> : vector<8x8xf32>
    %348 = vector.multi_reduction <add>, %347, %cst_87 [2] : vector<8x8x8xf32> to vector<8x8xf32>
    %349 = vector.shape_cast %348 : vector<8x8xf32> to vector<8x8x1xf32>
    %350 = tpu.reciprocal %349 {approx = true} : vector<8x8x1xf32> -> vector<8x8x1xf32>
    %351 = vector.broadcast %350 : vector<8x8x1xf32> to vector<8x8x8xf32>
    %352 = arith.mulf %347, %351 : vector<8x8x8xf32>
    "tpu.trace_start"() <{level = 10 : i32, message = "bqk,bkd->bqd"}> : () -> ()
    %cst_88 = arith.constant dense<0.000000e+00> : vector<8x8x8xf32>
    %353 = tpu.matmul %352, %340, %cst_88 {dimension_numbers = #tpu.dot_dimension_numbers<[2], [1], [1], [2], [0, 0, 0, 1, 1, 2], [0], [0]>} : vector<8x8x8xf32>, vector<8x8x8xf32>, vector<8x8x8xf32> -> vector<8x8x8xf32>
    "tpu.trace_stop"() : () -> ()
    %354 = vector.extract_strided_slice %353 {offsets = [0, 0, 0], sizes = [2, 8, 8], strides = [1, 1, 1]} : vector<8x8x8xf32> to vector<2x8x8xf32>
    %355 = vector.shape_cast %354 : vector<2x8x8xf32> to vector<16x8xf32>
    %356 = vector.extract_strided_slice %353 {offsets = [2, 0, 0], sizes = [2, 8, 8], strides = [1, 1, 1]} : vector<8x8x8xf32> to vector<2x8x8xf32>
    %357 = vector.shape_cast %356 : vector<2x8x8xf32> to vector<16x8xf32>
    %358 = vector.extract_strided_slice %353 {offsets = [4, 0, 0], sizes = [2, 8, 8], strides = [1, 1, 1]} : vector<8x8x8xf32> to vector<2x8x8xf32>
    %359 = vector.shape_cast %358 : vector<2x8x8xf32> to vector<16x8xf32>
    %360 = vector.extract_strided_slice %353 {offsets = [6, 0, 0], sizes = [2, 8, 8], strides = [1, 1, 1]} : vector<8x8x8xf32> to vector<2x8x8xf32>
    %361 = vector.shape_cast %360 : vector<2x8x8xf32> to vector<16x8xf32>
    %362 = tpu.concatenate %355, %357, %359, %361 in 1 : vector<16x8xf32>, vector<16x8xf32>, vector<16x8xf32>, vector<16x8xf32> -> vector<16x32xf32>
    %c520 = arith.constant 520 : index
    %c0_89 = arith.constant 0 : index
    %363 = vector.load %arg4[%c520, %c0_89] : memref<1256x128xf32, #tpu.memory_space<vmem>>, vector<32x32xf32>
    %cst_90 = arith.constant dense<0.000000e+00> : vector<16x32xf32>
    %364 = tpu.matmul %362, %363, %cst_90 {dimension_numbers = #tpu.dot_dimension_numbers<[1], [0], [0], [1], [0, 0, 1, 1], [], []>} : vector<16x32xf32>, vector<32x32xf32>, vector<16x32xf32> -> vector<16x32xf32>
    %c552 = arith.constant 552 : index
    %c0_91 = arith.constant 0 : index
    %365 = vector.load %arg4[%c552, %c0_91] : memref<1256x128xf32, #tpu.memory_space<vmem>>, vector<1x32xf32>
    %366 = vector.broadcast %365 : vector<1x32xf32> to vector<16x32xf32>
    %367 = arith.addf %364, %366 : vector<16x32xf32>
    %368 = arith.addf %13, %367 : vector<16x32xf32>
    %cst_92 = arith.constant dense<0.000000e+00> : vector<16xf32>
    %369 = vector.multi_reduction <add>, %368, %cst_92 [1] : vector<16x32xf32> to vector<16xf32>
    %370 = vector.shape_cast %369 : vector<16xf32> to vector<16x1xf32>
    %cst_93 = arith.constant 3.200000e+01 : f32
    %371 = vector.broadcast %cst_93 : f32 to vector<16x1xf32>
    %372 = arith.divf %370, %371 : vector<16x1xf32>
    %373 = vector.broadcast %372 : vector<16x1xf32> to vector<16x32xf32>
    %374 = arith.subf %368, %373 : vector<16x32xf32>
    %375 = arith.mulf %374, %374 : vector<16x32xf32>
    %cst_94 = arith.constant dense<0.000000e+00> : vector<16xf32>
    %376 = vector.multi_reduction <add>, %375, %cst_94 [1] : vector<16x32xf32> to vector<16xf32>
    %377 = vector.shape_cast %376 : vector<16xf32> to vector<16x1xf32>
    %cst_95 = arith.constant 3.200000e+01 : f32
    %378 = vector.broadcast %cst_95 : f32 to vector<16x1xf32>
    %379 = arith.divf %377, %378 : vector<16x1xf32>
    %380 = vector.broadcast %372 : vector<16x1xf32> to vector<16x32xf32>
    %381 = arith.subf %368, %380 : vector<16x32xf32>
    %cst_96 = arith.constant 9.99999974E-6 : f32
    %382 = vector.broadcast %cst_96 : f32 to vector<16x1xf32>
    %383 = arith.addf %379, %382 : vector<16x1xf32>
    %384 = math.rsqrt %383 : vector<16x1xf32>
    %385 = vector.broadcast %384 : vector<16x1xf32> to vector<16x32xf32>
    %386 = arith.mulf %381, %385 : vector<16x32xf32>
    %c792 = arith.constant 792 : index
    %c0_97 = arith.constant 0 : index
    %387 = vector.load %arg4[%c792, %c0_97] : memref<1256x128xf32, #tpu.memory_space<vmem>>, vector<1x32xf32>
    %388 = vector.broadcast %387 : vector<1x32xf32> to vector<16x32xf32>
    %389 = arith.mulf %386, %388 : vector<16x32xf32>
    %c800 = arith.constant 800 : index
    %c0_98 = arith.constant 0 : index
    %390 = vector.load %arg4[%c800, %c0_98] : memref<1256x128xf32, #tpu.memory_space<vmem>>, vector<1x32xf32>
    %391 = vector.broadcast %390 : vector<1x32xf32> to vector<16x32xf32>
    %392 = arith.addf %389, %391 : vector<16x32xf32>
    %c560 = arith.constant 560 : index
    %c0_99 = arith.constant 0 : index
    %393 = vector.load %arg4[%c560, %c0_99] : memref<1256x128xf32, #tpu.memory_space<vmem>>, vector<32x32xf32>
    %cst_100 = arith.constant dense<0.000000e+00> : vector<16x32xf32>
    %394 = tpu.matmul %392, %393, %cst_100 {dimension_numbers = #tpu.dot_dimension_numbers<[1], [0], [0], [1], [0, 0, 1, 1], [], []>} : vector<16x32xf32>, vector<32x32xf32>, vector<16x32xf32> -> vector<16x32xf32>
    %c592 = arith.constant 592 : index
    %c0_101 = arith.constant 0 : index
    %395 = vector.load %arg4[%c592, %c0_101] : memref<1256x128xf32, #tpu.memory_space<vmem>>, vector<1x32xf32>
    %396 = vector.broadcast %395 : vector<1x32xf32> to vector<16x32xf32>
    %397 = arith.addf %394, %396 : vector<16x32xf32>
    %398 = vector.extract_strided_slice %397 {offsets = [0, 0], sizes = [16, 8], strides = [1, 1]} : vector<16x32xf32> to vector<16x8xf32>
    %399 = vector.shape_cast %398 : vector<16x8xf32> to vector<2x8x8xf32>
    %400 = vector.extract_strided_slice %397 {offsets = [0, 8], sizes = [16, 8], strides = [1, 1]} : vector<16x32xf32> to vector<16x8xf32>
    %401 = vector.shape_cast %400 : vector<16x8xf32> to vector<2x8x8xf32>
    %402 = vector.extract_strided_slice %397 {offsets = [0, 16], sizes = [16, 8], strides = [1, 1]} : vector<16x32xf32> to vector<16x8xf32>
    %403 = vector.shape_cast %402 : vector<16x8xf32> to vector<2x8x8xf32>
    %404 = vector.extract_strided_slice %397 {offsets = [0, 24], sizes = [16, 8], strides = [1, 1]} : vector<16x32xf32> to vector<16x8xf32>
    %405 = vector.shape_cast %404 : vector<16x8xf32> to vector<2x8x8xf32>
    %406 = tpu.concatenate %399, %401, %403, %405 in 0 : vector<2x8x8xf32>, vector<2x8x8xf32>, vector<2x8x8xf32>, vector<2x8x8xf32> -> vector<8x8x8xf32>
    %c600 = arith.constant 600 : index
    %c0_102 = arith.constant 0 : index
    %407 = vector.load %arg4[%c600, %c0_102] : memref<1256x128xf32, #tpu.memory_space<vmem>>, vector<32x64xf32>
    %cst_103 = arith.constant dense<0.000000e+00> : vector<16x64xf32>
    %408 = tpu.matmul %305, %407, %cst_103 {dimension_numbers = #tpu.dot_dimension_numbers<[1], [0], [0], [1], [0, 0, 1, 1], [], []>} : vector<16x32xf32>, vector<32x64xf32>, vector<16x64xf32> -> vector<16x64xf32>
    %c632 = arith.constant 632 : index
    %c0_104 = arith.constant 0 : index
    %409 = vector.load %arg4[%c632, %c0_104] : memref<1256x128xf32, #tpu.memory_space<vmem>>, vector<1x64xf32>
    %410 = vector.broadcast %409 : vector<1x64xf32> to vector<16x64xf32>
    %411 = arith.addf %408, %410 : vector<16x64xf32>
    %412 = vector.extract_strided_slice %411 {offsets = [0, 0], sizes = [16, 32], strides = [1, 1]} : vector<16x64xf32> to vector<16x32xf32>
    %413 = vector.extract_strided_slice %412 {offsets = [0, 0], sizes = [16, 8], strides = [1, 1]} : vector<16x32xf32> to vector<16x8xf32>
    %414 = vector.shape_cast %413 : vector<16x8xf32> to vector<2x8x8xf32>
    %415 = vector.extract_strided_slice %412 {offsets = [0, 8], sizes = [16, 8], strides = [1, 1]} : vector<16x32xf32> to vector<16x8xf32>
    %416 = vector.shape_cast %415 : vector<16x8xf32> to vector<2x8x8xf32>
    %417 = vector.extract_strided_slice %412 {offsets = [0, 16], sizes = [16, 8], strides = [1, 1]} : vector<16x32xf32> to vector<16x8xf32>
    %418 = vector.shape_cast %417 : vector<16x8xf32> to vector<2x8x8xf32>
    %419 = vector.extract_strided_slice %412 {offsets = [0, 24], sizes = [16, 8], strides = [1, 1]} : vector<16x32xf32> to vector<16x8xf32>
    %420 = vector.shape_cast %419 : vector<16x8xf32> to vector<2x8x8xf32>
    %421 = tpu.concatenate %414, %416, %418, %420 in 0 : vector<2x8x8xf32>, vector<2x8x8xf32>, vector<2x8x8xf32>, vector<2x8x8xf32> -> vector<8x8x8xf32>
    %422 = vector.extract_strided_slice %411 {offsets = [0, 32], sizes = [16, 32], strides = [1, 1]} : vector<16x64xf32> to vector<16x32xf32>
    %423 = vector.extract_strided_slice %422 {offsets = [0, 0], sizes = [16, 8], strides = [1, 1]} : vector<16x32xf32> to vector<16x8xf32>
    %424 = vector.shape_cast %423 : vector<16x8xf32> to vector<2x8x8xf32>
    %425 = vector.extract_strided_slice %422 {offsets = [0, 8], sizes = [16, 8], strides = [1, 1]} : vector<16x32xf32> to vector<16x8xf32>
    %426 = vector.shape_cast %425 : vector<16x8xf32> to vector<2x8x8xf32>
    %427 = vector.extract_strided_slice %422 {offsets = [0, 16], sizes = [16, 8], strides = [1, 1]} : vector<16x32xf32> to vector<16x8xf32>
    %428 = vector.shape_cast %427 : vector<16x8xf32> to vector<2x8x8xf32>
    %429 = vector.extract_strided_slice %422 {offsets = [0, 24], sizes = [16, 8], strides = [1, 1]} : vector<16x32xf32> to vector<16x8xf32>
    %430 = vector.shape_cast %429 : vector<16x8xf32> to vector<2x8x8xf32>
    %431 = tpu.concatenate %424, %426, %428, %430 in 0 : vector<2x8x8xf32>, vector<2x8x8xf32>, vector<2x8x8xf32>, vector<2x8x8xf32> -> vector<8x8x8xf32>
    "tpu.trace_start"() <{level = 10 : i32, message = "bqd,bkd->bqk"}> : () -> ()
    %cst_105 = arith.constant dense<0.000000e+00> : vector<8x8x8xf32>
    %432 = tpu.matmul %406, %421, %cst_105 {dimension_numbers = #tpu.dot_dimension_numbers<[2], [2], [1], [1], [0, 0, 0, 1, 1, 1], [0], [0]>} : vector<8x8x8xf32>, vector<8x8x8xf32>, vector<8x8x8xf32> -> vector<8x8x8xf32>
    "tpu.trace_stop"() : () -> ()
    %cst_106 = arith.constant dense<0xFF800000> : vector<8x8xf32>
    %433 = vector.multi_reduction <maximumf>, %432, %cst_106 [2] : vector<8x8x8xf32> to vector<8x8xf32>
    %434 = vector.shape_cast %433 : vector<8x8xf32> to vector<8x8x1xf32>
    %435 = vector.broadcast %434 : vector<8x8x1xf32> to vector<8x8x8xf32>
    %436 = arith.subf %432, %435 : vector<8x8x8xf32>
    %437 = math.exp %436 : vector<8x8x8xf32>
    %cst_107 = arith.constant dense<0.000000e+00> : vector<8x8xf32>
    %438 = vector.multi_reduction <add>, %437, %cst_107 [2] : vector<8x8x8xf32> to vector<8x8xf32>
    %439 = vector.shape_cast %438 : vector<8x8xf32> to vector<8x8x1xf32>
    %440 = tpu.reciprocal %439 {approx = true} : vector<8x8x1xf32> -> vector<8x8x1xf32>
    %441 = vector.broadcast %440 : vector<8x8x1xf32> to vector<8x8x8xf32>
    %442 = arith.mulf %437, %441 : vector<8x8x8xf32>
    "tpu.trace_start"() <{level = 10 : i32, message = "bqk,bkd->bqd"}> : () -> ()
    %cst_108 = arith.constant dense<0.000000e+00> : vector<8x8x8xf32>
    %443 = tpu.matmul %442, %431, %cst_108 {dimension_numbers = #tpu.dot_dimension_numbers<[2], [1], [1], [2], [0, 0, 0, 1, 1, 2], [0], [0]>} : vector<8x8x8xf32>, vector<8x8x8xf32>, vector<8x8x8xf32> -> vector<8x8x8xf32>
    "tpu.trace_stop"() : () -> ()
    %444 = vector.extract_strided_slice %443 {offsets = [0, 0, 0], sizes = [2, 8, 8], strides = [1, 1, 1]} : vector<8x8x8xf32> to vector<2x8x8xf32>
    %445 = vector.shape_cast %444 : vector<2x8x8xf32> to vector<16x8xf32>
    %446 = vector.extract_strided_slice %443 {offsets = [2, 0, 0], sizes = [2, 8, 8], strides = [1, 1, 1]} : vector<8x8x8xf32> to vector<2x8x8xf32>
    %447 = vector.shape_cast %446 : vector<2x8x8xf32> to vector<16x8xf32>
    %448 = vector.extract_strided_slice %443 {offsets = [4, 0, 0], sizes = [2, 8, 8], strides = [1, 1, 1]} : vector<8x8x8xf32> to vector<2x8x8xf32>
    %449 = vector.shape_cast %448 : vector<2x8x8xf32> to vector<16x8xf32>
    %450 = vector.extract_strided_slice %443 {offsets = [6, 0, 0], sizes = [2, 8, 8], strides = [1, 1, 1]} : vector<8x8x8xf32> to vector<2x8x8xf32>
    %451 = vector.shape_cast %450 : vector<2x8x8xf32> to vector<16x8xf32>
    %452 = tpu.concatenate %445, %447, %449, %451 in 1 : vector<16x8xf32>, vector<16x8xf32>, vector<16x8xf32>, vector<16x8xf32> -> vector<16x32xf32>
    %c640 = arith.constant 640 : index
    %c0_109 = arith.constant 0 : index
    %453 = vector.load %arg4[%c640, %c0_109] : memref<1256x128xf32, #tpu.memory_space<vmem>>, vector<32x32xf32>
    %cst_110 = arith.constant dense<0.000000e+00> : vector<16x32xf32>
    %454 = tpu.matmul %452, %453, %cst_110 {dimension_numbers = #tpu.dot_dimension_numbers<[1], [0], [0], [1], [0, 0, 1, 1], [], []>} : vector<16x32xf32>, vector<32x32xf32>, vector<16x32xf32> -> vector<16x32xf32>
    %c672 = arith.constant 672 : index
    %c0_111 = arith.constant 0 : index
    %455 = vector.load %arg4[%c672, %c0_111] : memref<1256x128xf32, #tpu.memory_space<vmem>>, vector<1x32xf32>
    %456 = vector.broadcast %455 : vector<1x32xf32> to vector<16x32xf32>
    %457 = arith.addf %454, %456 : vector<16x32xf32>
    %458 = arith.addf %392, %457 : vector<16x32xf32>
    %cst_112 = arith.constant dense<0.000000e+00> : vector<16xf32>
    %459 = vector.multi_reduction <add>, %458, %cst_112 [1] : vector<16x32xf32> to vector<16xf32>
    %460 = vector.shape_cast %459 : vector<16xf32> to vector<16x1xf32>
    %cst_113 = arith.constant 3.200000e+01 : f32
    %461 = vector.broadcast %cst_113 : f32 to vector<16x1xf32>
    %462 = arith.divf %460, %461 : vector<16x1xf32>
    %463 = vector.broadcast %462 : vector<16x1xf32> to vector<16x32xf32>
    %464 = arith.subf %458, %463 : vector<16x32xf32>
    %465 = arith.mulf %464, %464 : vector<16x32xf32>
    %cst_114 = arith.constant dense<0.000000e+00> : vector<16xf32>
    %466 = vector.multi_reduction <add>, %465, %cst_114 [1] : vector<16x32xf32> to vector<16xf32>
    %467 = vector.shape_cast %466 : vector<16xf32> to vector<16x1xf32>
    %cst_115 = arith.constant 3.200000e+01 : f32
    %468 = vector.broadcast %cst_115 : f32 to vector<16x1xf32>
    %469 = arith.divf %467, %468 : vector<16x1xf32>
    %470 = vector.broadcast %462 : vector<16x1xf32> to vector<16x32xf32>
    %471 = arith.subf %458, %470 : vector<16x32xf32>
    %cst_116 = arith.constant 9.99999974E-6 : f32
    %472 = vector.broadcast %cst_116 : f32 to vector<16x1xf32>
    %473 = arith.addf %469, %472 : vector<16x1xf32>
    %474 = math.rsqrt %473 : vector<16x1xf32>
    %475 = vector.broadcast %474 : vector<16x1xf32> to vector<16x32xf32>
    %476 = arith.mulf %471, %475 : vector<16x32xf32>
    %c808 = arith.constant 808 : index
    %c0_117 = arith.constant 0 : index
    %477 = vector.load %arg4[%c808, %c0_117] : memref<1256x128xf32, #tpu.memory_space<vmem>>, vector<1x32xf32>
    %478 = vector.broadcast %477 : vector<1x32xf32> to vector<16x32xf32>
    %479 = arith.mulf %476, %478 : vector<16x32xf32>
    %c816 = arith.constant 816 : index
    %c0_118 = arith.constant 0 : index
    %480 = vector.load %arg4[%c816, %c0_118] : memref<1256x128xf32, #tpu.memory_space<vmem>>, vector<1x32xf32>
    %481 = vector.broadcast %480 : vector<1x32xf32> to vector<16x32xf32>
    %482 = arith.addf %479, %481 : vector<16x32xf32>
    %c680 = arith.constant 680 : index
    %c0_119 = arith.constant 0 : index
    %483 = vector.load %arg4[%c680, %c0_119] : memref<1256x128xf32, #tpu.memory_space<vmem>>, vector<32x64xf32>
    %cst_120 = arith.constant dense<0.000000e+00> : vector<16x64xf32>
    %484 = tpu.matmul %482, %483, %cst_120 {dimension_numbers = #tpu.dot_dimension_numbers<[1], [0], [0], [1], [0, 0, 1, 1], [], []>} : vector<16x32xf32>, vector<32x64xf32>, vector<16x64xf32> -> vector<16x64xf32>
    %c712 = arith.constant 712 : index
    %c0_121 = arith.constant 0 : index
    %485 = vector.load %arg4[%c712, %c0_121] : memref<1256x128xf32, #tpu.memory_space<vmem>>, vector<1x64xf32>
    %486 = vector.broadcast %485 : vector<1x64xf32> to vector<16x64xf32>
    %487 = arith.addf %484, %486 : vector<16x64xf32>
    %cst_122 = arith.constant 0.000000e+00 : f32
    %488 = vector.broadcast %cst_122 : f32 to vector<16x64xf32>
    %489 = arith.maximumf %487, %488 : vector<16x64xf32>
    %c720 = arith.constant 720 : index
    %c0_123 = arith.constant 0 : index
    %490 = vector.load %arg4[%c720, %c0_123] : memref<1256x128xf32, #tpu.memory_space<vmem>>, vector<64x32xf32>
    %cst_124 = arith.constant dense<0.000000e+00> : vector<16x32xf32>
    %491 = tpu.matmul %489, %490, %cst_124 {dimension_numbers = #tpu.dot_dimension_numbers<[1], [0], [0], [1], [0, 0, 1, 1], [], []>} : vector<16x64xf32>, vector<64x32xf32>, vector<16x32xf32> -> vector<16x32xf32>
    %c784 = arith.constant 784 : index
    %c0_125 = arith.constant 0 : index
    %492 = vector.load %arg4[%c784, %c0_125] : memref<1256x128xf32, #tpu.memory_space<vmem>>, vector<1x32xf32>
    %493 = vector.broadcast %492 : vector<1x32xf32> to vector<16x32xf32>
    %494 = arith.addf %491, %493 : vector<16x32xf32>
    %495 = arith.addf %482, %494 : vector<16x32xf32>
    %cst_126 = arith.constant dense<0.000000e+00> : vector<16xf32>
    %496 = vector.multi_reduction <add>, %495, %cst_126 [1] : vector<16x32xf32> to vector<16xf32>
    %497 = vector.shape_cast %496 : vector<16xf32> to vector<16x1xf32>
    %cst_127 = arith.constant 3.200000e+01 : f32
    %498 = vector.broadcast %cst_127 : f32 to vector<16x1xf32>
    %499 = arith.divf %497, %498 : vector<16x1xf32>
    %500 = vector.broadcast %499 : vector<16x1xf32> to vector<16x32xf32>
    %501 = arith.subf %495, %500 : vector<16x32xf32>
    %502 = arith.mulf %501, %501 : vector<16x32xf32>
    %cst_128 = arith.constant dense<0.000000e+00> : vector<16xf32>
    %503 = vector.multi_reduction <add>, %502, %cst_128 [1] : vector<16x32xf32> to vector<16xf32>
    %504 = vector.shape_cast %503 : vector<16xf32> to vector<16x1xf32>
    %cst_129 = arith.constant 3.200000e+01 : f32
    %505 = vector.broadcast %cst_129 : f32 to vector<16x1xf32>
    %506 = arith.divf %504, %505 : vector<16x1xf32>
    %507 = vector.broadcast %499 : vector<16x1xf32> to vector<16x32xf32>
    %508 = arith.subf %495, %507 : vector<16x32xf32>
    %cst_130 = arith.constant 9.99999974E-6 : f32
    %509 = vector.broadcast %cst_130 : f32 to vector<16x1xf32>
    %510 = arith.addf %506, %509 : vector<16x1xf32>
    %511 = math.rsqrt %510 : vector<16x1xf32>
    %512 = vector.broadcast %511 : vector<16x1xf32> to vector<16x32xf32>
    %513 = arith.mulf %508, %512 : vector<16x32xf32>
    %c824 = arith.constant 824 : index
    %c0_131 = arith.constant 0 : index
    %514 = vector.load %arg4[%c824, %c0_131] : memref<1256x128xf32, #tpu.memory_space<vmem>>, vector<1x32xf32>
    %515 = vector.broadcast %514 : vector<1x32xf32> to vector<16x32xf32>
    %516 = arith.mulf %513, %515 : vector<16x32xf32>
    %c832 = arith.constant 832 : index
    %c0_132 = arith.constant 0 : index
    %517 = vector.load %arg4[%c832, %c0_132] : memref<1256x128xf32, #tpu.memory_space<vmem>>, vector<1x32xf32>
    %518 = vector.broadcast %517 : vector<1x32xf32> to vector<16x32xf32>
    %519 = arith.addf %516, %518 : vector<16x32xf32>
    %c840 = arith.constant 840 : index
    %c0_133 = arith.constant 0 : index
    %520 = vector.load %arg4[%c840, %c0_133] : memref<1256x128xf32, #tpu.memory_space<vmem>>, vector<32x96xf32>
    %cst_134 = arith.constant dense<0.000000e+00> : vector<16x96xf32>
    %521 = tpu.matmul %519, %520, %cst_134 {dimension_numbers = #tpu.dot_dimension_numbers<[1], [0], [0], [1], [0, 0, 1, 1], [], []>} : vector<16x32xf32>, vector<32x96xf32>, vector<16x96xf32> -> vector<16x96xf32>
    %c872 = arith.constant 872 : index
    %c0_135 = arith.constant 0 : index
    %522 = vector.load %arg4[%c872, %c0_135] : memref<1256x128xf32, #tpu.memory_space<vmem>>, vector<1x96xf32>
    %523 = vector.broadcast %522 : vector<1x96xf32> to vector<16x96xf32>
    %524 = arith.addf %521, %523 : vector<16x96xf32>
    %525 = vector.extract_strided_slice %524 {offsets = [0, 0], sizes = [16, 32], strides = [1, 1]} : vector<16x96xf32> to vector<16x32xf32>
    %526 = vector.extract_strided_slice %525 {offsets = [0, 0], sizes = [16, 8], strides = [1, 1]} : vector<16x32xf32> to vector<16x8xf32>
    %527 = vector.shape_cast %526 : vector<16x8xf32> to vector<2x8x8xf32>
    %528 = vector.extract_strided_slice %525 {offsets = [0, 8], sizes = [16, 8], strides = [1, 1]} : vector<16x32xf32> to vector<16x8xf32>
    %529 = vector.shape_cast %528 : vector<16x8xf32> to vector<2x8x8xf32>
    %530 = vector.extract_strided_slice %525 {offsets = [0, 16], sizes = [16, 8], strides = [1, 1]} : vector<16x32xf32> to vector<16x8xf32>
    %531 = vector.shape_cast %530 : vector<16x8xf32> to vector<2x8x8xf32>
    %532 = vector.extract_strided_slice %525 {offsets = [0, 24], sizes = [16, 8], strides = [1, 1]} : vector<16x32xf32> to vector<16x8xf32>
    %533 = vector.shape_cast %532 : vector<16x8xf32> to vector<2x8x8xf32>
    %534 = tpu.concatenate %527, %529, %531, %533 in 0 : vector<2x8x8xf32>, vector<2x8x8xf32>, vector<2x8x8xf32>, vector<2x8x8xf32> -> vector<8x8x8xf32>
    %535 = vector.extract_strided_slice %524 {offsets = [0, 32], sizes = [16, 32], strides = [1, 1]} : vector<16x96xf32> to vector<16x32xf32>
    %536 = vector.extract_strided_slice %535 {offsets = [0, 0], sizes = [16, 8], strides = [1, 1]} : vector<16x32xf32> to vector<16x8xf32>
    %537 = vector.shape_cast %536 : vector<16x8xf32> to vector<2x8x8xf32>
    %538 = vector.extract_strided_slice %535 {offsets = [0, 8], sizes = [16, 8], strides = [1, 1]} : vector<16x32xf32> to vector<16x8xf32>
    %539 = vector.shape_cast %538 : vector<16x8xf32> to vector<2x8x8xf32>
    %540 = vector.extract_strided_slice %535 {offsets = [0, 16], sizes = [16, 8], strides = [1, 1]} : vector<16x32xf32> to vector<16x8xf32>
    %541 = vector.shape_cast %540 : vector<16x8xf32> to vector<2x8x8xf32>
    %542 = vector.extract_strided_slice %535 {offsets = [0, 24], sizes = [16, 8], strides = [1, 1]} : vector<16x32xf32> to vector<16x8xf32>
    %543 = vector.shape_cast %542 : vector<16x8xf32> to vector<2x8x8xf32>
    %544 = tpu.concatenate %537, %539, %541, %543 in 0 : vector<2x8x8xf32>, vector<2x8x8xf32>, vector<2x8x8xf32>, vector<2x8x8xf32> -> vector<8x8x8xf32>
    %545 = vector.extract_strided_slice %524 {offsets = [0, 64], sizes = [16, 32], strides = [1, 1]} : vector<16x96xf32> to vector<16x32xf32>
    %546 = vector.extract_strided_slice %545 {offsets = [0, 0], sizes = [16, 8], strides = [1, 1]} : vector<16x32xf32> to vector<16x8xf32>
    %547 = vector.shape_cast %546 : vector<16x8xf32> to vector<2x8x8xf32>
    %548 = vector.extract_strided_slice %545 {offsets = [0, 8], sizes = [16, 8], strides = [1, 1]} : vector<16x32xf32> to vector<16x8xf32>
    %549 = vector.shape_cast %548 : vector<16x8xf32> to vector<2x8x8xf32>
    %550 = vector.extract_strided_slice %545 {offsets = [0, 16], sizes = [16, 8], strides = [1, 1]} : vector<16x32xf32> to vector<16x8xf32>
    %551 = vector.shape_cast %550 : vector<16x8xf32> to vector<2x8x8xf32>
    %552 = vector.extract_strided_slice %545 {offsets = [0, 24], sizes = [16, 8], strides = [1, 1]} : vector<16x32xf32> to vector<16x8xf32>
    %553 = vector.shape_cast %552 : vector<16x8xf32> to vector<2x8x8xf32>
    %554 = tpu.concatenate %547, %549, %551, %553 in 0 : vector<2x8x8xf32>, vector<2x8x8xf32>, vector<2x8x8xf32>, vector<2x8x8xf32> -> vector<8x8x8xf32>
    "tpu.trace_start"() <{level = 10 : i32, message = "bqd,bkd->bqk"}> : () -> ()
    %cst_136 = arith.constant dense<0.000000e+00> : vector<8x8x8xf32>
    %555 = tpu.matmul %534, %544, %cst_136 {dimension_numbers = #tpu.dot_dimension_numbers<[2], [2], [1], [1], [0, 0, 0, 1, 1, 1], [0], [0]>} : vector<8x8x8xf32>, vector<8x8x8xf32>, vector<8x8x8xf32> -> vector<8x8x8xf32>
    "tpu.trace_stop"() : () -> ()
    %556 = arith.addf %555, %31 : vector<8x8x8xf32>
    %cst_137 = arith.constant dense<0xFF800000> : vector<8x8xf32>
    %557 = vector.multi_reduction <maximumf>, %556, %cst_137 [2] : vector<8x8x8xf32> to vector<8x8xf32>
    %558 = vector.shape_cast %557 : vector<8x8xf32> to vector<8x8x1xf32>
    %559 = vector.broadcast %558 : vector<8x8x1xf32> to vector<8x8x8xf32>
    %560 = arith.subf %556, %559 : vector<8x8x8xf32>
    %561 = math.exp %560 : vector<8x8x8xf32>
    %cst_138 = arith.constant dense<0.000000e+00> : vector<8x8xf32>
    %562 = vector.multi_reduction <add>, %561, %cst_138 [2] : vector<8x8x8xf32> to vector<8x8xf32>
    %563 = vector.shape_cast %562 : vector<8x8xf32> to vector<8x8x1xf32>
    %564 = tpu.reciprocal %563 {approx = true} : vector<8x8x1xf32> -> vector<8x8x1xf32>
    %565 = vector.broadcast %564 : vector<8x8x1xf32> to vector<8x8x8xf32>
    %566 = arith.mulf %561, %565 : vector<8x8x8xf32>
    "tpu.trace_start"() <{level = 10 : i32, message = "bqk,bkd->bqd"}> : () -> ()
    %cst_139 = arith.constant dense<0.000000e+00> : vector<8x8x8xf32>
    %567 = tpu.matmul %566, %554, %cst_139 {dimension_numbers = #tpu.dot_dimension_numbers<[2], [1], [1], [2], [0, 0, 0, 1, 1, 2], [0], [0]>} : vector<8x8x8xf32>, vector<8x8x8xf32>, vector<8x8x8xf32> -> vector<8x8x8xf32>
    "tpu.trace_stop"() : () -> ()
    %568 = vector.extract_strided_slice %567 {offsets = [0, 0, 0], sizes = [2, 8, 8], strides = [1, 1, 1]} : vector<8x8x8xf32> to vector<2x8x8xf32>
    %569 = vector.shape_cast %568 : vector<2x8x8xf32> to vector<16x8xf32>
    %570 = vector.extract_strided_slice %567 {offsets = [2, 0, 0], sizes = [2, 8, 8], strides = [1, 1, 1]} : vector<8x8x8xf32> to vector<2x8x8xf32>
    %571 = vector.shape_cast %570 : vector<2x8x8xf32> to vector<16x8xf32>
    %572 = vector.extract_strided_slice %567 {offsets = [4, 0, 0], sizes = [2, 8, 8], strides = [1, 1, 1]} : vector<8x8x8xf32> to vector<2x8x8xf32>
    %573 = vector.shape_cast %572 : vector<2x8x8xf32> to vector<16x8xf32>
    %574 = vector.extract_strided_slice %567 {offsets = [6, 0, 0], sizes = [2, 8, 8], strides = [1, 1, 1]} : vector<8x8x8xf32> to vector<2x8x8xf32>
    %575 = vector.shape_cast %574 : vector<2x8x8xf32> to vector<16x8xf32>
    %576 = tpu.concatenate %569, %571, %573, %575 in 1 : vector<16x8xf32>, vector<16x8xf32>, vector<16x8xf32>, vector<16x8xf32> -> vector<16x32xf32>
    %c880 = arith.constant 880 : index
    %c0_140 = arith.constant 0 : index
    %577 = vector.load %arg4[%c880, %c0_140] : memref<1256x128xf32, #tpu.memory_space<vmem>>, vector<32x32xf32>
    %cst_141 = arith.constant dense<0.000000e+00> : vector<16x32xf32>
    %578 = tpu.matmul %576, %577, %cst_141 {dimension_numbers = #tpu.dot_dimension_numbers<[1], [0], [0], [1], [0, 0, 1, 1], [], []>} : vector<16x32xf32>, vector<32x32xf32>, vector<16x32xf32> -> vector<16x32xf32>
    %c912 = arith.constant 912 : index
    %c0_142 = arith.constant 0 : index
    %579 = vector.load %arg4[%c912, %c0_142] : memref<1256x128xf32, #tpu.memory_space<vmem>>, vector<1x32xf32>
    %580 = vector.broadcast %579 : vector<1x32xf32> to vector<16x32xf32>
    %581 = arith.addf %578, %580 : vector<16x32xf32>
    %582 = arith.addf %519, %581 : vector<16x32xf32>
    %cst_143 = arith.constant dense<0.000000e+00> : vector<16xf32>
    %583 = vector.multi_reduction <add>, %582, %cst_143 [1] : vector<16x32xf32> to vector<16xf32>
    %584 = vector.shape_cast %583 : vector<16xf32> to vector<16x1xf32>
    %cst_144 = arith.constant 3.200000e+01 : f32
    %585 = vector.broadcast %cst_144 : f32 to vector<16x1xf32>
    %586 = arith.divf %584, %585 : vector<16x1xf32>
    %587 = vector.broadcast %586 : vector<16x1xf32> to vector<16x32xf32>
    %588 = arith.subf %582, %587 : vector<16x32xf32>
    %589 = arith.mulf %588, %588 : vector<16x32xf32>
    %cst_145 = arith.constant dense<0.000000e+00> : vector<16xf32>
    %590 = vector.multi_reduction <add>, %589, %cst_145 [1] : vector<16x32xf32> to vector<16xf32>
    %591 = vector.shape_cast %590 : vector<16xf32> to vector<16x1xf32>
    %cst_146 = arith.constant 3.200000e+01 : f32
    %592 = vector.broadcast %cst_146 : f32 to vector<16x1xf32>
    %593 = arith.divf %591, %592 : vector<16x1xf32>
    %594 = vector.broadcast %586 : vector<16x1xf32> to vector<16x32xf32>
    %595 = arith.subf %582, %594 : vector<16x32xf32>
    %cst_147 = arith.constant 9.99999974E-6 : f32
    %596 = vector.broadcast %cst_147 : f32 to vector<16x1xf32>
    %597 = arith.addf %593, %596 : vector<16x1xf32>
    %598 = math.rsqrt %597 : vector<16x1xf32>
    %599 = vector.broadcast %598 : vector<16x1xf32> to vector<16x32xf32>
    %600 = arith.mulf %595, %599 : vector<16x32xf32>
    %c1152 = arith.constant 1152 : index
    %c0_148 = arith.constant 0 : index
    %601 = vector.load %arg4[%c1152, %c0_148] : memref<1256x128xf32, #tpu.memory_space<vmem>>, vector<1x32xf32>
    %602 = vector.broadcast %601 : vector<1x32xf32> to vector<16x32xf32>
    %603 = arith.mulf %600, %602 : vector<16x32xf32>
    %c1160 = arith.constant 1160 : index
    %c0_149 = arith.constant 0 : index
    %604 = vector.load %arg4[%c1160, %c0_149] : memref<1256x128xf32, #tpu.memory_space<vmem>>, vector<1x32xf32>
    %605 = vector.broadcast %604 : vector<1x32xf32> to vector<16x32xf32>
    %606 = arith.addf %603, %605 : vector<16x32xf32>
    %c920 = arith.constant 920 : index
    %c0_150 = arith.constant 0 : index
    %607 = vector.load %arg4[%c920, %c0_150] : memref<1256x128xf32, #tpu.memory_space<vmem>>, vector<32x32xf32>
    %cst_151 = arith.constant dense<0.000000e+00> : vector<16x32xf32>
    %608 = tpu.matmul %606, %607, %cst_151 {dimension_numbers = #tpu.dot_dimension_numbers<[1], [0], [0], [1], [0, 0, 1, 1], [], []>} : vector<16x32xf32>, vector<32x32xf32>, vector<16x32xf32> -> vector<16x32xf32>
    %c952 = arith.constant 952 : index
    %c0_152 = arith.constant 0 : index
    %609 = vector.load %arg4[%c952, %c0_152] : memref<1256x128xf32, #tpu.memory_space<vmem>>, vector<1x32xf32>
    %610 = vector.broadcast %609 : vector<1x32xf32> to vector<16x32xf32>
    %611 = arith.addf %608, %610 : vector<16x32xf32>
    %612 = vector.extract_strided_slice %611 {offsets = [0, 0], sizes = [16, 8], strides = [1, 1]} : vector<16x32xf32> to vector<16x8xf32>
    %613 = vector.shape_cast %612 : vector<16x8xf32> to vector<2x8x8xf32>
    %614 = vector.extract_strided_slice %611 {offsets = [0, 8], sizes = [16, 8], strides = [1, 1]} : vector<16x32xf32> to vector<16x8xf32>
    %615 = vector.shape_cast %614 : vector<16x8xf32> to vector<2x8x8xf32>
    %616 = vector.extract_strided_slice %611 {offsets = [0, 16], sizes = [16, 8], strides = [1, 1]} : vector<16x32xf32> to vector<16x8xf32>
    %617 = vector.shape_cast %616 : vector<16x8xf32> to vector<2x8x8xf32>
    %618 = vector.extract_strided_slice %611 {offsets = [0, 24], sizes = [16, 8], strides = [1, 1]} : vector<16x32xf32> to vector<16x8xf32>
    %619 = vector.shape_cast %618 : vector<16x8xf32> to vector<2x8x8xf32>
    %620 = tpu.concatenate %613, %615, %617, %619 in 0 : vector<2x8x8xf32>, vector<2x8x8xf32>, vector<2x8x8xf32>, vector<2x8x8xf32> -> vector<8x8x8xf32>
    %c960 = arith.constant 960 : index
    %c0_153 = arith.constant 0 : index
    %621 = vector.load %arg4[%c960, %c0_153] : memref<1256x128xf32, #tpu.memory_space<vmem>>, vector<32x64xf32>
    %cst_154 = arith.constant dense<0.000000e+00> : vector<16x64xf32>
    %622 = tpu.matmul %305, %621, %cst_154 {dimension_numbers = #tpu.dot_dimension_numbers<[1], [0], [0], [1], [0, 0, 1, 1], [], []>} : vector<16x32xf32>, vector<32x64xf32>, vector<16x64xf32> -> vector<16x64xf32>
    %c992 = arith.constant 992 : index
    %c0_155 = arith.constant 0 : index
    %623 = vector.load %arg4[%c992, %c0_155] : memref<1256x128xf32, #tpu.memory_space<vmem>>, vector<1x64xf32>
    %624 = vector.broadcast %623 : vector<1x64xf32> to vector<16x64xf32>
    %625 = arith.addf %622, %624 : vector<16x64xf32>
    %626 = vector.extract_strided_slice %625 {offsets = [0, 0], sizes = [16, 32], strides = [1, 1]} : vector<16x64xf32> to vector<16x32xf32>
    %627 = vector.extract_strided_slice %626 {offsets = [0, 0], sizes = [16, 8], strides = [1, 1]} : vector<16x32xf32> to vector<16x8xf32>
    %628 = vector.shape_cast %627 : vector<16x8xf32> to vector<2x8x8xf32>
    %629 = vector.extract_strided_slice %626 {offsets = [0, 8], sizes = [16, 8], strides = [1, 1]} : vector<16x32xf32> to vector<16x8xf32>
    %630 = vector.shape_cast %629 : vector<16x8xf32> to vector<2x8x8xf32>
    %631 = vector.extract_strided_slice %626 {offsets = [0, 16], sizes = [16, 8], strides = [1, 1]} : vector<16x32xf32> to vector<16x8xf32>
    %632 = vector.shape_cast %631 : vector<16x8xf32> to vector<2x8x8xf32>
    %633 = vector.extract_strided_slice %626 {offsets = [0, 24], sizes = [16, 8], strides = [1, 1]} : vector<16x32xf32> to vector<16x8xf32>
    %634 = vector.shape_cast %633 : vector<16x8xf32> to vector<2x8x8xf32>
    %635 = tpu.concatenate %628, %630, %632, %634 in 0 : vector<2x8x8xf32>, vector<2x8x8xf32>, vector<2x8x8xf32>, vector<2x8x8xf32> -> vector<8x8x8xf32>
    %636 = vector.extract_strided_slice %625 {offsets = [0, 32], sizes = [16, 32], strides = [1, 1]} : vector<16x64xf32> to vector<16x32xf32>
    %637 = vector.extract_strided_slice %636 {offsets = [0, 0], sizes = [16, 8], strides = [1, 1]} : vector<16x32xf32> to vector<16x8xf32>
    %638 = vector.shape_cast %637 : vector<16x8xf32> to vector<2x8x8xf32>
    %639 = vector.extract_strided_slice %636 {offsets = [0, 8], sizes = [16, 8], strides = [1, 1]} : vector<16x32xf32> to vector<16x8xf32>
    %640 = vector.shape_cast %639 : vector<16x8xf32> to vector<2x8x8xf32>
    %641 = vector.extract_strided_slice %636 {offsets = [0, 16], sizes = [16, 8], strides = [1, 1]} : vector<16x32xf32> to vector<16x8xf32>
    %642 = vector.shape_cast %641 : vector<16x8xf32> to vector<2x8x8xf32>
    %643 = vector.extract_strided_slice %636 {offsets = [0, 24], sizes = [16, 8], strides = [1, 1]} : vector<16x32xf32> to vector<16x8xf32>
    %644 = vector.shape_cast %643 : vector<16x8xf32> to vector<2x8x8xf32>
    %645 = tpu.concatenate %638, %640, %642, %644 in 0 : vector<2x8x8xf32>, vector<2x8x8xf32>, vector<2x8x8xf32>, vector<2x8x8xf32> -> vector<8x8x8xf32>
    "tpu.trace_start"() <{level = 10 : i32, message = "bqd,bkd->bqk"}> : () -> ()
    %cst_156 = arith.constant dense<0.000000e+00> : vector<8x8x8xf32>
    %646 = tpu.matmul %620, %635, %cst_156 {dimension_numbers = #tpu.dot_dimension_numbers<[2], [2], [1], [1], [0, 0, 0, 1, 1, 1], [0], [0]>} : vector<8x8x8xf32>, vector<8x8x8xf32>, vector<8x8x8xf32> -> vector<8x8x8xf32>
    "tpu.trace_stop"() : () -> ()
    %cst_157 = arith.constant dense<0xFF800000> : vector<8x8xf32>
    %647 = vector.multi_reduction <maximumf>, %646, %cst_157 [2] : vector<8x8x8xf32> to vector<8x8xf32>
    %648 = vector.shape_cast %647 : vector<8x8xf32> to vector<8x8x1xf32>
    %649 = vector.broadcast %648 : vector<8x8x1xf32> to vector<8x8x8xf32>
    %650 = arith.subf %646, %649 : vector<8x8x8xf32>
    %651 = math.exp %650 : vector<8x8x8xf32>
    %cst_158 = arith.constant dense<0.000000e+00> : vector<8x8xf32>
    %652 = vector.multi_reduction <add>, %651, %cst_158 [2] : vector<8x8x8xf32> to vector<8x8xf32>
    %653 = vector.shape_cast %652 : vector<8x8xf32> to vector<8x8x1xf32>
    %654 = tpu.reciprocal %653 {approx = true} : vector<8x8x1xf32> -> vector<8x8x1xf32>
    %655 = vector.broadcast %654 : vector<8x8x1xf32> to vector<8x8x8xf32>
    %656 = arith.mulf %651, %655 : vector<8x8x8xf32>
    "tpu.trace_start"() <{level = 10 : i32, message = "bqk,bkd->bqd"}> : () -> ()
    %cst_159 = arith.constant dense<0.000000e+00> : vector<8x8x8xf32>
    %657 = tpu.matmul %656, %645, %cst_159 {dimension_numbers = #tpu.dot_dimension_numbers<[2], [1], [1], [2], [0, 0, 0, 1, 1, 2], [0], [0]>} : vector<8x8x8xf32>, vector<8x8x8xf32>, vector<8x8x8xf32> -> vector<8x8x8xf32>
    "tpu.trace_stop"() : () -> ()
    %658 = vector.extract_strided_slice %657 {offsets = [0, 0, 0], sizes = [2, 8, 8], strides = [1, 1, 1]} : vector<8x8x8xf32> to vector<2x8x8xf32>
    %659 = vector.shape_cast %658 : vector<2x8x8xf32> to vector<16x8xf32>
    %660 = vector.extract_strided_slice %657 {offsets = [2, 0, 0], sizes = [2, 8, 8], strides = [1, 1, 1]} : vector<8x8x8xf32> to vector<2x8x8xf32>
    %661 = vector.shape_cast %660 : vector<2x8x8xf32> to vector<16x8xf32>
    %662 = vector.extract_strided_slice %657 {offsets = [4, 0, 0], sizes = [2, 8, 8], strides = [1, 1, 1]} : vector<8x8x8xf32> to vector<2x8x8xf32>
    %663 = vector.shape_cast %662 : vector<2x8x8xf32> to vector<16x8xf32>
    %664 = vector.extract_strided_slice %657 {offsets = [6, 0, 0], sizes = [2, 8, 8], strides = [1, 1, 1]} : vector<8x8x8xf32> to vector<2x8x8xf32>
    %665 = vector.shape_cast %664 : vector<2x8x8xf32> to vector<16x8xf32>
    %666 = tpu.concatenate %659, %661, %663, %665 in 1 : vector<16x8xf32>, vector<16x8xf32>, vector<16x8xf32>, vector<16x8xf32> -> vector<16x32xf32>
    %c1000 = arith.constant 1000 : index
    %c0_160 = arith.constant 0 : index
    %667 = vector.load %arg4[%c1000, %c0_160] : memref<1256x128xf32, #tpu.memory_space<vmem>>, vector<32x32xf32>
    %cst_161 = arith.constant dense<0.000000e+00> : vector<16x32xf32>
    %668 = tpu.matmul %666, %667, %cst_161 {dimension_numbers = #tpu.dot_dimension_numbers<[1], [0], [0], [1], [0, 0, 1, 1], [], []>} : vector<16x32xf32>, vector<32x32xf32>, vector<16x32xf32> -> vector<16x32xf32>
    %c1032 = arith.constant 1032 : index
    %c0_162 = arith.constant 0 : index
    %669 = vector.load %arg4[%c1032, %c0_162] : memref<1256x128xf32, #tpu.memory_space<vmem>>, vector<1x32xf32>
    %670 = vector.broadcast %669 : vector<1x32xf32> to vector<16x32xf32>
    %671 = arith.addf %668, %670 : vector<16x32xf32>
    %672 = arith.addf %606, %671 : vector<16x32xf32>
    %cst_163 = arith.constant dense<0.000000e+00> : vector<16xf32>
    %673 = vector.multi_reduction <add>, %672, %cst_163 [1] : vector<16x32xf32> to vector<16xf32>
    %674 = vector.shape_cast %673 : vector<16xf32> to vector<16x1xf32>
    %cst_164 = arith.constant 3.200000e+01 : f32
    %675 = vector.broadcast %cst_164 : f32 to vector<16x1xf32>
    %676 = arith.divf %674, %675 : vector<16x1xf32>
    %677 = vector.broadcast %676 : vector<16x1xf32> to vector<16x32xf32>
    %678 = arith.subf %672, %677 : vector<16x32xf32>
    %679 = arith.mulf %678, %678 : vector<16x32xf32>
    %cst_165 = arith.constant dense<0.000000e+00> : vector<16xf32>
    %680 = vector.multi_reduction <add>, %679, %cst_165 [1] : vector<16x32xf32> to vector<16xf32>
    %681 = vector.shape_cast %680 : vector<16xf32> to vector<16x1xf32>
    %cst_166 = arith.constant 3.200000e+01 : f32
    %682 = vector.broadcast %cst_166 : f32 to vector<16x1xf32>
    %683 = arith.divf %681, %682 : vector<16x1xf32>
    %684 = vector.broadcast %676 : vector<16x1xf32> to vector<16x32xf32>
    %685 = arith.subf %672, %684 : vector<16x32xf32>
    %cst_167 = arith.constant 9.99999974E-6 : f32
    %686 = vector.broadcast %cst_167 : f32 to vector<16x1xf32>
    %687 = arith.addf %683, %686 : vector<16x1xf32>
    %688 = math.rsqrt %687 : vector<16x1xf32>
    %689 = vector.broadcast %688 : vector<16x1xf32> to vector<16x32xf32>
    %690 = arith.mulf %685, %689 : vector<16x32xf32>
    %c1168 = arith.constant 1168 : index
    %c0_168 = arith.constant 0 : index
    %691 = vector.load %arg4[%c1168, %c0_168] : memref<1256x128xf32, #tpu.memory_space<vmem>>, vector<1x32xf32>
    %692 = vector.broadcast %691 : vector<1x32xf32> to vector<16x32xf32>
    %693 = arith.mulf %690, %692 : vector<16x32xf32>
    %c1176 = arith.constant 1176 : index
    %c0_169 = arith.constant 0 : index
    %694 = vector.load %arg4[%c1176, %c0_169] : memref<1256x128xf32, #tpu.memory_space<vmem>>, vector<1x32xf32>
    %695 = vector.broadcast %694 : vector<1x32xf32> to vector<16x32xf32>
    %696 = arith.addf %693, %695 : vector<16x32xf32>
    %c1040 = arith.constant 1040 : index
    %c0_170 = arith.constant 0 : index
    %697 = vector.load %arg4[%c1040, %c0_170] : memref<1256x128xf32, #tpu.memory_space<vmem>>, vector<32x64xf32>
    %cst_171 = arith.constant dense<0.000000e+00> : vector<16x64xf32>
    %698 = tpu.matmul %696, %697, %cst_171 {dimension_numbers = #tpu.dot_dimension_numbers<[1], [0], [0], [1], [0, 0, 1, 1], [], []>} : vector<16x32xf32>, vector<32x64xf32>, vector<16x64xf32> -> vector<16x64xf32>
    %c1072 = arith.constant 1072 : index
    %c0_172 = arith.constant 0 : index
    %699 = vector.load %arg4[%c1072, %c0_172] : memref<1256x128xf32, #tpu.memory_space<vmem>>, vector<1x64xf32>
    %700 = vector.broadcast %699 : vector<1x64xf32> to vector<16x64xf32>
    %701 = arith.addf %698, %700 : vector<16x64xf32>
    %cst_173 = arith.constant 0.000000e+00 : f32
    %702 = vector.broadcast %cst_173 : f32 to vector<16x64xf32>
    %703 = arith.maximumf %701, %702 : vector<16x64xf32>
    %c1080 = arith.constant 1080 : index
    %c0_174 = arith.constant 0 : index
    %704 = vector.load %arg4[%c1080, %c0_174] : memref<1256x128xf32, #tpu.memory_space<vmem>>, vector<64x32xf32>
    %cst_175 = arith.constant dense<0.000000e+00> : vector<16x32xf32>
    %705 = tpu.matmul %703, %704, %cst_175 {dimension_numbers = #tpu.dot_dimension_numbers<[1], [0], [0], [1], [0, 0, 1, 1], [], []>} : vector<16x64xf32>, vector<64x32xf32>, vector<16x32xf32> -> vector<16x32xf32>
    %c1144 = arith.constant 1144 : index
    %c0_176 = arith.constant 0 : index
    %706 = vector.load %arg4[%c1144, %c0_176] : memref<1256x128xf32, #tpu.memory_space<vmem>>, vector<1x32xf32>
    %707 = vector.broadcast %706 : vector<1x32xf32> to vector<16x32xf32>
    %708 = arith.addf %705, %707 : vector<16x32xf32>
    %709 = arith.addf %696, %708 : vector<16x32xf32>
    %cst_177 = arith.constant dense<0.000000e+00> : vector<16xf32>
    %710 = vector.multi_reduction <add>, %709, %cst_177 [1] : vector<16x32xf32> to vector<16xf32>
    %711 = vector.shape_cast %710 : vector<16xf32> to vector<16x1xf32>
    %cst_178 = arith.constant 3.200000e+01 : f32
    %712 = vector.broadcast %cst_178 : f32 to vector<16x1xf32>
    %713 = arith.divf %711, %712 : vector<16x1xf32>
    %714 = vector.broadcast %713 : vector<16x1xf32> to vector<16x32xf32>
    %715 = arith.subf %709, %714 : vector<16x32xf32>
    %716 = arith.mulf %715, %715 : vector<16x32xf32>
    %cst_179 = arith.constant dense<0.000000e+00> : vector<16xf32>
    %717 = vector.multi_reduction <add>, %716, %cst_179 [1] : vector<16x32xf32> to vector<16xf32>
    %718 = vector.shape_cast %717 : vector<16xf32> to vector<16x1xf32>
    %cst_180 = arith.constant 3.200000e+01 : f32
    %719 = vector.broadcast %cst_180 : f32 to vector<16x1xf32>
    %720 = arith.divf %718, %719 : vector<16x1xf32>
    %721 = vector.broadcast %713 : vector<16x1xf32> to vector<16x32xf32>
    %722 = arith.subf %709, %721 : vector<16x32xf32>
    %cst_181 = arith.constant 9.99999974E-6 : f32
    %723 = vector.broadcast %cst_181 : f32 to vector<16x1xf32>
    %724 = arith.addf %720, %723 : vector<16x1xf32>
    %725 = math.rsqrt %724 : vector<16x1xf32>
    %726 = vector.broadcast %725 : vector<16x1xf32> to vector<16x32xf32>
    %727 = arith.mulf %722, %726 : vector<16x32xf32>
    %c1184 = arith.constant 1184 : index
    %c0_182 = arith.constant 0 : index
    %728 = vector.load %arg4[%c1184, %c0_182] : memref<1256x128xf32, #tpu.memory_space<vmem>>, vector<1x32xf32>
    %729 = vector.broadcast %728 : vector<1x32xf32> to vector<16x32xf32>
    %730 = arith.mulf %727, %729 : vector<16x32xf32>
    %c1192 = arith.constant 1192 : index
    %c0_183 = arith.constant 0 : index
    %731 = vector.load %arg4[%c1192, %c0_183] : memref<1256x128xf32, #tpu.memory_space<vmem>>, vector<1x32xf32>
    %732 = vector.broadcast %731 : vector<1x32xf32> to vector<16x32xf32>
    %733 = arith.addf %730, %732 : vector<16x32xf32>
    %cst_184 = arith.constant dense<0.000000e+00> : vector<16xf32>
    %734 = vector.multi_reduction <add>, %733, %cst_184 [1] : vector<16x32xf32> to vector<16xf32>
    %735 = vector.shape_cast %734 : vector<16xf32> to vector<16x1xf32>
    %cst_185 = arith.constant 3.200000e+01 : f32
    %736 = vector.broadcast %cst_185 : f32 to vector<16x1xf32>
    %737 = arith.divf %735, %736 : vector<16x1xf32>
    %738 = vector.broadcast %737 : vector<16x1xf32> to vector<16x32xf32>
    %739 = arith.subf %733, %738 : vector<16x32xf32>
    %740 = arith.mulf %739, %739 : vector<16x32xf32>
    %cst_186 = arith.constant dense<0.000000e+00> : vector<16xf32>
    %741 = vector.multi_reduction <add>, %740, %cst_186 [1] : vector<16x32xf32> to vector<16xf32>
    %742 = vector.shape_cast %741 : vector<16xf32> to vector<16x1xf32>
    %cst_187 = arith.constant 3.200000e+01 : f32
    %743 = vector.broadcast %cst_187 : f32 to vector<16x1xf32>
    %744 = arith.divf %742, %743 : vector<16x1xf32>
    %745 = vector.broadcast %737 : vector<16x1xf32> to vector<16x32xf32>
    %746 = arith.subf %733, %745 : vector<16x32xf32>
    %cst_188 = arith.constant 9.99999974E-6 : f32
    %747 = vector.broadcast %cst_188 : f32 to vector<16x1xf32>
    %748 = arith.addf %744, %747 : vector<16x1xf32>
    %749 = math.rsqrt %748 : vector<16x1xf32>
    %750 = vector.broadcast %749 : vector<16x1xf32> to vector<16x32xf32>
    %751 = arith.mulf %746, %750 : vector<16x32xf32>
    %c1200 = arith.constant 1200 : index
    %c0_189 = arith.constant 0 : index
    %752 = vector.load %arg4[%c1200, %c0_189] : memref<1256x128xf32, #tpu.memory_space<vmem>>, vector<1x32xf32>
    %753 = vector.broadcast %752 : vector<1x32xf32> to vector<16x32xf32>
    %754 = arith.mulf %751, %753 : vector<16x32xf32>
    %c1208 = arith.constant 1208 : index
    %c0_190 = arith.constant 0 : index
    %755 = vector.load %arg4[%c1208, %c0_190] : memref<1256x128xf32, #tpu.memory_space<vmem>>, vector<1x32xf32>
    %756 = vector.broadcast %755 : vector<1x32xf32> to vector<16x32xf32>
    %757 = arith.addf %754, %756 : vector<16x32xf32>
    %c1216 = arith.constant 1216 : index
    %c0_191 = arith.constant 0 : index
    %758 = vector.load %arg4[%c1216, %c0_191] : memref<1256x128xf32, #tpu.memory_space<vmem>>, vector<32x16xf32>
    %cst_192 = arith.constant dense<0.000000e+00> : vector<16x16xf32>
    %759 = tpu.matmul %757, %758, %cst_192 {dimension_numbers = #tpu.dot_dimension_numbers<[1], [0], [0], [1], [0, 0, 1, 1], [], []>} : vector<16x32xf32>, vector<32x16xf32>, vector<16x16xf32> -> vector<16x16xf32>
    %c1248 = arith.constant 1248 : index
    %c0_193 = arith.constant 0 : index
    %760 = vector.load %arg4[%c1248, %c0_193] : memref<1256x128xf32, #tpu.memory_space<vmem>>, vector<1x16xf32>
    %761 = vector.broadcast %760 : vector<1x16xf32> to vector<16x16xf32>
    %762 = arith.addf %759, %761 : vector<16x16xf32>
    %c0_194 = arith.constant 0 : index
    %c0_195 = arith.constant 0 : index
    %763 = vector.load %arg5[%c0_194, %c0_195] : memref<16x16xf32, #tpu.memory_space<vmem>>, vector<16x16xf32>
    tpu.vector_store %arg5[%c0_194, %c0_195], %762 {strides = array<i32>} : memref<16x16xf32, #tpu.memory_space<vmem>>, vector<16x16xf32>,
    return
  }
}

</mosaic_0001>

<bundles_post_ra>
// kernel: forward.1
= control target key start
LH: loop header
LB: loop body
LE: loop exit
PB: predicated region body
PF: predicated region fallthrough
CT: control target
= control target key end

     0   :  { %10 = vsyncpa [#allocation3], 0  ;;  %s14095_s0 = inlined_call_operand.vmem [shape: f32[2,8,32], index: 0, kind: input, shape index: {}]   ;;  %s14096_s1 = inlined_call_operand.vmem [shape: f32[2,8,32], index: 1, kind: input, shape index: {}]   ;;  %s14097_s2 = inlined_call_operand.vmem [shape: f32[2,8], index: 2, kind: input, shape index: {}]   ;;  %s14098_s3 = inlined_call_operand.vmem [shape: f32[2,8], index: 3, kind: input, shape index: {}]   ;;  %s14099_s4 = inlined_call_operand.hbm [shape: f32[1256,128], index: 4, kind: input, shape index: {}]   ;;  %s14100_s5 = inlined_call_operand.hbm [shape: f32[16,16], index: 5, kind: output, shape index: {}]  }
   0x1   :  { %11 = vsyncpa [#allocation4], 0  ;;  %s12686_s18 = smov [#allocation2]   ;;  %s12638_s22 = scalar_lea.hbm %s14099_s4, 20096 }
   0x2   :  { %s25_s19 = sshll.u32 %s12686_s18, 4  ;;  %p12639_p0 = scmp.ne.s32.totalorder %s14099_s4, %s12638_s22  ;;  %s26_s19 = int_to_ptr.vmem [resolvable:$true] %s25_s19 }
   0x3   :  { %p12642_p1 = scmp.lt.u32.totalorder %s12638_s22, %s14099_s4 }
   0x5   :  { %p12644_p2 = pnand %p12642_p1, %p12639_p0 }
   0x7   :  { %12647 = shalt.err (!%p12644_p2)
}
   0x8   :  { %s12648_s27 = scalar_lea.vmem %s26_s19, 20096  ;;  %p12653_p4 = scmp.lt.s32.totalorder %s26_s19, %s26_s19 }
   0x9   :  { %p12649_p3 = scmp.ne.s32.totalorder %s26_s19, %s12648_s27  ;;  %p12654_p5 = scmp.lt.s32.totalorder %s12648_s27, %s12648_s27 }
   0xb   :  { %p12655_p6 = por %p12654_p5, %p12653_p4 }
   0xd   :  { %p12656_p7 = pnand %p12655_p6, %p12649_p3 }
   0xf   :  { %12659 = shalt.err (!%p12656_p7)
}
  0x10   :  { %s12687_s28 = smov 128   ;;  %s12688_s29 = smov 8  }
  0x11   :  { %31 = dma.hbm_to_vmem [thread:$0]  %s14099_s4, 20096, %s26_s19, [#allocation3], %s12687_s28, %s12687_s28, %s12688_s29  }
  0x12   :  { %12682 = dma.done.wait [#allocation3], 20096  }
  0x13   :  { %12683 = vsyncadd [#allocation3], 4294947200  ;;  %v111_v0 = vld [vmem:[#allocation2 + $0x10] sm:$0xff]  ;;  %v112_v1 = vld [vmem:[#allocation2 + $0x18] sm:$0xff]  ;;  %vm120_vm0 = vcmask 261120   ;;  %v12689_v13 = vmov 0.0   ;;  %v59_v33 = vlaneseq }
  0x14   :  { %v113_v2 = vld [vmem:[#allocation2 + $0x20] sm:$0xff]  ;;  %v12168_v3 = vpack.c.bf16 %v112_v1, %v111_v0  ;;  %v114_v4 = vld [vmem:[#allocation2 + $0x28] sm:$0xff]  ;;  %v10820_v11 = vld [vmem:[#allocation2 + $0x30] ss:$0 sm:$0xff]  ;;  %11414 = vmatprep.subr.mxu1 %v12689_v13  ;;  %s12691_s10 = smov 120   ;;  %vm12692_vm1 = vmmov 0  }
  0x15   :  { %v35_v5 = vld [vmem:[%s14095_s0] sm:$0xff]  ;;  %v12172_v6 = vpack.c.bf16 %v114_v4, %v113_v2  ;;  %v36_v9 = vld [vmem:[%s14095_s0 + $0x8] sm:$0xff]  ;;  %s12690_s0 = smov 112   ;;  %11416 = vmatprep.mubr.msk.f32.mxu1 %vm12692_vm1, %v12689_v13  ;;  %s12693_s11 = smov 104   ;;  %vm228_vm2 = vcmask 64512   ;;  %v12858_v35 = vshrl.u32 %v59_v33, 7 }
  0x16   :  { %v41_v7 = vld [vmem:[#allocation2] sm:$0xff]  ;;  %12169 = vmatprep.subr.bf16.mxu0 %v12168_v3  ;;  %s12694_s12 = smov 96   ;;  %v12695_v31 = vmov 1966171168   ;;  %s12697_s15 = smov 16   ;;  %vm1557_vm3 = vcmask 130048  }
  0x17   :  { %v12748_v8 = vadd.f32 %v41_v7, %v35_v5  ;;  %12171 = vmatpush3.bf16.msra.mxu0 %v12168_v3  ;;  %v12755_v10 = vadd.f32 %v41_v7, %v36_v9  ;;  %v57_v32 = vunpack.c.l.s4 %v12695_v31  ;;  %v10818_v37 = vld.sshfl [vmem:[%s14097_s2] sm:$0x11 pattern:$0x75316420]  ;;  %v12868_v39 = vsub.s32 0, %v12858_v35  ;;  %s12696_s2 = smov 64  }
  0x18   :  { %12173 = vmatprep.subr.bf16.mxu0 %v12172_v6  ;;  %v55_v40 = vcombine.high %v10818_v37, %v10818_v37  ;;  %s12698_s16 = smov 24   ;;  %vm1560_vm4 = vcmask 195584   ;;  %vm1801_vm5 = vcmask 523264  }
  0x19   :  { %11411 = vmatprep.mubr.msk.f32.mxu0 %vm120_vm0, %v12748_v8  ;;  %v58_v34 = vunpack.c.0.s8 %v57_v32 }
  0x1b   :  { %12175 = vmatpush3.bf16.msra.mxu0 %v12172_v6  ;;  %v12861_v36 = vsub.s32 %v58_v34, %v12858_v35 }
  0x1c   :  { %11434 = vmatprep.subr.mxu0 %v12689_v13 }
  0x1d   :  { %v62_v38 = vrot.slane %v10818_v37, %v12861_v36  ;;  %v69_v42 = vrot.slane %v55_v40, %v12861_v36 }
  0x1e   :  { %11412 = vmatmul.mubr.msk.f32.vlgmr.msra.gmra.mrb[0].mxu0 %vm120_vm0, %v12755_v10 }
  0x1f   :  { %11436 = vmatprep.mubr.msk.f32.mxu0 %vm12692_vm1, %v12689_v13  ;;  %v12871_v41 = vrot.slane %v62_v38, %v12868_v39  ;;  %v12876_v46 = vrot.slane %v69_v42, %v12868_v39 }
  0xf1   :  { %v11413_v12 = vpop.f32.mrb[0].mxu0 }
  0xf2   :  { %v193_v14 = vpop.f32.mrb[1].mxu0  ;;  %v12771_v16 = vadd.f32 %v11413_v12, %v10820_v11 }
  0xf3   :  { %v12761_v15 = vadd.f32 %v10820_v11, %v193_v14 }
  0xf5   :  { %208 = vrot.lane.b32.xlu1 %v12761_v15, %s12690_s0  ;;  %204 = vrot.lane.b32.xlu0 %v12761_v15, %s12691_s10 }
  0xf9   :  { %210 = vrot.lane.b32.xlu1 %v12771_v16, %s12690_s0  ;;  %206 = vrot.lane.b32.xlu0 %v12771_v16, %s12691_s10 }
  0xfd   :  { %214 = vrot.lane.b32.xlu1 %v12771_v16, %s12693_s11  ;;  %212 = vrot.lane.b32.xlu0 %v12761_v15, %s12693_s11 }
 0x101   :  { %303 = vrot.lane.b32.xlu1 %v12771_v16, %s12694_s12  ;;  %226 = vrot.lane.b32.xlu0 %v12761_v15, %s12694_s12 }
 0x167   :  { %v12785_v17 = vpop.permute.xlu1 %208  ;;  %v12787_v18 = vpop.permute.xlu0 %204 }
 0x168   :  { %379 = vrot.lane.b32.xlu0 %v12787_v18, %s12694_s12 }
 0x16b   :  { %v12791_v19 = vpop.permute.xlu1 %210  ;;  %v12793_v20 = vpop.permute.xlu0 %206 }
 0x16c   :  { %531 = vrot.lane.b32.xlu0 %v12785_v17, %s12694_s12  ;;  %455 = vrot.lane.b32.xlu1 %v12793_v20, %s12694_s12 }
 0x16f   :  { %v12799_v21 = vpop.permute.xlu0 %212  ;;  %v12805_v22 = vpop.permute.xlu1 %214 }
 0x170   :  { %607 = vrot.lane.b32.xlu1 %v12791_v19, %s12694_s12  ;;  %683 = vrot.lane.b32.xlu0 %v12799_v21, %s12694_s12 }
 0x173   :  { %v227_v23 = vpop.permute.xlu0 %226  ;;  %v304_v24 = vpop.permute.xlu1 %303 }
 0x174   :  { %759 = vrot.lane.b32.xlu1 %v12805_v22, %s12694_s12  ;;  %11415 = vmatpush3.xpose.msk.msra.mxu1 %vm228_vm2, %v227_v23 }
 0x175   :  { %11419 = vmatprep.subr.mxu1 %v12689_v13 }
 0x177   :  { %11417 = vmatmul.mubr.msk.f32.vlgmr.msra.gmra.mrb[0].mxu1 %vm228_vm2, %v12761_v15 }
 0x178   :  { %11420 = vmatpush3.xpose.msk.msra.mxu1 %vm228_vm2, %v304_v24  ;;  %11421 = vmatprep.mubr.msk.f32.mxu1 %vm12692_vm1, %v12689_v13 }
 0x179   :  { %11424 = vmatprep.subr.mxu1 %v12689_v13 }
 0x17b   :  { %11422 = vmatmul.mubr.msk.f32.vlgmr.msra.gmra.mrb[2].mxu1 %vm228_vm2, %v12771_v16 }
 0x17c   :  { %11426 = vmatprep.mubr.msk.f32.mxu1 %vm12692_vm1, %v12689_v13 }
 0x1da   :  { %v380_v25 = vpop.permute.xlu0 %379 }
 0x1db   :  { %11425 = vmatpush3.xpose.msk.msra.mxu1 %vm228_vm2, %v380_v25 }
 0x1dc   :  { %11429 = vmatprep.subr.mxu1 %v12689_v13 }
 0x1de   :  { %v456_v26 = vpop.permute.xlu1 %455  ;;  %11427 = vmatmul.mubr.msk.f32.vlgmr.msra.gmra.mrb[4].mxu1 %vm228_vm2, %v12787_v18  ;;  %v532_v27 = vpop.permute.xlu0 %531 }
 0x1df   :  { %11430 = vmatpush3.xpose.msk.msra.mxu1 %vm228_vm2, %v456_v26  ;;  %11435 = vmatpush3.xpose.msk.msra.mxu0 %vm228_vm2, %v532_v27 }
 0x1e0   :  { %11431 = vmatprep.mubr.msk.f32.mxu1 %vm12692_vm1, %v12689_v13  ;;  %11439 = vmatprep.subr.mxu1 %v12689_v13 }
 0x1e1   :  { %11444 = vmatprep.subr.mxu0 %v12689_v13 }
 0x1e2   :  { %v608_v28 = vpop.permute.xlu1 %607  ;;  %11432 = vmatmul.mubr.msk.f32.vlgmr.msra.gmra.mrb[6].mxu1 %vm228_vm2, %v12793_v20  ;;  %11437 = vmatmul.mubr.msk.f32.vlgmr.msra.gmra.mrb[2].mxu0 %vm228_vm2, %v12785_v17  ;;  %v684_v29 = vpop.permute.xlu0 %683 }
 0x1e3   :  { %11440 = vmatpush3.xpose.msk.msra.mxu1 %vm228_vm2, %v608_v28  ;;  %11445 = vmatpush3.xpose.msk.msra.mxu0 %vm228_vm2, %v684_v29 }
 0x1e4   :  { %11441 = vmatprep.mubr.msk.f32.mxu1 %vm12692_vm1, %v12689_v13  ;;  %11446 = vmatprep.mubr.msk.f32.mxu0 %vm12692_vm1, %v12689_v13 }
 0x1e5   :  { %11449 = vmatprep.subr.mxu1 %v12689_v13  ;;  %11454 = vmatprep.subr.mxu0 %v12689_v13 }
 0x1e6   :  { %v760_v30 = vpop.permute.xlu1 %759  ;;  %11442 = vmatmul.mubr.msk.f32.vlgmr.msra.gmra.mrb[8].mxu1 %vm228_vm2, %v12791_v19  ;;  %11447 = vmatmul.mubr.msk.f32.vlgmr.msra.gmra.mrb[4].mxu0 %vm228_vm2, %v12799_v21 }
 0x1e7   :  { %11450 = vmatpush3.xpose.msk.msra.mxu1 %vm228_vm2, %v760_v30  ;;  %11451 = vmatprep.mubr.msk.f32.mxu1 %vm12692_vm1, %v12689_v13 }
 0x1e8   :  { %11459 = vmatprep.subr.mxu1 %v12689_v13  ;;  %11456 = vmatprep.mubr.msk.f32.mxu0 %vm12692_vm1, %v12689_v13 }
 0x1ea   :  { %11452 = vmatmul.mubr.msk.f32.vlgmr.msra.gmra.mrb[10].mxu1 %vm228_vm2, %v12805_v22 }
 0x1eb   :  { %11461 = vmatprep.mubr.msk.f32.mxu1 %vm12692_vm1, %v12689_v13 }
 0x24a   :  { %v299_v43 = vpop.f32.mrb[0].mxu1 }
 0x24b   :  { %v300_v44 = vadd.f32 %v299_v43, %v12871_v41  ;;  %v11418_v45 = vpop.f32.mrb[1].mxu1 }
 0x24d   :  { %v835_v47 = vsel %vm228_vm2, %v300_v44, -inf }
 0x24e   :  { %836 = vmax.xlane.f32.xlu0 %v835_v47  ;;  %v375_v48 = vpop.f32.mrb[2].mxu1 }
 0x24f   :  { %v376_v49 = vadd.f32 %v375_v48, %v12876_v46  ;;  %v11423_v50 = vpop.f32.mrb[3].mxu1 }
 0x251   :  { %v838_v51 = vsel %vm228_vm2, %v376_v49, -inf }
 0x252   :  { %839 = vmax.xlane.f32.xlu1 %v838_v51 }
 0x2b1   :  { %v451_v52 = vpop.f32.mrb[4].mxu1 }
 0x2b2   :  { %v452_v53 = vadd.f32 %v451_v52, %v12871_v41  ;;  %v11428_v54 = vpop.f32.mrb[5].mxu1 }
 0x2b4   :  { %v841_v55 = vsel %vm228_vm2, %v452_v53, -inf }
 0x2b5   :  { %842 = vmax.xlane.f32.xlu0 %v841_v55  ;;  %v527_v56 = vpop.f32.mrb[6].mxu1  ;;  %v603_v57 = vpop.f32.mrb[2].mxu0 }
 0x2b6   :  { %v528_v58 = vadd.f32 %v527_v56, %v12876_v46  ;;  %v604_v59 = vadd.f32 %v603_v57, %v12871_v41  ;;  %v11433_v60 = vpop.f32.mrb[7].mxu1  ;;  %v11438_v61 = vpop.f32.mrb[3].mxu0 }
 0x2b8   :  { %v844_v62 = vsel %vm228_vm2, %v528_v58, -inf  ;;  %v847_v63 = vsel %vm228_vm2, %v604_v59, -inf }
 0x2b9   :  { %845 = vmax.xlane.f32.xlu0 %v844_v62  ;;  %v679_v0 = vpop.f32.mrb[8].mxu1  ;;  %848 = vmax.xlane.f32.xlu1 %v847_v63  ;;  %v755_v1 = vpop.f32.mrb[4].mxu0 }
 0x2ba   :  { %v680_v2 = vadd.f32 %v679_v0, %v12876_v46  ;;  %v756_v3 = vadd.f32 %v755_v1, %v12871_v41  ;;  %v11443_v4 = vpop.f32.mrb[9].mxu1  ;;  %v11448_v5 = vpop.f32.mrb[5].mxu0 }
 0x2bc   :  { %v850_v6 = vsel %vm228_vm2, %v680_v2, -inf  ;;  %v853_v7 = vsel %vm228_vm2, %v756_v3, -inf }
 0x2bd   :  { %851 = vmax.xlane.f32.xlu0 %v850_v6  ;;  %v831_v9 = vpop.f32.mrb[10].mxu1  ;;  %854 = vmax.xlane.f32.xlu1 %v853_v7 }
 0x2be   :  { %v832_v11 = vadd.f32 %v831_v9, %v12876_v46  ;;  %v11453_v12 = vpop.f32.mrb[11].mxu1 }
 0x2c0   :  { %v856_v14 = vsel %vm228_vm2, %v832_v11, -inf }
 0x2c1   :  { %857 = vmax.xlane.f32.xlu0 %v856_v14 }
 0x2ce   :  { %923 = vrot.lane.b32.xlu1 %v12761_v15, %s12696_s2 }
 0x2d2   :  { %1075 = vrot.lane.b32.xlu1 %v12787_v18, %s12696_s2 }
 0x2d6   :  { %1151 = vrot.lane.b32.xlu1 %v12793_v20, %s12696_s2 }
 0x2d7   :  { %999 = vrot.lane.b32.xlu0 %v12771_v16, %s12696_s2 }
 0x2da   :  { %1303 = vrot.lane.b32.xlu1 %v12791_v19, %s12696_s2 }
 0x2db   :  { %1227 = vrot.lane.b32.xlu0 %v12785_v17, %s12696_s2  ;;  %v837_v25 = vpop.xlane.xlu0 %836 }
 0x2dc   :  { %v859_v26 = vsub.f32 %v300_v44, %v837_v25 }
 0x2de   :  { %v867_v27 = vmul.f32 1.442695, %v859_v26 }
 0x2df   :  { %v840_v23 = vpop.xlane.xlu1 %839 }
 0x2e0   :  { %v860_v24 = vsub.f32 %v376_v49, %v840_v23 }
 0x2e2   :  { %v869_v15 = vmul.f32 1.442695, %v860_v24 }
 0x2e4   :  { %12398 = vpow2.f32 %v869_v15 }
 0x2e5   :  { %12400 = vpow2.f32 %v867_v27 }
 0x2ee   :  { %v12905_v18 = vpop.eup %12398 }
 0x2ef   :  { %v886_v20 = vsel %vm228_vm2, %v12905_v18, 0.0  ;;  %v12909_v16 = vpop.eup %12400 }
 0x2f0   :  { %v883_v19 = vsel %vm228_vm2, %v12909_v16, 0.0 }
 0x2fa   :  { %887 = vadd.xlane.f32.xlu0 %v886_v20 }
 0x2fe   :  { %884 = vadd.xlane.f32.xlu1 %v883_v19 }
 0x342   :  { %v843_v17 = vpop.xlane.xlu0 %842 }
 0x343   :  { %v861_v28 = vsub.f32 %v452_v53, %v843_v17 }
 0x345   :  { %v871_v29 = vmul.f32 1.442695, %v861_v28 }
 0x346   :  { %v849_v30 = vpop.xlane.xlu1 %848  ;;  %v846_v31 = vpop.xlane.xlu0 %845 }
 0x347   :  { %12402 = vpow2.f32 %v871_v29  ;;  %v863_v32 = vsub.f32 %v604_v59, %v849_v30  ;;  %v862_v34 = vsub.f32 %v528_v58, %v846_v31 }
 0x349   :  { %v875_v37 = vmul.f32 1.442695, %v863_v32  ;;  %v873_v38 = vmul.f32 1.442695, %v862_v34 }
 0x34a   :  { %v855_v40 = vpop.xlane.xlu1 %854  ;;  %v852_v42 = vpop.xlane.xlu0 %851 }
 0x34b   :  { %12404 = vpow2.f32 %v875_v37  ;;  %v865_v43 = vsub.f32 %v756_v3, %v855_v40  ;;  %v864_v44 = vsub.f32 %v680_v2, %v852_v42 }
 0x34c   :  { %12406 = vpow2.f32 %v873_v38 }
 0x34d   :  { %v879_v45 = vmul.f32 1.442695, %v865_v43  ;;  %v877_v47 = vmul.f32 1.442695, %v864_v44  ;;  %v1563_v43 = vld [vmem:[#allocation2 + $0x38] sm:$0xff]  ;;  %v1564_v44 = vld [vmem:[#allocation2 + $0x40] sm:$0xff] }
 0x34e   :  { %v924_v48 = vpop.permute.xlu1 %923  ;;  %v858_v49 = vpop.xlane.xlu0 %857 }
 0x34f   :  { %12408 = vpow2.f32 %v879_v45  ;;  %v866_v50 = vsub.f32 %v832_v11, %v858_v49  ;;  %11455 = vmatpush3.msra.mxu0 %v924_v48  ;;  %v12176_v45 = vpack.c.bf16 %v1564_v44, %v1563_v43  ;;  %v1566_v48 = vld [vmem:[#allocation2 + $0x50] sm:$0xff]  ;;  %v1790_v43 = vld [vmem:[#allocation2 + $0x98] sm:$0xff] }
 0x350   :  { %12410 = vpow2.f32 %v877_v47  ;;  %11464 = vmatprep.subr.mxu0 %v12689_v13  ;;  %v1565_v47 = vld [vmem:[#allocation2 + $0x48] sm:$0xff] }
 0x351   :  { %v12403_v51 = vpop.eup %12402  ;;  %v881_v52 = vmul.f32 1.442695, %v866_v50  ;;  %v12180_v49 = vpack.c.bf16 %v1566_v48, %v1565_v47  ;;  %v1792_v48 = vld [vmem:[#allocation2 + $0xa8] sm:$0xff] }
 0x352   :  { %v1000_v53 = vpop.permute.xlu0 %999  ;;  %v889_v54 = vsel %vm228_vm2, %v12403_v51, 0.0  ;;  %v1076_v1 = vpop.permute.xlu1 %1075 }
 0x353   :  { %12412 = vpow2.f32 %v881_v52  ;;  %890 = vadd.xlane.f32.xlu1 %v889_v54  ;;  %11460 = vmatpush3.msra.mxu1 %v1000_v53 }
 0x354   :  { %11469 = vmatprep.subr.mxu1 %v12689_v13 }
 0x355   :  { %v12405_v55 = vpop.eup %12404 }
 0x356   :  { %v12407_v56 = vpop.eup %12406  ;;  %v895_v57 = vsel %vm228_vm2, %v12405_v55, 0.0  ;;  %v1152_v2 = vpop.permute.xlu1 %1151 }
 0x357   :  { %896 = vadd.xlane.f32.xlu1 %v895_v57  ;;  %v892_v58 = vsel %vm228_vm2, %v12407_v56, 0.0  ;;  %v1228_v3 = vpop.permute.xlu0 %1227 }
 0x358   :  { %893 = vadd.xlane.f32.xlu0 %v892_v58 }
 0x359   :  { %v12409_v59 = vpop.eup %12408 }
 0x35a   :  { %v12918_v60 = vpop.eup %12410  ;;  %v901_v61 = vsel %vm228_vm2, %v12409_v59, 0.0  ;;  %v1304_v4 = vpop.permute.xlu1 %1303 }
 0x35b   :  { %902 = vadd.xlane.f32.xlu1 %v901_v61  ;;  %v898_v62 = vsel %vm228_vm2, %v12918_v60, 0.0 }
 0x35c   :  { %899 = vadd.xlane.f32.xlu0 %v898_v62 }
 0x35d   :  { %v12923_v63 = vpop.eup %12412 }
 0x35e   :  { %v904_v0 = vsel %vm228_vm2, %v12923_v63, 0.0 }
 0x360   :  { %905 = vadd.xlane.f32.xlu0 %v904_v0 }
 0x36c   :  { %1455 = vrot.lane.b32.xlu1 %v12805_v22, %s12696_s2 }
 0x376   :  { %1379 = vrot.lane.b32.xlu0 %v12799_v21, %s12696_s2 }
 0x387   :  { %v888_v5 = vpop.xlane.xlu0 %887 }
 0x388   :  { %12414 = vrcp.f32 %v888_v5 }
 0x38b   :  { %v885_v6 = vpop.xlane.xlu1 %884 }
 0x38c   :  { %12416 = vrcp.f32 %v885_v6 }
 0x392   :  { %v12415_v7 = vpop.eup %12414 }
 0x393   :  { %v916_v9 = vmul.f32 %v12415_v7, %v12905_v18 }
 0x395   :  { %11462 = vmatmul.mubr.msk.f32.vlgmr.msra.gmra.mrb[12].mxu1 %vm228_vm2, %v916_v9 }
 0x396   :  { %v12417_v11 = vpop.eup %12416  ;;  %11470 = vmatpush3.msra.mxu1 %v1152_v2  ;;  %11471 = vmatprep.mubr.msk.f32.mxu1 %vm12692_vm1, %v12689_v13 }
 0x397   :  { %v915_v21 = vmul.f32 %v12417_v11, %v12909_v16  ;;  %11479 = vmatprep.subr.mxu1 %v12689_v13 }
 0x399   :  { %11457 = vmatmul.mubr.msk.f32.vlgmr.msra.gmra.mrb[6].mxu0 %vm228_vm2, %v915_v21  ;;  %v10847_v21 = vld [vmem:[#allocation2 + $0x58] ss:$0 sm:$0xff] }
 0x39a   :  { %11465 = vmatpush3.msra.mxu0 %v1076_v1  ;;  %11466 = vmatprep.mubr.msk.f32.mxu0 %vm12692_vm1, %v12689_v13 }
 0x39b   :  { %11474 = vmatprep.subr.mxu0 %v12689_v13 }
 0x3e0   :  { %v891_v22 = vpop.xlane.xlu1 %890 }
 0x3e1   :  { %12418 = vrcp.f32 %v891_v22 }
 0x3e4   :  { %v897_v12 = vpop.xlane.xlu1 %896 }
 0x3e5   :  { %12420 = vrcp.f32 %v897_v12  ;;  %v894_v14 = vpop.xlane.xlu0 %893 }
 0x3e6   :  { %12422 = vrcp.f32 %v894_v14 }
 0x3e8   :  { %v903_v23 = vpop.xlane.xlu1 %902 }
 0x3e9   :  { %12424 = vrcp.f32 %v903_v23  ;;  %v900_v24 = vpop.xlane.xlu0 %899 }
 0x3ea   :  { %12426 = vrcp.f32 %v900_v24 }
 0x3eb   :  { %v12419_v25 = vpop.eup %12418 }
 0x3ec   :  { %v917_v26 = vmul.f32 %v12419_v25, %v12403_v51  ;;  %v1456_v31 = vpop.permute.xlu1 %1455 }
 0x3ed   :  { %v906_v15 = vpop.xlane.xlu0 %905 }
 0x3ee   :  { %12428 = vrcp.f32 %v906_v15  ;;  %11467 = vmatmul.mubr.msk.f32.vlgmr.msra.gmra.mrb[8].mxu0 %vm228_vm2, %v917_v26 }
 0x3ef   :  { %v12421_v27 = vpop.eup %12420  ;;  %11475 = vmatpush3.msra.mxu0 %v1228_v3  ;;  %11476 = vmatprep.mubr.msk.f32.mxu0 %vm12692_vm1, %v12689_v13 }
 0x3f0   :  { %v12423_v18 = vpop.eup %12422  ;;  %11484 = vmatprep.subr.mxu0 %v12689_v13  ;;  %v919_v20 = vmul.f32 %v12421_v27, %v12405_v55 }
 0x3f1   :  { %v1380_v16 = vpop.permute.xlu0 %1379  ;;  %v918_v19 = vmul.f32 %v12423_v18, %v12407_v56 }
 0x3f2   :  { %11477 = vmatmul.mubr.msk.f32.vlgmr.msra.gmra.mrb[10].mxu0 %vm228_vm2, %v919_v20 }
 0x3f3   :  { %v12425_v17 = vpop.eup %12424  ;;  %11472 = vmatmul.mubr.msk.f32.vlgmr.msra.gmra.mrb[14].mxu1 %vm228_vm2, %v918_v19  ;;  %11485 = vmatpush3.msra.mxu0 %v1380_v16 }
 0x3f4   :  { %v12427_v28 = vpop.eup %12426  ;;  %11480 = vmatpush3.msra.mxu1 %v1304_v4  ;;  %11481 = vmatprep.mubr.msk.f32.mxu1 %vm12692_vm1, %v12689_v13  ;;  %v921_v29 = vmul.f32 %v12425_v17, %v12409_v59 }
 0x3f5   :  { %11486 = vmatprep.mubr.msk.f32.mxu0 %vm12692_vm1, %v12689_v13  ;;  %11489 = vmatprep.subr.mxu1 %v12689_v13  ;;  %v920_v30 = vmul.f32 %v12427_v28, %v12918_v60 }
 0x3f6   :  { %11487 = vmatmul.mubr.msk.f32.vlgmr.msra.gmra.mrb[12].mxu0 %vm228_vm2, %v921_v29  ;;  %12177 = vmatprep.subr.bf16.mxu0 %v12176_v45 }
 0x3f7   :  { %11482 = vmatmul.mubr.msk.f32.vlgmr.msra.gmra.mrb[16].mxu1 %vm228_vm2, %v920_v30  ;;  %12179 = vmatpush3.bf16.msra.mxu0 %v12176_v45  ;;  %v1791_v45 = vld [vmem:[#allocation2 + $0xa0] sm:$0xff] }
 0x3f8   :  { %v12429_v32 = vpop.eup %12428  ;;  %11490 = vmatpush3.msra.mxu1 %v1456_v31  ;;  %11491 = vmatprep.mubr.msk.f32.mxu1 %vm12692_vm1, %v12689_v13  ;;  %v1697_v31 = vld [vmem:[#allocation2 + $0x68] sm:$0xff]  ;;  %v12196_v47 = vpack.c.bf16 %v1791_v45, %v1790_v43 }
 0x3f9   :  { %v922_v34 = vmul.f32 %v12429_v32, %v12923_v63  ;;  %12181 = vmatprep.subr.bf16.mxu0 %v12180_v49  ;;  %v1698_v32 = vld [vmem:[#allocation2 + $0x70] sm:$0xff] }
 0x3fb   :  { %11492 = vmatmul.mubr.msk.f32.vlgmr.msra.gmra.mrb[18].mxu1 %vm228_vm2, %v922_v34  ;;  %12183 = vmatpush3.bf16.msra.mxu0 %v12180_v49  ;;  %v1793_v49 = vld [vmem:[#allocation2 + $0xb0] sm:$0xff] }
 0x468   :  { %v1071_v37 = vpop.f32.mrb[12].mxu1 }
 0x469   :  { %v11463_v38 = vpop.f32.mrb[13].mxu1 }
 0x46c   :  { %v995_v40 = vpop.f32.mrb[6].mxu0 }
 0x46d   :  { %v11458_v42 = vpop.f32.mrb[7].mxu0 }
 0x46e   :  { %v1789_v42 = vld [vmem:[#allocation2 + $0x90] sm:$0xff] }
 0x4c1   :  { %v1147_v50 = vpop.f32.mrb[8].mxu0 }
 0x4c2   :  { %v11468_v51 = vpop.f32.mrb[9].mxu0  ;;  %1533 = vrot.lane.b32.xlu0 %v1147_v50, %s12688_s29  ;;  %v12200_v50 = vpack.c.bf16 %v1793_v49, %v1792_v48 }
 0x4c5   :  { %v1299_v52 = vpop.f32.mrb[10].mxu0 }
 0x4c6   :  { %v1223_v53 = vpop.f32.mrb[14].mxu1  ;;  %1541 = vrot.lane.b32.xlu0 %v1299_v52, %s12697_s15  ;;  %v11478_v54 = vpop.f32.mrb[11].mxu0 }
 0x4c7   :  { %1535 = vrot.lane.b32.xlu1 %v1223_v53, %s12688_s29  ;;  %v11473_v55 = vpop.f32.mrb[15].mxu1 }
 0x4c9   :  { %v1451_v56 = vpop.f32.mrb[12].mxu0 }
 0x4ca   :  { %v1375_v57 = vpop.f32.mrb[16].mxu1  ;;  %1549 = vrot.lane.b32.xlu0 %v1451_v56, %s12698_s16  ;;  %v11488_v58 = vpop.f32.mrb[13].mxu0 }
 0x4cb   :  { %1543 = vrot.lane.b32.xlu1 %v1375_v57, %s12697_s15  ;;  %v11483_v59 = vpop.f32.mrb[17].mxu1  ;;  %v10850_v58 = vld [vmem:[#allocation2 + $0xd0] ss:$0 sm:$0xff] }
 0x4ce   :  { %v1527_v60 = vpop.f32.mrb[18].mxu1 }
 0x4cf   :  { %1551 = vrot.lane.b32.xlu1 %v1527_v60, %s12698_s16  ;;  %v11493_v61 = vpop.f32.mrb[19].mxu1  ;;  %v10851_v60 = vld [vmem:[#allocation2 + $0xd8] ss:$0 sm:$0xff] }
 0x534   :  { %v1534_v62 = vpop.permute.xlu0 %1533 }
 0x535   :  { %v1555_v1 = vsel %vm228_vm2, %v995_v40, %v1534_v62  ;;  %v1788_v40 = vld [vmem:[#allocation2 + $0x88] sm:$0xff] }
 0x536   :  { %v12192_v44 = vpack.c.bf16 %v1789_v42, %v1788_v40  ;;  %v1928_v42 = vld [vmem:[#allocation2 + $0x108] sm:$0xff] }
 0x538   :  { %v1542_v63 = vpop.permute.xlu0 %1541  ;;  %12193 = vmatprep.subr.bf16.mxu0 %v12192_v44 }
 0x539   :  { %v1536_v0 = vpop.permute.xlu1 %1535  ;;  %v1558_v2 = vsel %vm1557_vm3, %v1555_v1, %v1542_v63 }
 0x53a   :  { %v1556_v6 = vsel %vm228_vm2, %v1071_v37, %v1536_v0  ;;  %v1699_v37 = vld [vmem:[#allocation2 + $0x78] sm:$0xff] }
 0x53b   :  { %v12188_v38 = vpack.c.bf16 %v1699_v37, %v1698_v32  ;;  %v1926_v37 = vld [vmem:[#allocation2 + $0xf8] sm:$0xff] }
 0x53c   :  { %v1550_v3 = vpop.permute.xlu0 %1549 }
 0x53d   :  { %v1544_v4 = vpop.permute.xlu1 %1543  ;;  %v1561_v5 = vsel %vm1560_vm4, %v1558_v2, %v1550_v3  ;;  %v1794_v3 = vld [vmem:[#allocation2 + $0xb8] sm:$0xff] }
 0x53e   :  { %11502 = vmatprep.mubr.msk.f32.mxu0 %vm120_vm0, %v1561_v5  ;;  %v1559_v7 = vsel %vm1557_vm3, %v1556_v6, %v1544_v4  ;;  %v1795_v4 = vld [vmem:[#allocation2 + $0xc0] sm:$0xff] }
 0x53f   :  { %v12204_v5 = vpack.c.bf16 %v1795_v4, %v1794_v3  ;;  %v10852_v6 = vld [vmem:[#allocation2 + $0x80] ss:$0 sm:$0xff] }
 0x541   :  { %v1552_v9 = vpop.permute.xlu1 %1551 }
 0x542   :  { %v1562_v11 = vsel %vm1560_vm4, %v1559_v7, %v1552_v9 }
 0x543   :  { %11503 = vmatmul.mubr.msk.f32.vlgmr.msra.gmra.mrb[14].mxu0 %vm120_vm0, %v1562_v11 }
 0x544   :  { %12195 = vmatpush3.bf16.msra.mxu0 %v12192_v44 }
 0x545   :  { %12197 = vmatprep.subr.bf16.mxu0 %v12196_v47 }
 0x548   :  { %12199 = vmatpush3.bf16.msra.mxu0 %v12196_v47 }
 0x549   :  { %12201 = vmatprep.subr.bf16.mxu0 %v12200_v50 }
 0x54c   :  { %12203 = vmatpush3.bf16.msra.mxu0 %v12200_v50 }
 0x54d   :  { %12205 = vmatprep.subr.bf16.mxu0 %v12204_v5 }
 0x550   :  { %12207 = vmatpush3.bf16.msra.mxu0 %v12204_v5 }
 0x551   :  { %11556 = vmatprep.subr.mxu0 %v12689_v13 }
 0x616   :  { %v11504_v22 = vpop.f32.mrb[14].mxu0 }
 0x617   :  { %v1650_v12 = vadd.f32 %v11504_v22, %v10847_v21  ;;  %v1644_v14 = vpop.f32.mrb[15].mxu0 }
 0x618   :  { %v1645_v23 = vadd.f32 %v10847_v21, %v1644_v14  ;;  %v10855_v14 = vld [vmem:[#allocation2 + $0xc8] ss:$0 sm:$0xff] }
 0x619   :  { %v1654_v24 = vadd.f32 %v1650_v12, %v12755_v10 }
 0x61a   :  { %v1653_v25 = vadd.f32 %v1645_v23, %v12748_v8  ;;  %v1696_v8 = vld [vmem:[#allocation2 + $0x60] sm:$0xff] }
 0x61b   :  { %v1658_v26 = vsel %vm120_vm0, %v1654_v24, 0.0  ;;  %v12184_v34 = vpack.c.bf16 %v1697_v31, %v1696_v8 }
 0x61c   :  { %1659 = vadd.xlane.f32.xlu1 %v1658_v26  ;;  %v1655_v15 = vsel %vm120_vm0, %v1653_v25, 0.0 }
 0x61d   :  { %1656 = vadd.xlane.f32.xlu0 %v1655_v15  ;;  %12185 = vmatprep.subr.bf16.mxu1 %v12184_v34 }
 0x61e   :  { %12187 = vmatpush3.bf16.msra.mxu1 %v12184_v34  ;;  %v1925_v34 = vld [vmem:[#allocation2 + $0xf0] sm:$0xff] }
 0x61f   :  { %12189 = vmatprep.subr.bf16.mxu1 %v12188_v38  ;;  %v12208_v40 = vpack.c.bf16 %v1926_v37, %v1925_v34 }
 0x622   :  { %12191 = vmatpush3.bf16.msra.mxu1 %v12188_v38  ;;  %v1927_v38 = vld [vmem:[#allocation2 + $0x100] sm:$0xff] }
 0x623   :  { %v12212_v43 = vpack.c.bf16 %v1928_v42, %v1927_v38  ;;  %12209 = vmatprep.subr.bf16.mxu1 %v12208_v40 }
 0x6a9   :  { %v1660_v27 = vpop.xlane.xlu1 %1659 }
 0x6aa   :  { %v1663_v18 = vmul.f32 0.03125, %v1660_v27  ;;  %v1657_v20 = vpop.xlane.xlu0 %1656 }
 0x6ab   :  { %v1662_v16 = vmul.f32 0.03125, %v1657_v20 }
 0x6ac   :  { %v1665_v19 = vsub.f32 %v1654_v24, %v1663_v18 }
 0x6ad   :  { %v1664_v17 = vsub.f32 %v1653_v25, %v1662_v16 }
 0x6ae   :  { %v1667_v30 = vmul.f32 %v1665_v19, %v1665_v19 }
 0x6af   :  { %v1666_v28 = vmul.f32 %v1664_v17, %v1664_v17 }
 0x6b0   :  { %v1671_v10 = vsel %vm120_vm0, %v1667_v30, 0.0 }
 0x6b1   :  { %v1668_v29 = vsel %vm120_vm0, %v1666_v28, 0.0 }
 0x6b2   :  { %1669 = vadd.xlane.f32.xlu0 %v1668_v29 }
 0x6b6   :  { %1672 = vadd.xlane.f32.xlu0 %v1671_v10 }
 0x73f   :  { %v1670_v51 = vpop.xlane.xlu0 %1669 }
 0x740   :  { %v1674_v52 = vmul.f32 0.03125, %v1670_v51 }
 0x742   :  { %v1676_v53 = vadd.f32 1e-05, %v1674_v52  ;;  %v10858_v52 = vld [vmem:[#allocation2 + $0xe0] ss:$0 sm:$0xff] }
 0x743   :  { %v1673_v54 = vpop.xlane.xlu0 %1672 }
 0x744   :  { %12430 = vrsqrt.f32 %v1676_v53  ;;  %v1675_v55 = vmul.f32 0.03125, %v1673_v54 }
 0x746   :  { %v1677_v56 = vadd.f32 1e-05, %v1675_v55 }
 0x748   :  { %12432 = vrsqrt.f32 %v1677_v56 }
 0x74e   :  { %v12431_v57 = vpop.eup %12430 }
 0x74f   :  { %v1680_v59 = vmul.f32 %v12431_v57, %v1664_v17  ;;  %v10859_v57 = vld [vmem:[#allocation2 + $0xe8] ss:$0 sm:$0xff] }
 0x751   :  { %v1687_v61 = vmul.f32 %v10850_v58, %v1680_v59 }
 0x752   :  { %v12433_v62 = vpop.eup %12432 }
 0x753   :  { %v1681_v63 = vmul.f32 %v12433_v62, %v1665_v19  ;;  %v1694_v0 = vadd.f32 %v10851_v60, %v1687_v61  ;;  %v10860_v61 = vld [vmem:[#allocation2 + $0x110] ss:$0 sm:$0xff] }
 0x755   :  { %v1688_v1 = vmul.f32 %v10850_v58, %v1681_v63  ;;  %11513 = vmatprep.mubr.msk.f32.mxu1 %vm120_vm0, %v1694_v0 }
 0x757   :  { %v1695_v2 = vadd.f32 %v10851_v60, %v1688_v1 }
 0x759   :  { %11514 = vmatmul.mubr.msk.f32.vlgmr.msra.gmra.mrb[20].mxu1 %vm120_vm0, %v1695_v2 }
 0x75a   :  { %12211 = vmatpush3.bf16.msra.mxu1 %v12208_v40 }
 0x75b   :  { %12213 = vmatprep.subr.bf16.mxu1 %v12212_v43 }
 0x75e   :  { %12215 = vmatpush3.bf16.msra.mxu1 %v12212_v43 }
 0x75f   :  { %11546 = vmatprep.subr.mxu1 %v12689_v13 }
 0x82c   :  { %v11515_v7 = vpop.f32.mrb[20].mxu1 }
 0x82d   :  { %v1783_v9 = vadd.f32 %v11515_v7, %v10852_v6  ;;  %v1777_v11 = vpop.f32.mrb[21].mxu1 }
 0x82e   :  { %v1778_v21 = vadd.f32 %v10852_v6, %v1777_v11 }
 0x82f   :  { %v1787_v12 = vmax.f32 %v1783_v9, 0.0 }
 0x830   :  { %v1786_v22 = vmax.f32 %v1778_v21, 0.0 }
 0x832   :  { %11532 = vmatprep.mubr.msk.f32.mxu0 %vm1801_vm5, %v1786_v22 }
 0x833   :  { %11533 = vmatmul.mubr.msk.f32.vlgmr.msra.gmra.mrb[16].mxu0 %vm1801_vm5, %v1787_v12 }
 0x834   :  { %11558 = vmatprep.mubr.msk.f32.mxu0 %vm12692_vm1, %v12689_v13 }
 0x906   :  { %v11534_v23 = vpop.f32.mrb[16].mxu0 }
 0x907   :  { %v1880_v24 = vadd.f32 %v11534_v23, %v10855_v14  ;;  %v1874_v25 = vpop.f32.mrb[17].mxu0 }
 0x908   :  { %v1875_v26 = vadd.f32 %v10855_v14, %v1874_v25 }
 0x909   :  { %v1884_v15 = vadd.f32 %v1880_v24, %v1695_v2 }
 0x90a   :  { %v1883_v27 = vadd.f32 %v1875_v26, %v1694_v0 }
 0x90b   :  { %v1888_v18 = vsel %vm120_vm0, %v1884_v15, 0.0 }
 0x90c   :  { %1889 = vadd.xlane.f32.xlu0 %v1888_v18  ;;  %v1885_v20 = vsel %vm120_vm0, %v1883_v27, 0.0 }
 0x90d   :  { %1886 = vadd.xlane.f32.xlu1 %v1885_v20 }
 0x999   :  { %v1890_v16 = vpop.xlane.xlu0 %1889 }
 0x99a   :  { %v1892_v19 = vmul.f32 0.03125, %v1890_v16  ;;  %v1887_v17 = vpop.xlane.xlu1 %1886 }
 0x99b   :  { %v1891_v28 = vmul.f32 0.03125, %v1887_v17 }
 0x99c   :  { %v1894_v29 = vsub.f32 %v1884_v15, %v1892_v19 }
 0x99d   :  { %v1893_v30 = vsub.f32 %v1883_v27, %v1891_v28 }
 0x99e   :  { %v1896_v10 = vmul.f32 %v1894_v29, %v1894_v29 }
 0x99f   :  { %v1895_v8 = vmul.f32 %v1893_v30, %v1893_v30 }
 0x9a0   :  { %v1900_v31 = vsel %vm120_vm0, %v1896_v10, 0.0 }
 0x9a1   :  { %1901 = vadd.xlane.f32.xlu0 %v1900_v31  ;;  %v1897_v32 = vsel %vm120_vm0, %v1895_v8, 0.0 }
 0x9a2   :  { %1898 = vadd.xlane.f32.xlu1 %v1897_v32 }
 0xa2e   :  { %v1902_v44 = vpop.xlane.xlu0 %1901 }
 0xa2f   :  { %v1904_v45 = vmul.f32 0.03125, %v1902_v44  ;;  %v1899_v47 = vpop.xlane.xlu1 %1898 }
 0xa30   :  { %v1903_v48 = vmul.f32 0.03125, %v1899_v47 }
 0xa31   :  { %v1906_v49 = vadd.f32 1e-05, %v1904_v45 }
 0xa32   :  { %v1905_v50 = vadd.f32 1e-05, %v1903_v48 }
 0xa33   :  { %12434 = vrsqrt.f32 %v1906_v49 }
 0xa34   :  { %12436 = vrsqrt.f32 %v1905_v50 }
 0xa3d   :  { %v12435_v51 = vpop.eup %12434 }
 0xa3e   :  { %v12437_v53 = vpop.eup %12436  ;;  %v1910_v54 = vmul.f32 %v12435_v51, %v1894_v29 }
 0xa3f   :  { %v1909_v55 = vmul.f32 %v12437_v53, %v1893_v30 }
 0xa40   :  { %v1917_v56 = vmul.f32 %v10858_v52, %v1910_v54 }
 0xa41   :  { %v1916_v58 = vmul.f32 %v10858_v52, %v1909_v55 }
 0xa42   :  { %v12993_v60 = vadd.f32 %v10859_v57, %v1917_v56 }
 0xa43   :  { %v12991_v59 = vadd.f32 %v10859_v57, %v1916_v58 }
 0xa45   :  { %11543 = vmatprep.mubr.msk.f32.mxu1 %vm120_vm0, %v12991_v59 }
 0xa46   :  { %11544 = vmatmul.mubr.msk.f32.vlgmr.msra.gmra.mrb[22].mxu1 %vm120_vm0, %v12993_v60 }
 0xa47   :  { %11548 = vmatprep.mubr.msk.f32.mxu1 %vm12692_vm1, %v12689_v13 }
 0xb19   :  { %v11545_v62 = vpop.f32.mrb[22].mxu1 }
 0xb1a   :  { %v13001_v63 = vadd.f32 %v11545_v62, %v10860_v61  ;;  %v2006_v0 = vpop.f32.mrb[23].mxu1 }
 0xb1b   :  { %v13003_v1 = vadd.f32 %v10860_v61, %v2006_v0 }
 0xb1c   :  { %2019 = vrot.lane.b32.xlu0 %v13001_v63, %s12691_s10 }
 0xb1d   :  { %2017 = vrot.lane.b32.xlu1 %v13003_v1, %s12691_s10 }
 0xb20   :  { %2025 = vrot.lane.b32.xlu0 %v13003_v1, %s12693_s11 }
 0xb21   :  { %2021 = vrot.lane.b32.xlu1 %v13003_v1, %s12690_s0 }
 0xb24   :  { %2029 = vrot.lane.b32.xlu0 %v13003_v1, %s12694_s12 }
 0xb25   :  { %2023 = vrot.lane.b32.xlu1 %v13001_v63, %s12690_s0 }
 0xb29   :  { %2027 = vrot.lane.b32.xlu1 %v13001_v63, %s12693_s11 }
 0xb2d   :  { %2105 = vrot.lane.b32.xlu1 %v13001_v63, %s12694_s12 }
 0xb8e   :  { %v13021_v2 = vpop.permute.xlu0 %2019 }
 0xb8f   :  { %2257 = vrot.lane.b32.xlu1 %v13021_v2, %s12694_s12  ;;  %v13025_v3 = vpop.permute.xlu1 %2017 }
 0xb90   :  { %2181 = vrot.lane.b32.xlu0 %v13025_v3, %s12694_s12 }
 0xb92   :  { %v13029_v4 = vpop.permute.xlu0 %2025 }
 0xb93   :  { %v13031_v5 = vpop.permute.xlu1 %2021 }
 0xb94   :  { %2333 = vrot.lane.b32.xlu0 %v13031_v5, %s12694_s12 }
 0xb96   :  { %v2030_v6 = vpop.permute.xlu0 %2029 }
 0xb97   :  { %11547 = vmatpush3.xpose.msk.msra.mxu1 %vm228_vm2, %v2030_v6  ;;  %v13036_v7 = vpop.permute.xlu1 %2023 }
 0xb98   :  { %2485 = vrot.lane.b32.xlu0 %v13029_v4, %s12694_s12  ;;  %2409 = vrot.lane.b32.xlu1 %v13036_v7, %s12694_s12 }
 0xb99   :  { %11551 = vmatprep.subr.mxu1 %v12689_v13 }
 0xb9a   :  { %11549 = vmatmul.mubr.msk.f32.vlgmr.msra.gmra.mrb[24].mxu1 %vm228_vm2, %v13003_v1 }
 0xb9b   :  { %v13045_v9 = vpop.permute.xlu1 %2027  ;;  %11553 = vmatprep.mubr.msk.f32.mxu1 %vm12692_vm1, %v12689_v13 }
 0xb9c   :  { %2561 = vrot.lane.b32.xlu1 %v13045_v9, %s12694_s12 }
 0xb9f   :  { %v2106_v11 = vpop.permute.xlu1 %2105 }
 0xba0   :  { %11552 = vmatpush3.xpose.msk.msra.mxu1 %vm228_vm2, %v2106_v11 }
 0xba1   :  { %11561 = vmatprep.subr.mxu1 %v12689_v13 }
 0xba3   :  { %11554 = vmatmul.mubr.msk.f32.vlgmr.msra.gmra.mrb[26].mxu1 %vm228_vm2, %v13001_v63 }
 0xba4   :  { %11563 = vmatprep.mubr.msk.f32.mxu1 %vm12692_vm1, %v12689_v13 }
 0xc01   :  { %v2258_v21 = vpop.permute.xlu1 %2257 }
 0xc02   :  { %v2182_v22 = vpop.permute.xlu0 %2181  ;;  %11562 = vmatpush3.xpose.msk.msra.mxu1 %vm228_vm2, %v2258_v21 }
 0xc03   :  { %11557 = vmatpush3.xpose.msk.msra.mxu0 %vm228_vm2, %v2182_v22  ;;  %11571 = vmatprep.subr.mxu1 %v12689_v13 }
 0xc04   :  { %11566 = vmatprep.subr.mxu0 %v12689_v13 }
 0xc05   :  { %11564 = vmatmul.mubr.msk.f32.vlgmr.msra.gmra.mrb[28].mxu1 %vm228_vm2, %v13021_v2 }
 0xc06   :  { %11559 = vmatmul.mubr.msk.f32.vlgmr.msra.gmra.mrb[18].mxu0 %vm228_vm2, %v13025_v3  ;;  %v2334_v12 = vpop.permute.xlu0 %2333  ;;  %11573 = vmatprep.mubr.msk.f32.mxu1 %vm12692_vm1, %v12689_v13 }
 0xc07   :  { %11567 = vmatpush3.xpose.msk.msra.mxu0 %vm228_vm2, %v2334_v12  ;;  %11568 = vmatprep.mubr.msk.f32.mxu0 %vm12692_vm1, %v12689_v13 }
 0xc08   :  { %11576 = vmatprep.subr.mxu0 %v12689_v13 }
 0xc0a   :  { %11569 = vmatmul.mubr.msk.f32.vlgmr.msra.gmra.mrb[20].mxu0 %vm228_vm2, %v13031_v5  ;;  %v2486_v14 = vpop.permute.xlu0 %2485  ;;  %v2410_v23 = vpop.permute.xlu1 %2409 }
 0xc0b   :  { %11572 = vmatpush3.xpose.msk.msra.mxu1 %vm228_vm2, %v2410_v23  ;;  %11577 = vmatpush3.xpose.msk.msra.mxu0 %vm228_vm2, %v2486_v14 }
 0xc0c   :  { %11578 = vmatprep.mubr.msk.f32.mxu0 %vm12692_vm1, %v12689_v13  ;;  %11581 = vmatprep.subr.mxu1 %v12689_v13 }
 0xc0d   :  { %11586 = vmatprep.subr.mxu0 %v12689_v13 }
 0xc0e   :  { %11574 = vmatmul.mubr.msk.f32.vlgmr.msra.gmra.mrb[30].mxu1 %vm228_vm2, %v13036_v7  ;;  %11579 = vmatmul.mubr.msk.f32.vlgmr.msra.gmra.mrb[22].mxu0 %vm228_vm2, %v13029_v4  ;;  %v2562_v24 = vpop.permute.xlu1 %2561 }
 0xc0f   :  { %11582 = vmatpush3.xpose.msk.msra.mxu1 %vm228_vm2, %v2562_v24  ;;  %11583 = vmatprep.mubr.msk.f32.mxu1 %vm12692_vm1, %v12689_v13 }
 0xc10   :  { %11591 = vmatprep.subr.mxu1 %v12689_v13  ;;  %11588 = vmatprep.mubr.msk.f32.mxu0 %vm12692_vm1, %v12689_v13 }
 0xc12   :  { %11584 = vmatmul.mubr.msk.f32.vlgmr.msra.gmra.mrb[32].mxu1 %vm228_vm2, %v13045_v9 }
 0xc13   :  { %11593 = vmatprep.mubr.msk.f32.mxu1 %vm12692_vm1, %v12689_v13 }
 0xc6d   :  { %v2101_v25 = vpop.f32.mrb[24].mxu1 }
 0xc6e   :  { %v2102_v26 = vadd.f32 %v2101_v25, %v12871_v41  ;;  %v11550_v15 = vpop.f32.mrb[25].mxu1 }
 0xc70   :  { %v2637_v27 = vsel %vm228_vm2, %v2102_v26, -inf }
 0xc71   :  { %2638 = vmax.xlane.f32.xlu0 %v2637_v27 }
 0xc76   :  { %v2177_v18 = vpop.f32.mrb[26].mxu1 }
 0xc77   :  { %v2178_v20 = vadd.f32 %v2177_v18, %v12876_v46  ;;  %v11555_v16 = vpop.f32.mrb[27].mxu1 }
 0xc79   :  { %v2640_v19 = vsel %vm228_vm2, %v2178_v20, -inf }
 0xc7a   :  { %2641 = vmax.xlane.f32.xlu1 %v2640_v19 }
 0xcd8   :  { %v2329_v17 = vpop.f32.mrb[28].mxu1 }
 0xcd9   :  { %v2253_v28 = vpop.f32.mrb[18].mxu0  ;;  %v11565_v29 = vpop.f32.mrb[29].mxu1  ;;  %v2330_v8 = vadd.f32 %v2329_v17, %v12876_v46 }
 0xcda   :  { %v2254_v30 = vadd.f32 %v2253_v28, %v12871_v41  ;;  %v11560_v10 = vpop.f32.mrb[19].mxu0 }
 0xcdb   :  { %v2646_v40 = vsel %vm228_vm2, %v2330_v8, -inf }
 0xcdc   :  { %v2643_v31 = vsel %vm228_vm2, %v2254_v30, -inf }
 0xcdd   :  { %2644 = vmax.xlane.f32.xlu0 %v2643_v31  ;;  %v2405_v32 = vpop.f32.mrb[20].mxu0 }
 0xcde   :  { %v2406_v34 = vadd.f32 %v2405_v32, %v12871_v41  ;;  %v11570_v37 = vpop.f32.mrb[21].mxu0 }
 0xce0   :  { %v2649_v38 = vsel %vm228_vm2, %v2406_v34, -inf }
 0xce1   :  { %v2557_v42 = vpop.f32.mrb[22].mxu0  ;;  %2650 = vmax.xlane.f32.xlu1 %v2649_v38  ;;  %2647 = vmax.xlane.f32.xlu0 %v2646_v40  ;;  %v2481_v43 = vpop.f32.mrb[30].mxu1 }
 0xce2   :  { %v2558_v44 = vadd.f32 %v2557_v42, %v12871_v41  ;;  %v2482_v45 = vadd.f32 %v2481_v43, %v12876_v46  ;;  %v11575_v47 = vpop.f32.mrb[31].mxu1  ;;  %v11580_v48 = vpop.f32.mrb[23].mxu0 }
 0xce4   :  { %v2655_v49 = vsel %vm228_vm2, %v2558_v44, -inf  ;;  %v2652_v50 = vsel %vm228_vm2, %v2482_v45, -inf }
 0xce5   :  { %2656 = vmax.xlane.f32.xlu1 %v2655_v49  ;;  %2653 = vmax.xlane.f32.xlu0 %v2652_v50  ;;  %v2633_v51 = vpop.f32.mrb[32].mxu1 }
 0xce6   :  { %v2634_v52 = vadd.f32 %v2633_v51, %v12876_v46  ;;  %v11585_v53 = vpop.f32.mrb[33].mxu1 }
 0xce8   :  { %v2658_v54 = vsel %vm228_vm2, %v2634_v52, -inf }
 0xce9   :  { %2659 = vmax.xlane.f32.xlu0 %v2658_v54 }
 0xcf6   :  { %2725 = vrot.lane.b32.xlu1 %v13003_v1, %s12696_s2 }
 0xcfa   :  { %2877 = vrot.lane.b32.xlu1 %v13025_v3, %s12696_s2 }
 0xcfe   :  { %2953 = vrot.lane.b32.xlu1 %v13021_v2, %s12696_s2  ;;  %v2639_v55 = vpop.xlane.xlu0 %2638 }
 0xcff   :  { %2801 = vrot.lane.b32.xlu0 %v13001_v63, %s12696_s2  ;;  %v2661_v56 = vsub.f32 %v2102_v26, %v2639_v55 }
 0xd01   :  { %v2669_v58 = vmul.f32 1.442695, %v2661_v56 }
 0xd02   :  { %3105 = vrot.lane.b32.xlu1 %v13036_v7, %s12696_s2 }
 0xd03   :  { %3029 = vrot.lane.b32.xlu0 %v13031_v5, %s12696_s2 }
 0xd07   :  { %v2642_v41 = vpop.xlane.xlu1 %2641 }
 0xd08   :  { %v2662_v46 = vsub.f32 %v2178_v20, %v2642_v41 }
 0xd0a   :  { %v2671_v57 = vmul.f32 1.442695, %v2662_v46 }
 0xd0c   :  { %12438 = vpow2.f32 %v2671_v57 }
 0xd0d   :  { %12440 = vpow2.f32 %v2669_v58 }
 0xd16   :  { %v13121_v61 = vpop.eup %12438 }
 0xd17   :  { %v2688_v62 = vsel %vm228_vm2, %v13121_v61, 0.0  ;;  %v13125_v63 = vpop.eup %12440 }
 0xd18   :  { %v2685_v0 = vsel %vm228_vm2, %v13125_v63, 0.0 }
 0xd22   :  { %2689 = vadd.xlane.f32.xlu0 %v2688_v62 }
 0xd26   :  { %2686 = vadd.xlane.f32.xlu1 %v2685_v0 }
 0xd6a   :  { %v2645_v1 = vpop.xlane.xlu0 %2644 }
 0xd6b   :  { %v2663_v2 = vsub.f32 %v2254_v30, %v2645_v1 }
 0xd6d   :  { %v2673_v3 = vmul.f32 1.442695, %v2663_v2 }
 0xd6e   :  { %v2648_v5 = vpop.xlane.xlu0 %2647  ;;  %v2651_v6 = vpop.xlane.xlu1 %2650 }
 0xd6f   :  { %12442 = vpow2.f32 %v2673_v3  ;;  %v2664_v7 = vsub.f32 %v2330_v8, %v2648_v5  ;;  %v2665_v11 = vsub.f32 %v2406_v34, %v2651_v6 }
 0xd71   :  { %v2675_v21 = vmul.f32 1.442695, %v2664_v7  ;;  %v2677_v22 = vmul.f32 1.442695, %v2665_v11 }
 0xd72   :  { %v2654_v12 = vpop.xlane.xlu0 %2653  ;;  %v2657_v14 = vpop.xlane.xlu1 %2656 }
 0xd73   :  { %12444 = vpow2.f32 %v2675_v21  ;;  %v2666_v23 = vsub.f32 %v2482_v45, %v2654_v12  ;;  %v2667_v24 = vsub.f32 %v2558_v44, %v2657_v14  ;;  %v3363_v12 = vld [vmem:[#allocation2 + $0x118] sm:$0xff]  ;;  %v3364_v14 = vld [vmem:[#allocation2 + $0x120] sm:$0xff] }
 0xd74   :  { %12446 = vpow2.f32 %v2677_v22 }
 0xd75   :  { %v2679_v25 = vmul.f32 1.442695, %v2666_v23  ;;  %v2681_v26 = vmul.f32 1.442695, %v2667_v24  ;;  %v12216_v23 = vpack.c.bf16 %v3364_v14, %v3363_v12  ;;  %v3365_v24 = vld [vmem:[#allocation2 + $0x128] sm:$0xff]  ;;  %v3588_v12 = vld [vmem:[#allocation2 + $0x170] sm:$0xff] }
 0xd76   :  { %v2660_v15 = vpop.xlane.xlu0 %2659  ;;  %v2726_v27 = vpop.permute.xlu1 %2725  ;;  %v3589_v14 = vld [vmem:[#allocation2 + $0x178] sm:$0xff] }
 0xd77   :  { %12448 = vpow2.f32 %v2679_v25  ;;  %v2668_v18 = vsub.f32 %v2634_v52, %v2660_v15  ;;  %11587 = vmatpush3.msra.mxu0 %v2726_v27  ;;  %v3366_v25 = vld [vmem:[#allocation2 + $0x130] sm:$0xff] }
 0xd78   :  { %12450 = vpow2.f32 %v2681_v26  ;;  %11596 = vmatprep.subr.mxu0 %v12689_v13  ;;  %v12220_v26 = vpack.c.bf16 %v3366_v25, %v3365_v24  ;;  %v3590_v24 = vld [vmem:[#allocation2 + $0x180] sm:$0xff] }
 0xd79   :  { %v12443_v20 = vpop.eup %12442  ;;  %v2683_v16 = vmul.f32 1.442695, %v2668_v18  ;;  %v12236_v25 = vpack.c.bf16 %v3590_v24, %v3589_v14 }
 0xd7a   :  { %v2802_v19 = vpop.permute.xlu0 %2801  ;;  %v2691_v17 = vsel %vm228_vm2, %v12443_v20, 0.0  ;;  %v2878_v40 = vpop.permute.xlu1 %2877 }
 0xd7b   :  { %12452 = vpow2.f32 %v2683_v16  ;;  %2692 = vadd.xlane.f32.xlu1 %v2691_v17  ;;  %11592 = vmatpush3.msra.mxu1 %v2802_v19 }
 0xd7c   :  { %11601 = vmatprep.subr.mxu1 %v12689_v13 }
 0xd7d   :  { %v12445_v28 = vpop.eup %12444 }
 0xd7e   :  { %v12447_v29 = vpop.eup %12446  ;;  %v2694_v30 = vsel %vm228_vm2, %v12445_v28, 0.0  ;;  %v2954_v42 = vpop.permute.xlu1 %2953 }
 0xd7f   :  { %2695 = vadd.xlane.f32.xlu0 %v2694_v30  ;;  %v2697_v10 = vsel %vm228_vm2, %v12447_v29, 0.0  ;;  %v3030_v43 = vpop.permute.xlu0 %3029 }
 0xd80   :  { %2698 = vadd.xlane.f32.xlu1 %v2697_v10 }
 0xd81   :  { %v12449_v8 = vpop.eup %12448 }
 0xd82   :  { %v13134_v31 = vpop.eup %12450  ;;  %v2700_v32 = vsel %vm228_vm2, %v12449_v8, 0.0  ;;  %v3106_v44 = vpop.permute.xlu1 %3105 }
 0xd83   :  { %2701 = vadd.xlane.f32.xlu0 %v2700_v32  ;;  %v2703_v34 = vsel %vm228_vm2, %v13134_v31, 0.0 }
 0xd84   :  { %2704 = vadd.xlane.f32.xlu1 %v2703_v34 }
 0xd85   :  { %v13139_v37 = vpop.eup %12452 }
 0xd86   :  { %v2706_v38 = vsel %vm228_vm2, %v13139_v37, 0.0 }
 0xd87   :  { %2707 = vadd.xlane.f32.xlu0 %v2706_v38 }
 0xd95   :  { %3257 = vrot.lane.b32.xlu1 %v13045_v9, %s12696_s2 }
 0xd9d   :  { %3181 = vrot.lane.b32.xlu0 %v13029_v4, %s12696_s2 }
 0xdaf   :  { %v2690_v45 = vpop.xlane.xlu0 %2689 }
 0xdb0   :  { %12454 = vrcp.f32 %v2690_v45 }
 0xdb3   :  { %v2687_v47 = vpop.xlane.xlu1 %2686 }
 0xdb4   :  { %12456 = vrcp.f32 %v2687_v47 }
 0xdba   :  { %v12455_v48 = vpop.eup %12454 }
 0xdbb   :  { %v2718_v49 = vmul.f32 %v12455_v48, %v13121_v61 }
 0xdbd   :  { %11594 = vmatmul.mubr.msk.f32.vlgmr.msra.gmra.mrb[34].mxu1 %vm228_vm2, %v2718_v49  ;;  %v10887_v49 = vld [vmem:[#allocation2 + $0x138] ss:$0 sm:$0xff] }
 0xdbe   :  { %v12457_v50 = vpop.eup %12456  ;;  %11602 = vmatpush3.msra.mxu1 %v2954_v42  ;;  %11603 = vmatprep.mubr.msk.f32.mxu1 %vm12692_vm1, %v12689_v13 }
 0xdbf   :  { %v2717_v4 = vmul.f32 %v12457_v50, %v13125_v63  ;;  %11611 = vmatprep.subr.mxu1 %v12689_v13 }
 0xdc1   :  { %11589 = vmatmul.mubr.msk.f32.vlgmr.msra.gmra.mrb[24].mxu0 %vm228_vm2, %v2717_v4 }
 0xdc2   :  { %11597 = vmatpush3.msra.mxu0 %v2878_v40  ;;  %11598 = vmatprep.mubr.msk.f32.mxu0 %vm12692_vm1, %v12689_v13 }
 0xdc3   :  { %11606 = vmatprep.subr.mxu0 %v12689_v13 }
 0xe08   :  { %v2693_v9 = vpop.xlane.xlu1 %2692 }
 0xe09   :  { %12458 = vrcp.f32 %v2693_v9 }
 0xe0c   :  { %v2696_v51 = vpop.xlane.xlu0 %2695 }
 0xe0d   :  { %12460 = vrcp.f32 %v2696_v51  ;;  %v2699_v52 = vpop.xlane.xlu1 %2698 }
 0xe0e   :  { %12462 = vrcp.f32 %v2699_v52 }
 0xe10   :  { %v2702_v53 = vpop.xlane.xlu0 %2701 }
 0xe11   :  { %12464 = vrcp.f32 %v2702_v53  ;;  %v2705_v54 = vpop.xlane.xlu1 %2704 }
 0xe12   :  { %12466 = vrcp.f32 %v2705_v54 }
 0xe13   :  { %v12459_v41 = vpop.eup %12458 }
 0xe14   :  { %v2708_v46 = vpop.xlane.xlu0 %2707  ;;  %v2719_v55 = vmul.f32 %v12459_v41, %v12443_v20 }
 0xe15   :  { %12468 = vrcp.f32 %v2708_v46  ;;  %v3258_v3 = vpop.permute.xlu1 %3257 }
 0xe16   :  { %11599 = vmatmul.mubr.msk.f32.vlgmr.msra.gmra.mrb[26].mxu0 %vm228_vm2, %v2719_v55 }
 0xe17   :  { %v12461_v56 = vpop.eup %12460  ;;  %11607 = vmatpush3.msra.mxu0 %v3030_v43  ;;  %11608 = vmatprep.mubr.msk.f32.mxu0 %vm12692_vm1, %v12689_v13 }
 0xe18   :  { %v12463_v57 = vpop.eup %12462  ;;  %11616 = vmatprep.subr.mxu0 %v12689_v13  ;;  %v2720_v58 = vmul.f32 %v12461_v56, %v12445_v28  ;;  %v3182_v61 = vpop.permute.xlu0 %3181 }
 0xe19   :  { %v2721_v62 = vmul.f32 %v12463_v57, %v12447_v29 }
 0xe1a   :  { %11604 = vmatmul.mubr.msk.f32.vlgmr.msra.gmra.mrb[36].mxu1 %vm228_vm2, %v2720_v58 }
 0xe1b   :  { %v12465_v63 = vpop.eup %12464  ;;  %11609 = vmatmul.mubr.msk.f32.vlgmr.msra.gmra.mrb[28].mxu0 %vm228_vm2, %v2721_v62  ;;  %11612 = vmatpush3.msra.mxu1 %v3106_v44 }
 0xe1c   :  { %v12467_v0 = vpop.eup %12466  ;;  %11617 = vmatpush3.msra.mxu0 %v3182_v61  ;;  %11613 = vmatprep.mubr.msk.f32.mxu1 %vm12692_vm1, %v12689_v13  ;;  %v2722_v1 = vmul.f32 %v12465_v63, %v12449_v8 }
 0xe1d   :  { %11618 = vmatprep.mubr.msk.f32.mxu0 %vm12692_vm1, %v12689_v13  ;;  %11621 = vmatprep.subr.mxu1 %v12689_v13  ;;  %v2723_v2 = vmul.f32 %v12467_v0, %v13134_v31 }
 0xe1e   :  { %11614 = vmatmul.mubr.msk.f32.vlgmr.msra.gmra.mrb[38].mxu1 %vm228_vm2, %v2722_v1  ;;  %12217 = vmatprep.subr.bf16.mxu0 %v12216_v23  ;;  %v3496_v1 = vld [vmem:[#allocation2 + $0x148] sm:$0xff] }
 0xe1f   :  { %v12469_v5 = vpop.eup %12468  ;;  %11619 = vmatmul.mubr.msk.f32.vlgmr.msra.gmra.mrb[30].mxu0 %vm228_vm2, %v2723_v2  ;;  %11622 = vmatpush3.msra.mxu1 %v3258_v3  ;;  %v3497_v2 = vld [vmem:[#allocation2 + $0x150] sm:$0xff] }
 0xe20   :  { %11623 = vmatprep.mubr.msk.f32.mxu1 %vm12692_vm1, %v12689_v13  ;;  %v2724_v6 = vmul.f32 %v12469_v5, %v13139_v37  ;;  %12219 = vmatpush3.bf16.msra.mxu0 %v12216_v23  ;;  %v3498_v5 = vld [vmem:[#allocation2 + $0x158] sm:$0xff] }
 0xe21   :  { %12221 = vmatprep.subr.bf16.mxu0 %v12220_v26 }
 0xe22   :  { %11624 = vmatmul.mubr.msk.f32.vlgmr.msra.gmra.mrb[40].mxu1 %vm228_vm2, %v2724_v6  ;;  %v12228_v6 = vpack.c.bf16 %v3498_v5, %v3497_v2 }
 0xe24   :  { %12223 = vmatpush3.bf16.msra.mxu0 %v12220_v26  ;;  %v3591_v26 = vld [vmem:[#allocation2 + $0x188] sm:$0xff] }
 0xe90   :  { %v2873_v7 = vpop.f32.mrb[34].mxu1 }
 0xe91   :  { %v11595_v11 = vpop.f32.mrb[35].mxu1 }
 0xe92   :  { %v3764_v11 = vld [vmem:[#allocation2 + $0x1e8] sm:$0xff] }
 0xe94   :  { %v2797_v21 = vpop.f32.mrb[24].mxu0 }
 0xe95   :  { %v11590_v22 = vpop.f32.mrb[25].mxu0 }
 0xe96   :  { %v3587_v22 = vld [vmem:[#allocation2 + $0x168] sm:$0xff] }
 0xe97   :  { %v12232_v23 = vpack.c.bf16 %v3588_v12, %v3587_v22 }
 0xe99   :  { %12233 = vmatprep.subr.bf16.mxu0 %v12232_v23 }
 0xee9   :  { %v2949_v15 = vpop.f32.mrb[26].mxu0 }
 0xeea   :  { %3335 = vrot.lane.b32.xlu0 %v2949_v15, %s12688_s29  ;;  %v11600_v27 = vpop.f32.mrb[27].mxu0  ;;  %v3592_v15 = vld [vmem:[#allocation2 + $0x190] sm:$0xff] }
 0xeeb   :  { %v12240_v27 = vpack.c.bf16 %v3592_v15, %v3591_v26  ;;  %v73_v26 = vand.u32 127, %v59_v33 }
 0xeed   :  { %v3025_v18 = vpop.f32.mrb[36].mxu1  ;;  %vm74_vm6 = vcmp.gt.s32.totalorder %v73_v26, %v12858_v35 }
 0xeee   :  { %v3101_v20 = vpop.f32.mrb[28].mxu0  ;;  %3337 = vrot.lane.b32.xlu1 %v3025_v18, %s12688_s29  ;;  %v11605_v16 = vpop.f32.mrb[37].mxu1 }
 0xeef   :  { %3343 = vrot.lane.b32.xlu0 %v3101_v20, %s12697_s15  ;;  %v11610_v19 = vpop.f32.mrb[29].mxu0 }
 0xef1   :  { %v3177_v17 = vpop.f32.mrb[38].mxu1 }
 0xef2   :  { %v3253_v28 = vpop.f32.mrb[30].mxu0  ;;  %3345 = vrot.lane.b32.xlu1 %v3177_v17, %s12697_s15  ;;  %v11615_v29 = vpop.f32.mrb[39].mxu1 }
 0xef3   :  { %3351 = vrot.lane.b32.xlu0 %v3253_v28, %s12698_s16  ;;  %v11620_v30 = vpop.f32.mrb[31].mxu0 }
 0xef4   :  { %v10890_v30 = vld [vmem:[#allocation2 + $0x1b0] ss:$0 sm:$0xff] }
 0xef5   :  { %v3329_v10 = vpop.f32.mrb[40].mxu1 }
 0xef6   :  { %3353 = vrot.lane.b32.xlu1 %v3329_v10, %s12698_s16  ;;  %v11625_v8 = vpop.f32.mrb[41].mxu1 }
 0xef7   :  { %v10891_v8 = vld [vmem:[#allocation2 + $0x1b8] ss:$0 sm:$0xff] }
 0xf5c   :  { %v3336_v31 = vpop.permute.xlu0 %3335 }
 0xf5d   :  { %v3357_v37 = vsel %vm228_vm2, %v2797_v21, %v3336_v31 }
 0xf60   :  { %v3338_v32 = vpop.permute.xlu1 %3337 }
 0xf61   :  { %v3344_v34 = vpop.permute.xlu0 %3343  ;;  %v3358_v44 = vsel %vm228_vm2, %v2873_v7, %v3338_v32  ;;  %v3763_v7 = vld [vmem:[#allocation2 + $0x1e0] sm:$0xff] }
 0xf62   :  { %v3359_v40 = vsel %vm1557_vm3, %v3357_v37, %v3344_v34  ;;  %v12248_v21 = vpack.c.bf16 %v3764_v11, %v3763_v7 }
 0xf64   :  { %v3346_v38 = vpop.permute.xlu1 %3345 }
 0xf65   :  { %v3352_v42 = vpop.permute.xlu0 %3351  ;;  %v3360_v45 = vsel %vm1557_vm3, %v3358_v44, %v3346_v38  ;;  %v37_v38 = vld [vmem:[%s14096_s1] sm:$0xff] }
 0xf66   :  { %v3361_v43 = vsel %vm1560_vm4, %v3359_v40, %v3352_v42  ;;  %v44_v40 = vld [vmem:[#allocation2 + $0x8] sm:$0xff]  ;;  %v3765_v42 = vld [vmem:[#allocation2 + $0x1f0] sm:$0xff] }
 0xf67   :  { %11634 = vmatprep.mubr.msk.f32.mxu0 %vm120_vm0, %v3361_v43  ;;  %v3766_v43 = vld [vmem:[#allocation2 + $0x1f8] sm:$0xff] }
 0xf68   :  { %v3354_v47 = vpop.permute.xlu1 %3353 }
 0xf69   :  { %v3362_v48 = vsel %vm1560_vm4, %v3360_v45, %v3354_v47  ;;  %v13202_v45 = vadd.f32 %v44_v40, %v37_v38 }
 0xf6a   :  { %11635 = vmatmul.mubr.msk.f32.vlgmr.msra.gmra.mrb[32].mxu0 %vm120_vm0, %v3362_v48  ;;  %v12252_v48 = vpack.c.bf16 %v3766_v43, %v3765_v42 }
 0xf6b   :  { %12235 = vmatpush3.bf16.msra.mxu0 %v12232_v23 }
 0xf6c   :  { %12237 = vmatprep.subr.bf16.mxu0 %v12236_v25 }
 0xf6f   :  { %12239 = vmatpush3.bf16.msra.mxu0 %v12236_v25  ;;  %v10819_v25 = vld.sshfl [vmem:[%s14098_s3] sm:$0x11 pattern:$0x75316420]  ;;  %s12699_s3 = smov [#allocation5]  }
 0xf70   :  { %12241 = vmatprep.subr.bf16.mxu0 %v12240_v27  ;;  %v91_v15 = vrot.slane %v10819_v25, %v12861_v36  ;;  %s10806_s22 = sshll.u32 %s12699_s3, 4  ;;  %s10807_s22 = int_to_ptr.vmem [resolvable:$true] %s10806_s22 }
 0xf71   :  { %s12660_s23 = scalar_lea.vmem %s10807_s22, 256  ;;  %p12665_p9 = scmp.lt.s32.totalorder %s10807_s22, %s10807_s22 }
 0xf72   :  { %p12661_p8 = scmp.ne.s32.totalorder %s10807_s22, %s12660_s23  ;;  %p12666_p10 = scmp.lt.s32.totalorder %s12660_s23, %s12660_s23 }
 0xf73   :  { %12243 = vmatpush3.bf16.msra.mxu0 %v12240_v27  ;;  %v102_v27 = vrot.slane %v91_v15, %v12868_v39 }
 0xf74   :  { %p12667_p11 = por %p12666_p10, %p12665_p9 }
 0xf76   :  { %p12668_p12 = pnand %p12667_p11, %p12661_p8 }
0x103d   :  { %v11636_v50 = vpop.f32.mrb[32].mxu0 }
0x103e   :  { %v3450_v4 = vadd.f32 %v11636_v50, %v10887_v49  ;;  %v3444_v9 = vpop.f32.mrb[33].mxu0 }
0x103f   :  { %v3445_v51 = vadd.f32 %v10887_v49, %v3444_v9  ;;  %v38_v49 = vld [vmem:[%s14096_s1 + $0x8] sm:$0xff]  ;;  %v3594_v9 = vld [vmem:[#allocation2 + $0x1a0] sm:$0xff] }
0x1040   :  { %v3454_v52 = vadd.f32 %v3450_v4, %v12993_v60  ;;  %v13213_v50 = vadd.f32 %v44_v40, %v38_v49  ;;  %v3593_v4 = vld [vmem:[#allocation2 + $0x198] sm:$0xff] }
0x1041   :  { %v3453_v53 = vadd.f32 %v3445_v51, %v12991_v59  ;;  %v3495_v59 = vld [vmem:[#allocation2 + $0x140] sm:$0xff]  ;;  %v12244_v51 = vpack.c.bf16 %v3594_v9, %v3593_v4 }
0x1042   :  { %v3458_v54 = vsel %vm120_vm0, %v3454_v52, 0.0  ;;  %v12224_v3 = vpack.c.bf16 %v3496_v1, %v3495_v59 }
0x1043   :  { %3459 = vadd.xlane.f32.xlu1 %v3458_v54  ;;  %v3455_v41 = vsel %vm120_vm0, %v3453_v53, 0.0  ;;  %12245 = vmatprep.subr.bf16.mxu0 %v12244_v51 }
0x1044   :  { %3456 = vadd.xlane.f32.xlu0 %v3455_v41  ;;  %12225 = vmatprep.subr.bf16.mxu1 %v12224_v3 }
0x1045   :  { %12227 = vmatpush3.bf16.msra.mxu1 %v12224_v3  ;;  %12247 = vmatpush3.bf16.msra.mxu0 %v12244_v51 }
0x1046   :  { %12229 = vmatprep.subr.bf16.mxu1 %v12228_v6  ;;  %11688 = vmatprep.subr.mxu0 %v12689_v13 }
0x1049   :  { %12231 = vmatpush3.bf16.msra.mxu1 %v12228_v6 }
0x104a   :  { %12249 = vmatprep.subr.bf16.mxu1 %v12248_v21 }
0x10d0   :  { %v3460_v46 = vpop.xlane.xlu1 %3459 }
0x10d1   :  { %v3462_v55 = vmul.f32 0.03125, %v3460_v46  ;;  %v3457_v56 = vpop.xlane.xlu0 %3456 }
0x10d2   :  { %v3461_v57 = vmul.f32 0.03125, %v3457_v56 }
0x10d3   :  { %v3464_v58 = vsub.f32 %v3454_v52, %v3462_v55  ;;  %v10892_v52 = vld [vmem:[#allocation2 + $0x160] ss:$0 sm:$0xff] }
0x10d4   :  { %v3463_v61 = vsub.f32 %v3453_v53, %v3461_v57  ;;  %v10902_v57 = vld [vmem:[#allocation2 + $0x200] ss:$0 sm:$0xff] }
0x10d5   :  { %v3466_v0 = vmul.f32 %v3464_v58, %v3464_v58 }
0x10d6   :  { %v3465_v62 = vmul.f32 %v3463_v61, %v3463_v61 }
0x10d7   :  { %v3470_v60 = vsel %vm120_vm0, %v3466_v0, 0.0 }
0x10d8   :  { %v3467_v63 = vsel %vm120_vm0, %v3465_v62, 0.0 }
0x10d9   :  { %3468 = vadd.xlane.f32.xlu0 %v3467_v63 }
0x10dd   :  { %3471 = vadd.xlane.f32.xlu0 %v3470_v60 }
0x1166   :  { %v3469_v18 = vpop.xlane.xlu0 %3468 }
0x1167   :  { %v3473_v20 = vmul.f32 0.03125, %v3469_v18  ;;  %v75_v18 = vsel %vm74_vm6, -1e+09, %v12689_v13 }
0x1169   :  { %v3475_v16 = vadd.f32 1e-05, %v3473_v20  ;;  %v84_v20 = vcombine.high %v10819_v25, %v10819_v25 }
0x116a   :  { %v3472_v19 = vpop.xlane.xlu0 %3471 }
0x116b   :  { %12470 = vrsqrt.f32 %v3475_v16  ;;  %v3474_v17 = vmul.f32 0.03125, %v3472_v19  ;;  %v13329_v16 = vadd.f32 %v102_v27, %v75_v18  ;;  %v98_v19 = vrot.slane %v84_v20, %v12861_v36 }
0x116d   :  { %v3476_v28 = vadd.f32 1e-05, %v3474_v17 }
0x116f   :  { %12472 = vrsqrt.f32 %v3476_v28 }
0x1175   :  { %v12471_v29 = vpop.eup %12470 }
0x1176   :  { %v3479_v10 = vmul.f32 %v12471_v29, %v3463_v61 }
0x1178   :  { %v3486_v31 = vmul.f32 %v10890_v30, %v3479_v10 }
0x1179   :  { %v12473_v32 = vpop.eup %12472 }
0x117a   :  { %v3480_v34 = vmul.f32 %v12473_v32, %v3464_v58  ;;  %v13195_v37 = vadd.f32 %v10891_v8, %v3486_v31 }
0x117c   :  { %v3487_v44 = vmul.f32 %v10890_v30, %v3480_v34  ;;  %11645 = vmatprep.mubr.msk.f32.mxu1 %vm120_vm0, %v13195_v37  ;;  %v106_v30 = vrot.slane %v98_v19, %v12868_v39 }
0x117e   :  { %v13204_v47 = vadd.f32 %v10891_v8, %v3487_v44  ;;  %v13335_v10 = vadd.f32 %v106_v30, %v75_v18 }
0x1180   :  { %11646 = vmatmul.mubr.msk.f32.vlgmr.msra.gmra.mrb[42].mxu1 %vm120_vm0, %v13204_v47 }
0x1181   :  { %12251 = vmatpush3.bf16.msra.mxu1 %v12248_v21  ;;  %11675 = vmatprep.mubr.msk.f32.mxu1 %vm120_vm0, %v13202_v45 }
0x1182   :  { %12253 = vmatprep.subr.bf16.mxu1 %v12252_v48 }
0x1185   :  { %12255 = vmatpush3.bf16.msra.mxu1 %v12252_v48 }
0x1186   :  { %11678 = vmatprep.subr.mxu1 %v12689_v13 }
0x1188   :  { %11676 = vmatmul.mubr.msk.f32.vlgmr.msra.gmra.mrb[44].mxu1 %vm120_vm0, %v13213_v50 }
0x1189   :  { %11680 = vmatprep.mubr.msk.f32.mxu1 %vm12692_vm1, %v12689_v13 }
0x1253   :  { %v11647_v53 = vpop.f32.mrb[42].mxu1 }
0x1254   :  { %v3582_v54 = vadd.f32 %v11647_v53, %v10892_v52  ;;  %v3576_v41 = vpop.f32.mrb[43].mxu1 }
0x1255   :  { %v3577_v46 = vadd.f32 %v10892_v52, %v3576_v41 }
0x1256   :  { %v3586_v56 = vmax.f32 %v3582_v54, 0.0 }
0x1257   :  { %v3585_v55 = vmax.f32 %v3577_v46, 0.0 }
0x1259   :  { %11664 = vmatprep.mubr.msk.f32.mxu0 %vm1801_vm5, %v3585_v55 }
0x125a   :  { %11665 = vmatmul.mubr.msk.f32.vlgmr.msra.gmra.mrb[34].mxu0 %vm1801_vm5, %v3586_v56 }
0x125b   :  { %v11677_v58 = vpop.f32.mrb[44].mxu1  ;;  %11690 = vmatprep.mubr.msk.f32.mxu0 %vm12692_vm1, %v12689_v13 }
0x125c   :  { %v13225_v61 = vadd.f32 %v11677_v58, %v10902_v57  ;;  %v3844_v62 = vpop.f32.mrb[45].mxu1 }
0x125d   :  { %v13227_v63 = vadd.f32 %v10902_v57, %v3844_v62 }
0x125e   :  { %3857 = vrot.lane.b32.xlu0 %v13225_v61, %s12691_s10 }
0x125f   :  { %3855 = vrot.lane.b32.xlu1 %v13227_v63, %s12691_s10 }
0x1262   :  { %3863 = vrot.lane.b32.xlu0 %v13227_v63, %s12693_s11 }
0x1263   :  { %3859 = vrot.lane.b32.xlu1 %v13227_v63, %s12690_s0 }
0x1266   :  { %3867 = vrot.lane.b32.xlu0 %v13227_v63, %s12694_s12 }
0x1267   :  { %3861 = vrot.lane.b32.xlu1 %v13225_v61, %s12690_s0 }
0x126b   :  { %3865 = vrot.lane.b32.xlu1 %v13225_v61, %s12693_s11 }
0x126f   :  { %3943 = vrot.lane.b32.xlu1 %v13225_v61, %s12694_s12 }
0x12d0   :  { %v13245_v0 = vpop.permute.xlu0 %3857 }
0x12d1   :  { %4095 = vrot.lane.b32.xlu1 %v13245_v0, %s12694_s12  ;;  %v13249_v60 = vpop.permute.xlu1 %3855 }
0x12d2   :  { %4019 = vrot.lane.b32.xlu0 %v13249_v60, %s12694_s12 }
0x12d4   :  { %v13253_v59 = vpop.permute.xlu0 %3863 }
0x12d5   :  { %v13255_v1 = vpop.permute.xlu1 %3859 }
0x12d6   :  { %4171 = vrot.lane.b32.xlu0 %v13255_v1, %s12694_s12 }
0x12d8   :  { %v3868_v2 = vpop.permute.xlu0 %3867 }
0x12d9   :  { %11679 = vmatpush3.xpose.msk.msra.mxu1 %vm228_vm2, %v3868_v2  ;;  %v13260_v3 = vpop.permute.xlu1 %3861 }
0x12da   :  { %4323 = vrot.lane.b32.xlu0 %v13253_v59, %s12694_s12  ;;  %4247 = vrot.lane.b32.xlu1 %v13260_v3, %s12694_s12 }
0x12db   :  { %11683 = vmatprep.subr.mxu1 %v12689_v13 }
0x12dc   :  { %11681 = vmatmul.mubr.msk.f32.vlgmr.msra.gmra.mrb[46].mxu1 %vm228_vm2, %v13227_v63 }
0x12dd   :  { %v13269_v5 = vpop.permute.xlu1 %3865  ;;  %11685 = vmatprep.mubr.msk.f32.mxu1 %vm12692_vm1, %v12689_v13 }
0x12de   :  { %4399 = vrot.lane.b32.xlu1 %v13269_v5, %s12694_s12 }
0x12e1   :  { %v3944_v6 = vpop.permute.xlu1 %3943 }
0x12e2   :  { %11684 = vmatpush3.xpose.msk.msra.mxu1 %vm228_vm2, %v3944_v6 }
0x12e3   :  { %11693 = vmatprep.subr.mxu1 %v12689_v13 }
0x12e5   :  { %11686 = vmatmul.mubr.msk.f32.vlgmr.msra.gmra.mrb[48].mxu1 %vm228_vm2, %v13225_v61 }
0x12e6   :  { %11695 = vmatprep.mubr.msk.f32.mxu1 %vm12692_vm1, %v12689_v13 }
0x132d   :  { %v13281_v7 = vpop.f32.mrb[34].mxu0 }
0x132e   :  { %v13283_v11 = vpop.f32.mrb[35].mxu0 }
0x1343   :  { %v4096_v21 = vpop.permute.xlu1 %4095 }
0x1344   :  { %v4020_v22 = vpop.permute.xlu0 %4019  ;;  %11694 = vmatpush3.xpose.msk.msra.mxu1 %vm228_vm2, %v4096_v21 }
0x1345   :  { %11689 = vmatpush3.xpose.msk.msra.mxu0 %vm228_vm2, %v4020_v22  ;;  %11703 = vmatprep.subr.mxu1 %v12689_v13 }
0x1346   :  { %11698 = vmatprep.subr.mxu0 %v12689_v13 }
0x1347   :  { %11696 = vmatmul.mubr.msk.f32.vlgmr.msra.gmra.mrb[50].mxu1 %vm228_vm2, %v13245_v0 }
0x1348   :  { %v4172_v12 = vpop.permute.xlu0 %4171  ;;  %11691 = vmatmul.mubr.msk.f32.vlgmr.msra.gmra.mrb[36].mxu0 %vm228_vm2, %v13249_v60  ;;  %11705 = vmatprep.mubr.msk.f32.mxu1 %vm12692_vm1, %v12689_v13 }
0x1349   :  { %11699 = vmatpush3.xpose.msk.msra.mxu0 %vm228_vm2, %v4172_v12  ;;  %11700 = vmatprep.mubr.msk.f32.mxu0 %vm12692_vm1, %v12689_v13 }
0x134a   :  { %11708 = vmatprep.subr.mxu0 %v12689_v13 }
0x134c   :  { %v4324_v14 = vpop.permute.xlu0 %4323  ;;  %v4248_v23 = vpop.permute.xlu1 %4247  ;;  %11701 = vmatmul.mubr.msk.f32.vlgmr.msra.gmra.mrb[38].mxu0 %vm228_vm2, %v13255_v1 }
0x134d   :  { %11704 = vmatpush3.xpose.msk.msra.mxu1 %vm228_vm2, %v4248_v23  ;;  %11709 = vmatpush3.xpose.msk.msra.mxu0 %vm228_vm2, %v4324_v14 }
0x134e   :  { %11710 = vmatprep.mubr.msk.f32.mxu0 %vm12692_vm1, %v12689_v13  ;;  %11713 = vmatprep.subr.mxu1 %v12689_v13 }
0x134f   :  { %11718 = vmatprep.subr.mxu0 %v12689_v13 }
0x1350   :  { %11706 = vmatmul.mubr.msk.f32.vlgmr.msra.gmra.mrb[52].mxu1 %vm228_vm2, %v13260_v3  ;;  %v4400_v24 = vpop.permute.xlu1 %4399  ;;  %11711 = vmatmul.mubr.msk.f32.vlgmr.msra.gmra.mrb[40].mxu0 %vm228_vm2, %v13253_v59 }
0x1351   :  { %11714 = vmatpush3.xpose.msk.msra.mxu1 %vm228_vm2, %v4400_v24  ;;  %11715 = vmatprep.mubr.msk.f32.mxu1 %vm12692_vm1, %v12689_v13 }
0x1352   :  { %11723 = vmatprep.subr.mxu1 %v12689_v13  ;;  %11720 = vmatprep.mubr.msk.f32.mxu0 %vm12692_vm1, %v12689_v13 }
0x1354   :  { %11716 = vmatmul.mubr.msk.f32.vlgmr.msra.gmra.mrb[54].mxu1 %vm228_vm2, %v13269_v5 }
0x1355   :  { %11725 = vmatprep.mubr.msk.f32.mxu1 %vm12692_vm1, %v12689_v13 }
0x13af   :  { %v3939_v17 = vpop.f32.mrb[46].mxu1 }
0x13b0   :  { %v3940_v28 = vadd.f32 %v3939_v17, %v13329_v16  ;;  %v11682_v29 = vpop.f32.mrb[47].mxu1 }
0x13b2   :  { %v4475_v33 = vsel %vm228_vm2, %v3940_v28, -inf }
0x13b3   :  { %4476 = vmax.xlane.f32.xlu0 %v4475_v33 }
0x13b8   :  { %v4015_v35 = vpop.f32.mrb[48].mxu1 }
0x13b9   :  { %v4016_v8 = vadd.f32 %v4015_v35, %v13335_v10  ;;  %v11687_v31 = vpop.f32.mrb[49].mxu1 }
0x13bb   :  { %v4478_v32 = vsel %vm228_vm2, %v4016_v8, -inf }
0x13bc   :  { %4479 = vmax.xlane.f32.xlu1 %v4478_v32 }
0x141a   :  { %v4167_v34 = vpop.f32.mrb[50].mxu1 }
0x141b   :  { %v4091_v36 = vpop.f32.mrb[36].mxu0  ;;  %v11697_v38 = vpop.f32.mrb[51].mxu1  ;;  %v4168_v39 = vadd.f32 %v4167_v34, %v13335_v10 }
0x141c   :  { %v4092_v40 = vadd.f32 %v4091_v36, %v13329_v16  ;;  %v11692_v42 = vpop.f32.mrb[37].mxu0 }
0x141d   :  { %v4484_v4 = vsel %vm228_vm2, %v4168_v39, -inf }
0x141e   :  { %v4481_v43 = vsel %vm228_vm2, %v4092_v40, -inf }
0x141f   :  { %4482 = vmax.xlane.f32.xlu0 %v4481_v43  ;;  %v4243_v44 = vpop.f32.mrb[38].mxu0 }
0x1420   :  { %v4244_v48 = vadd.f32 %v4243_v44, %v13329_v16  ;;  %v11702_v49 = vpop.f32.mrb[39].mxu0 }
0x1422   :  { %v4487_v9 = vsel %vm228_vm2, %v4244_v48, -inf }
0x1423   :  { %v4319_v51 = vpop.f32.mrb[52].mxu1  ;;  %4485 = vmax.xlane.f32.xlu0 %v4484_v4  ;;  %4488 = vmax.xlane.f32.xlu1 %v4487_v9  ;;  %v4395_v52 = vpop.f32.mrb[40].mxu0 }
0x1424   :  { %v4320_v53 = vadd.f32 %v4319_v51, %v13335_v10  ;;  %v4396_v54 = vadd.f32 %v4395_v52, %v13329_v16  ;;  %v11707_v41 = vpop.f32.mrb[53].mxu1  ;;  %v11712_v46 = vpop.f32.mrb[41].mxu0 }
0x1426   :  { %v4490_v55 = vsel %vm228_vm2, %v4320_v53, -inf  ;;  %v4493_v56 = vsel %vm228_vm2, %v4396_v54, -inf }
0x1427   :  { %v4471_v57 = vpop.f32.mrb[54].mxu1  ;;  %4491 = vmax.xlane.f32.xlu0 %v4490_v55  ;;  %4494 = vmax.xlane.f32.xlu1 %v4493_v56 }
0x1428   :  { %v4472_v58 = vadd.f32 %v4471_v57, %v13335_v10  ;;  %v11717_v62 = vpop.f32.mrb[55].mxu1 }
0x142a   :  { %v4496_v2 = vsel %vm228_vm2, %v4472_v58, -inf }
0x142b   :  { %4497 = vmax.xlane.f32.xlu0 %v4496_v2 }
0x1438   :  { %4563 = vrot.lane.b32.xlu1 %v13227_v63, %s12696_s2 }
0x143c   :  { %4715 = vrot.lane.b32.xlu1 %v13249_v60, %s12696_s2 }
0x1440   :  { %4791 = vrot.lane.b32.xlu1 %v13245_v0, %s12696_s2  ;;  %v4477_v22 = vpop.xlane.xlu0 %4476 }
0x1441   :  { %4639 = vrot.lane.b32.xlu0 %v13225_v61, %s12696_s2  ;;  %v4499_v12 = vsub.f32 %v3940_v28, %v4477_v22 }
0x1443   :  { %v4507_v14 = vmul.f32 1.442695, %v4499_v12 }
0x1444   :  { %4943 = vrot.lane.b32.xlu1 %v13260_v3, %s12696_s2 }
0x1445   :  { %4867 = vrot.lane.b32.xlu0 %v13255_v1, %s12696_s2 }
0x1449   :  { %v4480_v6 = vpop.xlane.xlu1 %4479 }
0x144a   :  { %v4500_v21 = vsub.f32 %v4016_v8, %v4480_v6 }
0x144c   :  { %v4509_v63 = vmul.f32 1.442695, %v4500_v21 }
0x144e   :  { %12474 = vpow2.f32 %v4509_v63 }
0x144f   :  { %12476 = vpow2.f32 %v4507_v14 }
0x1458   :  { %v13363_v60 = vpop.eup %12474 }
0x1459   :  { %v4526_v0 = vsel %vm228_vm2, %v13363_v60, 0.0  ;;  %v13367_v61 = vpop.eup %12476 }
0x145a   :  { %v4523_v3 = vsel %vm228_vm2, %v13367_v61, 0.0 }
0x1464   :  { %4527 = vadd.xlane.f32.xlu0 %v4526_v0 }
0x1468   :  { %4524 = vadd.xlane.f32.xlu1 %v4523_v3 }
0x14ac   :  { %v4483_v1 = vpop.xlane.xlu0 %4482 }
0x14ad   :  { %v4501_v23 = vsub.f32 %v4092_v40, %v4483_v1 }
0x14af   :  { %v4511_v24 = vmul.f32 1.442695, %v4501_v23 }
0x14b0   :  { %v4486_v25 = vpop.xlane.xlu0 %4485  ;;  %v4489_v26 = vpop.xlane.xlu1 %4488 }
0x14b1   :  { %12478 = vpow2.f32 %v4511_v24  ;;  %v4502_v15 = vsub.f32 %v4168_v39, %v4486_v25  ;;  %v4503_v27 = vsub.f32 %v4244_v48, %v4489_v26 }
0x14b3   :  { %v4513_v18 = vmul.f32 1.442695, %v4502_v15  ;;  %v4515_v20 = vmul.f32 1.442695, %v4503_v27 }
0x14b4   :  { %v4492_v19 = vpop.xlane.xlu0 %4491  ;;  %v4495_v17 = vpop.xlane.xlu1 %4494 }
0x14b5   :  { %12480 = vpow2.f32 %v4513_v18  ;;  %v4504_v28 = vsub.f32 %v4320_v53, %v4492_v19  ;;  %v4505_v29 = vsub.f32 %v4396_v54, %v4495_v17 }
0x14b6   :  { %12482 = vpow2.f32 %v4515_v20 }
0x14b7   :  { %v4517_v30 = vmul.f32 1.442695, %v4504_v28  ;;  %v4519_v33 = vmul.f32 1.442695, %v4505_v29  ;;  %v5201_v28 = vld [vmem:[#allocation2 + $0x208] sm:$0xff]  ;;  %v5202_v29 = vld [vmem:[#allocation2 + $0x210] sm:$0xff] }
0x14b8   :  { %v4498_v35 = vpop.xlane.xlu0 %4497  ;;  %v4564_v8 = vpop.permute.xlu1 %4563 }
0x14b9   :  { %12484 = vpow2.f32 %v4517_v30  ;;  %v4506_v31 = vsub.f32 %v4472_v58, %v4498_v35  ;;  %11719 = vmatpush3.msra.mxu0 %v4564_v8  ;;  %v12256_v30 = vpack.c.bf16 %v5202_v29, %v5201_v28  ;;  %v5204_v35 = vld [vmem:[#allocation2 + $0x220] sm:$0xff]  ;;  %v10899_v28 = vld [vmem:[#allocation2 + $0x1c8] ss:$0 sm:$0xff] }
0x14ba   :  { %12486 = vpow2.f32 %v4519_v33  ;;  %11728 = vmatprep.subr.mxu0 %v12689_v13  ;;  %v5203_v33 = vld [vmem:[#allocation2 + $0x218] sm:$0xff] }
0x14bb   :  { %v12479_v32 = vpop.eup %12478  ;;  %v4521_v34 = vmul.f32 1.442695, %v4506_v31  ;;  %v12260_v8 = vpack.c.bf16 %v5204_v35, %v5203_v33 }
0x14bc   :  { %v4640_v36 = vpop.permute.xlu0 %4639  ;;  %v4529_v38 = vsel %vm228_vm2, %v12479_v32, 0.0  ;;  %v4716_v52 = vpop.permute.xlu1 %4715 }
0x14bd   :  { %12488 = vpow2.f32 %v4521_v34  ;;  %11724 = vmatpush3.msra.mxu1 %v4640_v36  ;;  %4530 = vadd.xlane.f32.xlu1 %v4529_v38 }
0x14be   :  { %11733 = vmatprep.subr.mxu1 %v12689_v13 }
0x14bf   :  { %v12481_v40 = vpop.eup %12480 }
0x14c0   :  { %v12483_v42 = vpop.eup %12482  ;;  %v4532_v39 = vsel %vm228_vm2, %v12481_v40, 0.0  ;;  %v4792_v53 = vpop.permute.xlu1 %4791 }
0x14c1   :  { %4533 = vadd.xlane.f32.xlu0 %v4532_v39  ;;  %v4535_v43 = vsel %vm228_vm2, %v12483_v42, 0.0  ;;  %v4868_v54 = vpop.permute.xlu0 %4867 }
0x14c2   :  { %4536 = vadd.xlane.f32.xlu1 %v4535_v43 }
0x14c3   :  { %v12485_v44 = vpop.eup %12484 }
0x14c4   :  { %v13376_v48 = vpop.eup %12486  ;;  %v4538_v49 = vsel %vm228_vm2, %v12485_v44, 0.0  ;;  %v4944_v41 = vpop.permute.xlu1 %4943 }
0x14c5   :  { %4539 = vadd.xlane.f32.xlu0 %v4538_v49  ;;  %v4541_v4 = vsel %vm228_vm2, %v13376_v48, 0.0 }
0x14c6   :  { %4542 = vadd.xlane.f32.xlu1 %v4541_v4  ;;  %v10895_v4 = vld [vmem:[#allocation2 + $0x1a8] ss:$0 sm:$0xff] }
0x14c7   :  { %v13381_v9 = vpop.eup %12488 }
0x14c8   :  { %v4544_v51 = vsel %vm228_vm2, %v13381_v9, 0.0 }
0x14c9   :  { %4545 = vadd.xlane.f32.xlu0 %v4544_v51 }
0x14d7   :  { %5095 = vrot.lane.b32.xlu1 %v13269_v5, %s12696_s2 }
0x14df   :  { %5019 = vrot.lane.b32.xlu0 %v13253_v59, %s12696_s2 }
0x14f1   :  { %v4528_v46 = vpop.xlane.xlu0 %4527 }
0x14f2   :  { %12490 = vrcp.f32 %v4528_v46 }
0x14f5   :  { %v4525_v55 = vpop.xlane.xlu1 %4524 }
0x14f6   :  { %12492 = vrcp.f32 %v4525_v55 }
0x14fc   :  { %v12491_v56 = vpop.eup %12490 }
0x14fd   :  { %v4556_v57 = vmul.f32 %v12491_v56, %v13363_v60 }
0x14ff   :  { %11726 = vmatmul.mubr.msk.f32.vlgmr.msra.gmra.mrb[56].mxu1 %vm228_vm2, %v4556_v57 }
0x1500   :  { %v12493_v58 = vpop.eup %12492  ;;  %11734 = vmatpush3.msra.mxu1 %v4792_v53  ;;  %11735 = vmatprep.mubr.msk.f32.mxu1 %vm12692_vm1, %v12689_v13 }
0x1501   :  { %v4555_v59 = vmul.f32 %v12493_v58, %v13367_v61  ;;  %11743 = vmatprep.subr.mxu1 %v12689_v13 }
0x1503   :  { %11721 = vmatmul.mubr.msk.f32.vlgmr.msra.gmra.mrb[42].mxu0 %vm228_vm2, %v4555_v59 }
0x1504   :  { %11729 = vmatpush3.msra.mxu0 %v4716_v52  ;;  %11730 = vmatprep.mubr.msk.f32.mxu0 %vm12692_vm1, %v12689_v13  ;;  %v3678_v52 = vadd.f32 %v13281_v7, %v10895_v4 }
0x1505   :  { %11738 = vmatprep.subr.mxu0 %v12689_v13 }
0x154a   :  { %v4531_v5 = vpop.xlane.xlu1 %4530 }
0x154b   :  { %12494 = vrcp.f32 %v4531_v5 }
0x154e   :  { %v4534_v62 = vpop.xlane.xlu0 %4533 }
0x154f   :  { %12496 = vrcp.f32 %v4534_v62  ;;  %v4537_v2 = vpop.xlane.xlu1 %4536 }
0x1550   :  { %12498 = vrcp.f32 %v4537_v2 }
0x1552   :  { %v4540_v6 = vpop.xlane.xlu0 %4539 }
0x1553   :  { %12500 = vrcp.f32 %v4540_v6  ;;  %v4543_v21 = vpop.xlane.xlu1 %4542 }
0x1554   :  { %12502 = vrcp.f32 %v4543_v21 }
0x1555   :  { %v12495_v22 = vpop.eup %12494 }
0x1556   :  { %v4546_v12 = vpop.xlane.xlu0 %4545  ;;  %v4557_v63 = vmul.f32 %v12495_v22, %v12479_v32 }
0x1557   :  { %12504 = vrcp.f32 %v4546_v12  ;;  %v5096_v26 = vpop.permute.xlu1 %5095 }
0x1558   :  { %11731 = vmatmul.mubr.msk.f32.vlgmr.msra.gmra.mrb[44].mxu0 %vm228_vm2, %v4557_v63 }
0x1559   :  { %v12497_v14 = vpop.eup %12496  ;;  %11739 = vmatpush3.msra.mxu0 %v4868_v54  ;;  %11740 = vmatprep.mubr.msk.f32.mxu0 %vm12692_vm1, %v12689_v13  ;;  %v3682_v54 = vadd.f32 %v3678_v52, %v13204_v47 }
0x155a   :  { %v12499_v60 = vpop.eup %12498  ;;  %11748 = vmatprep.subr.mxu0 %v12689_v13  ;;  %v4558_v0 = vmul.f32 %v12497_v14, %v12481_v40  ;;  %v5020_v61 = vpop.permute.xlu0 %5019 }
0x155b   :  { %v4559_v3 = vmul.f32 %v12499_v60, %v12483_v42 }
0x155c   :  { %11736 = vmatmul.mubr.msk.f32.vlgmr.msra.gmra.mrb[58].mxu1 %vm228_vm2, %v4558_v0 }
0x155d   :  { %v12501_v1 = vpop.eup %12500  ;;  %11741 = vmatmul.mubr.msk.f32.vlgmr.msra.gmra.mrb[46].mxu0 %vm228_vm2, %v4559_v3  ;;  %11744 = vmatpush3.msra.mxu1 %v4944_v41  ;;  %v3686_v41 = vsel %vm120_vm0, %v3682_v54, 0.0 }
0x155e   :  { %v12503_v23 = vpop.eup %12502  ;;  %11749 = vmatpush3.msra.mxu0 %v5020_v61  ;;  %11745 = vmatprep.mubr.msk.f32.mxu1 %vm12692_vm1, %v12689_v13  ;;  %v4560_v24 = vmul.f32 %v12501_v1, %v12485_v44 }
0x155f   :  { %11750 = vmatprep.mubr.msk.f32.mxu0 %vm12692_vm1, %v12689_v13  ;;  %11753 = vmatprep.subr.mxu1 %v12689_v13  ;;  %v4561_v25 = vmul.f32 %v12503_v23, %v13376_v48 }
0x1560   :  { %11746 = vmatmul.mubr.msk.f32.vlgmr.msra.gmra.mrb[60].mxu1 %vm228_vm2, %v4560_v24  ;;  %12257 = vmatprep.subr.bf16.mxu0 %v12256_v30 }
0x1561   :  { %v12505_v15 = vpop.eup %12504  ;;  %11751 = vmatmul.mubr.msk.f32.vlgmr.msra.gmra.mrb[48].mxu0 %vm228_vm2, %v4561_v25  ;;  %11754 = vmatpush3.msra.mxu1 %v5096_v26 }
0x1562   :  { %11755 = vmatprep.mubr.msk.f32.mxu1 %vm12692_vm1, %v12689_v13  ;;  %v4562_v27 = vmul.f32 %v12505_v15, %v13381_v9  ;;  %12259 = vmatpush3.bf16.msra.mxu0 %v12256_v30  ;;  %v3673_v9 = vadd.f32 %v10895_v4, %v13283_v11 }
0x1563   :  { %12261 = vmatprep.subr.bf16.mxu0 %v12260_v8 }
0x1564   :  { %11756 = vmatmul.mubr.msk.f32.vlgmr.msra.gmra.mrb[62].mxu1 %vm228_vm2, %v4562_v27  ;;  %v3681_v51 = vadd.f32 %v3673_v9, %v13195_v37 }
0x1566   :  { %12263 = vmatpush3.bf16.msra.mxu0 %v12260_v8  ;;  %v3683_v53 = vsel %vm120_vm0, %v3681_v51, 0.0 }
0x15d2   :  { %v4711_v18 = vpop.f32.mrb[56].mxu1 }
0x15d3   :  { %v11727_v20 = vpop.f32.mrb[57].mxu1 }
0x15d4   :  { %v10929_v20 = vld [vmem:[#allocation2 + $0x228] ss:$0 sm:$0xff] }
0x15d6   :  { %v4635_v19 = vpop.f32.mrb[42].mxu0 }
0x15d7   :  { %v11722_v17 = vpop.f32.mrb[43].mxu0 }
0x162b   :  { %v4787_v31 = vpop.f32.mrb[44].mxu0 }
0x162c   :  { %5173 = vrot.lane.b32.xlu0 %v4787_v31, %s12688_s29  ;;  %v11732_v32 = vpop.f32.mrb[45].mxu0 }
0x162f   :  { %v4863_v34 = vpop.f32.mrb[58].mxu1 }
0x1630   :  { %v4939_v36 = vpop.f32.mrb[46].mxu0  ;;  %5175 = vrot.lane.b32.xlu1 %v4863_v34, %s12688_s29  ;;  %v11737_v38 = vpop.f32.mrb[59].mxu1 }
0x1631   :  { %5181 = vrot.lane.b32.xlu0 %v4939_v36, %s12697_s15  ;;  %v11742_v40 = vpop.f32.mrb[47].mxu0 }
0x1633   :  { %v5015_v42 = vpop.f32.mrb[60].mxu1 }
0x1634   :  { %v5091_v39 = vpop.f32.mrb[48].mxu0  ;;  %5183 = vrot.lane.b32.xlu1 %v5015_v42, %s12697_s15  ;;  %v11747_v43 = vpop.f32.mrb[61].mxu1 }
0x1635   :  { %5189 = vrot.lane.b32.xlu0 %v5091_v39, %s12698_s16  ;;  %v11752_v44 = vpop.f32.mrb[49].mxu0 }
0x1637   :  { %v5167_v48 = vpop.f32.mrb[62].mxu1 }
0x1638   :  { %5191 = vrot.lane.b32.xlu1 %v5167_v48, %s12698_s16  ;;  %v11757_v49 = vpop.f32.mrb[63].mxu1 }
0x1654   :  { %3684 = vadd.xlane.f32.xlu0 %v3683_v53 }
0x165c   :  { %3687 = vadd.xlane.f32.xlu1 %v3686_v41 }
0x169e   :  { %v5174_v46 = vpop.permute.xlu0 %5173 }
0x169f   :  { %v5195_v57 = vsel %vm228_vm2, %v4635_v19, %v5174_v46  ;;  %v10898_v19 = vld [vmem:[#allocation2 + $0x1c0] ss:$0 sm:$0xff] }
0x16a2   :  { %v5176_v55 = vpop.permute.xlu1 %5175 }
0x16a3   :  { %v5182_v56 = vpop.permute.xlu0 %5181  ;;  %v5196_v7 = vsel %vm228_vm2, %v4711_v18, %v5176_v55 }
0x16a4   :  { %v5197_v11 = vsel %vm1557_vm3, %v5195_v57, %v5182_v56 }
0x16a6   :  { %v5184_v58 = vpop.permute.xlu1 %5183 }
0x16a7   :  { %v5190_v59 = vpop.permute.xlu0 %5189  ;;  %v5198_v47 = vsel %vm1557_vm3, %v5196_v7, %v5184_v58  ;;  %v5437_v7 = vld [vmem:[#allocation2 + $0x258] sm:$0xff] }
0x16a8   :  { %v5199_v37 = vsel %vm1560_vm4, %v5197_v11, %v5190_v59 }
0x16a9   :  { %11766 = vmatprep.mubr.msk.f32.mxu0 %vm120_vm0, %v5199_v37 }
0x16aa   :  { %v5192_v5 = vpop.permute.xlu1 %5191 }
0x16ab   :  { %v5200_v62 = vsel %vm1560_vm4, %v5198_v47, %v5192_v5  ;;  %v5438_v47 = vld [vmem:[#allocation2 + $0x260] sm:$0xff] }
0x16ac   :  { %11767 = vmatmul.mubr.msk.f32.vlgmr.msra.gmra.mrb[50].mxu0 %vm120_vm0, %v5200_v62  ;;  %v12272_v5 = vpack.c.bf16 %v5438_v47, %v5437_v7  ;;  %v5333_v62 = vld [vmem:[#allocation2 + $0x230] sm:$0xff] }
0x16ae   :  { %12273 = vmatprep.subr.bf16.mxu0 %v12272_v5 }
0x16af   :  { %12275 = vmatpush3.bf16.msra.mxu0 %v12272_v5 }
0x16e1   :  { %v3685_v2 = vpop.xlane.xlu0 %3684 }
0x16e2   :  { %v3689_v6 = vmul.f32 0.03125, %v3685_v2  ;;  %v5334_v2 = vld [vmem:[#allocation2 + $0x238] sm:$0xff] }
0x16e4   :  { %v3691_v21 = vsub.f32 %v3681_v51, %v3689_v6  ;;  %v5439_v6 = vld [vmem:[#allocation2 + $0x268] sm:$0xff] }
0x16e6   :  { %v3693_v22 = vmul.f32 %v3691_v21, %v3691_v21 }
0x16e8   :  { %v3695_v12 = vsel %vm120_vm0, %v3693_v22, 0.0  ;;  %v5440_v22 = vld [vmem:[#allocation2 + $0x270] sm:$0xff] }
0x16e9   :  { %3696 = vadd.xlane.f32.xlu0 %v3695_v12  ;;  %v3688_v63 = vpop.xlane.xlu1 %3687  ;;  %v12276_v12 = vpack.c.bf16 %v5440_v22, %v5439_v6 }
0x16ea   :  { %v3690_v14 = vmul.f32 0.03125, %v3688_v63  ;;  %v5335_v63 = vld [vmem:[#allocation2 + $0x240] sm:$0xff] }
0x16eb   :  { %12277 = vmatprep.subr.bf16.mxu0 %v12276_v12 }
0x16ec   :  { %v3692_v60 = vsub.f32 %v3682_v54, %v3690_v14  ;;  %v5336_v14 = vld [vmem:[#allocation2 + $0x248] sm:$0xff]  ;;  %12279 = vmatpush3.bf16.msra.mxu0 %v12276_v12 }
0x16ed   :  { %11801 = vmatprep.subr.mxu0 %v12689_v13 }
0x16ee   :  { %v3694_v0 = vmul.f32 %v3692_v60, %v3692_v60 }
0x16f0   :  { %v3698_v61 = vsel %vm120_vm0, %v3694_v0, 0.0 }
0x16f1   :  { %3699 = vadd.xlane.f32.xlu0 %v3698_v61 }
0x1776   :  { %v3697_v3 = vpop.xlane.xlu0 %3696 }
0x1777   :  { %v3701_v1 = vmul.f32 0.03125, %v3697_v3 }
0x1779   :  { %v3703_v23 = vadd.f32 1e-05, %v3701_v1 }
0x177b   :  { %12506 = vrsqrt.f32 %v3703_v23 }
0x177e   :  { %v3700_v24 = vpop.xlane.xlu0 %3699 }
0x177f   :  { %v3702_v25 = vmul.f32 0.03125, %v3700_v24  ;;  %v11768_v26 = vpop.f32.mrb[50].mxu0 }
0x1780   :  { %v5282_v15 = vpop.f32.mrb[51].mxu0  ;;  %v5288_v34 = vadd.f32 %v11768_v26, %v10929_v20 }
0x1781   :  { %v3704_v27 = vadd.f32 1e-05, %v3702_v25  ;;  %v5283_v29 = vadd.f32 %v10929_v20, %v5282_v15 }
0x1782   :  { %v5292_v42 = vadd.f32 %v5288_v34, %v13213_v50 }
0x1783   :  { %12508 = vrsqrt.f32 %v3704_v27  ;;  %v5291_v35 = vadd.f32 %v5283_v29, %v13202_v45  ;;  %v10901_v29 = vld [vmem:[#allocation2 + $0x1d8] ss:$0 sm:$0xff] }
0x1784   :  { %v5296_v43 = vsel %vm120_vm0, %v5292_v42, 0.0 }
0x1785   :  { %v12507_v18 = vpop.eup %12506  ;;  %v5293_v36 = vsel %vm120_vm0, %v5291_v35, 0.0 }
0x1786   :  { %v3707_v17 = vmul.f32 %v12507_v18, %v3691_v21  ;;  %v12264_v21 = vpack.c.bf16 %v5334_v2, %v5333_v62 }
0x1788   :  { %v3714_v30 = vmul.f32 %v10898_v19, %v3707_v17  ;;  %12265 = vmatprep.subr.bf16.mxu1 %v12264_v21  ;;  %v10900_v17 = vld [vmem:[#allocation2 + $0x1d0] ss:$0 sm:$0xff] }
0x1789   :  { %12267 = vmatpush3.bf16.msra.mxu1 %v12264_v21 }
0x178a   :  { %v3721_v33 = vadd.f32 %v10899_v28, %v3714_v30 }
0x178c   :  { %v3723_v8 = vsel %vm120_vm0, %v3721_v33, 0.0 }
0x178d   :  { %v12509_v31 = vpop.eup %12508  ;;  %3724 = vadd.xlane.f32.xlu1 %v3723_v8 }
0x178e   :  { %v3708_v32 = vmul.f32 %v12509_v31, %v3692_v60  ;;  %v12268_v60 = vpack.c.bf16 %v5336_v14, %v5335_v63 }
0x1790   :  { %v3715_v38 = vmul.f32 %v10898_v19, %v3708_v32  ;;  %12269 = vmatprep.subr.bf16.mxu1 %v12268_v60  ;;  %v10933_v32 = vld [vmem:[#allocation2 + $0x320] ss:$0 sm:$0xff] }
0x1791   :  { %5294 = vadd.xlane.f32.xlu1 %v5293_v36  ;;  %12271 = vmatpush3.bf16.msra.mxu1 %v12268_v60 }
0x1792   :  { %v3722_v40 = vadd.f32 %v10899_v28, %v3715_v38  ;;  %11791 = vmatprep.subr.mxu1 %v12689_v13 }
0x1794   :  { %v3726_v39 = vsel %vm120_vm0, %v3722_v40, 0.0 }
0x1795   :  { %3727 = vadd.xlane.f32.xlu0 %v3726_v39 }
0x1799   :  { %5297 = vadd.xlane.f32.xlu0 %v5296_v43 }
0x181a   :  { %v3725_v45 = vpop.xlane.xlu1 %3724 }
0x181b   :  { %v3729_v44 = vmul.f32 0.03125, %v3725_v45 }
0x181d   :  { %v3731_v48 = vsub.f32 %v3721_v33, %v3729_v44 }
0x181e   :  { %v5295_v49 = vpop.xlane.xlu1 %5294 }
0x181f   :  { %v5299_v4 = vmul.f32 0.03125, %v5295_v49  ;;  %v3733_v9 = vmul.f32 %v3731_v48, %v3731_v48  ;;  %v10937_v49 = vld [vmem:[#allocation2 + $0x278] ss:$0 sm:$0xff] }
0x1821   :  { %v13445_v51 = vsub.f32 %v5291_v35, %v5299_v4  ;;  %v3735_v52 = vsel %vm120_vm0, %v3733_v9, 0.0  ;;  %v10932_v35 = vld [vmem:[#allocation2 + $0x318] ss:$0 sm:$0xff] }
0x1822   :  { %3736 = vadd.xlane.f32.xlu1 %v3735_v52  ;;  %v3728_v53 = vpop.xlane.xlu0 %3727 }
0x1823   :  { %v3730_v54 = vmul.f32 0.03125, %v3728_v53  ;;  %v5303_v50 = vmul.f32 %v13445_v51, %v13445_v51  ;;  %v10934_v53 = vld [vmem:[#allocation2 + $0x250] ss:$0 sm:$0xff] }
0x1825   :  { %v13450_v41 = vsub.f32 %v3722_v40, %v3730_v54  ;;  %v5305_v46 = vsel %vm120_vm0, %v5303_v50, 0.0 }
0x1826   :  { %5306 = vadd.xlane.f32.xlu1 %v5305_v46  ;;  %v5298_v55 = vpop.xlane.xlu0 %5297 }
0x1827   :  { %v5300_v56 = vmul.f32 0.03125, %v5298_v55  ;;  %v3734_v57 = vmul.f32 %v13450_v41, %v13450_v41 }
0x1829   :  { %v13455_v58 = vsub.f32 %v5292_v42, %v5300_v56  ;;  %v3738_v11 = vsel %vm120_vm0, %v3734_v57, 0.0 }
0x182a   :  { %3739 = vadd.xlane.f32.xlu0 %v3738_v11 }
0x182b   :  { %v5304_v59 = vmul.f32 %v13455_v58, %v13455_v58 }
0x182d   :  { %v5308_v37 = vsel %vm120_vm0, %v5304_v59, 0.0 }
0x182e   :  { %5309 = vadd.xlane.f32.xlu0 %v5308_v37 }
0x18af   :  { %v3737_v0 = vpop.xlane.xlu1 %3736 }
0x18b0   :  { %v3741_v61 = vmul.f32 0.03125, %v3737_v0 }
0x18b2   :  { %v3743_v3 = vadd.f32 1e-05, %v3741_v61 }
0x18b3   :  { %v5307_v1 = vpop.xlane.xlu1 %5306 }
0x18b4   :  { %12510 = vrsqrt.f32 %v3743_v3  ;;  %v5311_v23 = vmul.f32 0.03125, %v5307_v1 }
0x18b6   :  { %v5313_v24 = vadd.f32 1e-05, %v5311_v23 }
0x18b7   :  { %v3740_v25 = vpop.xlane.xlu0 %3739 }
0x18b8   :  { %12512 = vrsqrt.f32 %v5313_v24  ;;  %v3742_v26 = vmul.f32 0.03125, %v3740_v25 }
0x18ba   :  { %v3744_v15 = vadd.f32 1e-05, %v3742_v26 }
0x18bb   :  { %v5310_v27 = vpop.xlane.xlu0 %5309 }
0x18bc   :  { %12514 = vrsqrt.f32 %v3744_v15  ;;  %v5312_v18 = vmul.f32 0.03125, %v5310_v27 }
0x18be   :  { %v12511_v20 = vpop.eup %12510  ;;  %v5314_v19 = vadd.f32 1e-05, %v5312_v18 }
0x18bf   :  { %v3747_v28 = vmul.f32 %v12511_v20, %v3731_v48 }
0x18c0   :  { %12516 = vrsqrt.f32 %v5314_v19 }
0x18c1   :  { %v3754_v30 = vmul.f32 %v10900_v17, %v3747_v28 }
0x18c2   :  { %v12513_v33 = vpop.eup %12512 }
0x18c3   :  { %v13463_v8 = vadd.f32 %v10901_v29, %v3754_v30  ;;  %v5317_v31 = vmul.f32 %v12513_v33, %v13445_v51 }
0x18c5   :  { %11788 = vmatprep.mubr.msk.f32.mxu0 %vm120_vm0, %v13463_v8  ;;  %v5324_v34 = vmul.f32 %v10932_v35, %v5317_v31 }
0x18c6   :  { %v12515_v36 = vpop.eup %12514 }
0x18c7   :  { %v3748_v38 = vmul.f32 %v12515_v36, %v13450_v41  ;;  %v13469_v40 = vadd.f32 %v10933_v32, %v5324_v34 }
0x18c9   :  { %v3755_v42 = vmul.f32 %v10900_v17, %v3748_v38  ;;  %11777 = vmatprep.mubr.msk.f32.mxu1 %vm120_vm0, %v13469_v40 }
0x18ca   :  { %v12517_v39 = vpop.eup %12516 }
0x18cb   :  { %v13473_v43 = vadd.f32 %v10901_v29, %v3755_v42  ;;  %v5318_v45 = vmul.f32 %v12517_v39, %v13455_v58 }
0x18cd   :  { %v5325_v44 = vmul.f32 %v10932_v35, %v5318_v45  ;;  %11789 = vmatmul.mubr.msk.f32.vlgmr.msra.gmra.mrb[52].mxu0 %vm120_vm0, %v13473_v43 }
0x18ce   :  { %11803 = vmatprep.mubr.msk.f32.mxu0 %vm12692_vm1, %v12689_v13 }
0x18cf   :  { %v13480_v48 = vadd.f32 %v10933_v32, %v5325_v44 }
0x18d1   :  { %11778 = vmatmul.mubr.msk.f32.vlgmr.msra.gmra.mrb[64].mxu1 %vm120_vm0, %v13480_v48 }
0x18d2   :  { %11793 = vmatprep.mubr.msk.f32.mxu1 %vm12692_vm1, %v12689_v13 }
0x19a0   :  { %v11790_v4 = vpop.f32.mrb[52].mxu0 }
0x19a1   :  { %v13486_v9 = vadd.f32 %v11790_v4, %v10937_v49  ;;  %v5518_v51 = vpop.f32.mrb[53].mxu0 }
0x19a2   :  { %v13488_v52 = vadd.f32 %v10937_v49, %v5518_v51 }
0x19a3   :  { %5531 = vrot.lane.b32.xlu0 %v13486_v9, %s12691_s10 }
0x19a4   :  { %5529 = vrot.lane.b32.xlu1 %v13488_v52, %s12691_s10  ;;  %v11779_v54 = vpop.f32.mrb[64].mxu1  ;;  %11792 = vmatpush3.xpose.msk.msra.mxu1 %vm228_vm2, %v13488_v52 }
0x19a5   :  { %v5414_v50 = vpop.f32.mrb[65].mxu1  ;;  %11796 = vmatprep.subr.mxu1 %v12689_v13  ;;  %v5420_v46 = vadd.f32 %v11779_v54, %v10934_v53 }
0x19a6   :  { %v5415_v41 = vadd.f32 %v10934_v53, %v5414_v50 }
0x19a7   :  { %5533 = vrot.lane.b32.xlu0 %v13488_v52, %s12690_s0 }
0x19a8   :  { %5535 = vrot.lane.b32.xlu1 %v13486_v9, %s12690_s0  ;;  %11794 = vmatmul.mubr.msk.f32.vlgmr.msra.gmra.mrb[66].mxu1 %vm228_vm2, %v5415_v41 }
0x19a9   :  { %11797 = vmatpush3.xpose.msk.msra.mxu1 %vm228_vm2, %v13486_v9  ;;  %11798 = vmatprep.mubr.msk.f32.mxu1 %vm12692_vm1, %v12689_v13 }
0x19aa   :  { %11806 = vmatprep.subr.mxu1 %v12689_v13 }
0x19ab   :  { %5537 = vrot.lane.b32.xlu0 %v13488_v52, %s12693_s11 }
0x19ac   :  { %5427 = vrot.lane.b32.xlu1 %v5420_v46, %s12691_s10  ;;  %11799 = vmatmul.mubr.msk.f32.vlgmr.msra.gmra.mrb[68].mxu1 %vm228_vm2, %v5420_v46 }
0x19ad   :  { %11808 = vmatprep.mubr.msk.f32.mxu1 %vm12692_vm1, %v12689_v13 }
0x19af   :  { %5429 = vrot.lane.b32.xlu0 %v5415_v41, %s12690_s0 }
0x19b0   :  { %5425 = vrot.lane.b32.xlu1 %v5415_v41, %s12691_s10 }
0x19b3   :  { %5433 = vrot.lane.b32.xlu0 %v5415_v41, %s12693_s11 }
0x19b4   :  { %5431 = vrot.lane.b32.xlu1 %v5420_v46, %s12690_s0 }
0x19b8   :  { %5539 = vrot.lane.b32.xlu1 %v13486_v9, %s12693_s11 }
0x19bc   :  { %5435 = vrot.lane.b32.xlu1 %v5420_v46, %s12693_s11 }
0x1a15   :  { %v13520_v55 = vpop.permute.xlu0 %5531 }
0x1a16   :  { %v13522_v56 = vpop.permute.xlu1 %5529  ;;  %11807 = vmatpush3.xpose.msk.msra.mxu1 %vm228_vm2, %v13520_v55 }
0x1a17   :  { %11802 = vmatpush3.xpose.msk.msra.mxu0 %vm228_vm2, %v13522_v56  ;;  %11816 = vmatprep.subr.mxu1 %v12689_v13 }
0x1a18   :  { %11811 = vmatprep.subr.mxu0 %v12689_v13 }
0x1a19   :  { %v13530_v57 = vpop.permute.xlu0 %5533 }
0x1a1a   :  { %v13532_v58 = vpop.permute.xlu1 %5535 }
0x1a1d   :  { %v13534_v11 = vpop.permute.xlu0 %5537 }
0x1a1e   :  { %v5428_v59 = vpop.permute.xlu1 %5427 }
0x1a1f   :  { %11809 = vmatmul.mubr.msk.f32.vlgmr.msra.gmra.mrb[70].mxu1 %vm228_vm2, %v5428_v59 }
0x1a20   :  { %11817 = vmatpush3.xpose.msk.msra.mxu1 %vm228_vm2, %v13532_v58  ;;  %11818 = vmatprep.mubr.msk.f32.mxu1 %vm12692_vm1, %v12689_v13 }
0x1a21   :  { %11826 = vmatprep.subr.mxu1 %v12689_v13  ;;  %v5430_v7 = vpop.permute.xlu0 %5429 }
0x1a22   :  { %v5426_v37 = vpop.permute.xlu1 %5425 }
0x1a23   :  { %11804 = vmatmul.mubr.msk.f32.vlgmr.msra.gmra.mrb[54].mxu0 %vm228_vm2, %v5426_v37 }
0x1a24   :  { %11812 = vmatpush3.xpose.msk.msra.mxu0 %vm228_vm2, %v13530_v57  ;;  %11813 = vmatprep.mubr.msk.f32.mxu0 %vm12692_vm1, %v12689_v13 }
0x1a25   :  { %11821 = vmatprep.subr.mxu0 %v12689_v13  ;;  %v5434_v5 = vpop.permute.xlu0 %5433 }
0x1a26   :  { %v5432_v47 = vpop.permute.xlu1 %5431 }
0x1a27   :  { %11814 = vmatmul.mubr.msk.f32.vlgmr.msra.gmra.mrb[56].mxu0 %vm228_vm2, %v5430_v7  ;;  %11819 = vmatmul.mubr.msk.f32.vlgmr.msra.gmra.mrb[72].mxu1 %vm228_vm2, %v5432_v47 }
0x1a28   :  { %11822 = vmatpush3.xpose.msk.msra.mxu0 %vm228_vm2, %v13534_v11  ;;  %11823 = vmatprep.mubr.msk.f32.mxu0 %vm12692_vm1, %v12689_v13 }
0x1a29   :  { %11828 = vmatprep.mubr.msk.f32.mxu1 %vm12692_vm1, %v12689_v13  ;;  %11831 = vmatprep.subr.mxu0 %v12689_v13 }
0x1a2a   :  { %v13557_v62 = vpop.permute.xlu1 %5539 }
0x1a2b   :  { %11824 = vmatmul.mubr.msk.f32.vlgmr.msra.gmra.mrb[58].mxu0 %vm228_vm2, %v5434_v5  ;;  %11827 = vmatpush3.xpose.msk.msra.mxu1 %vm228_vm2, %v13557_v62 }
0x1a2c   :  { %11836 = vmatprep.subr.mxu1 %v12689_v13  ;;  %11833 = vmatprep.mubr.msk.f32.mxu0 %vm12692_vm1, %v12689_v13 }
0x1a2e   :  { %v5436_v2 = vpop.permute.xlu1 %5435 }
0x1a2f   :  { %11829 = vmatmul.mubr.msk.f32.vlgmr.msra.gmra.mrb[74].mxu1 %vm228_vm2, %v5436_v2 }
0x1a30   :  { %11838 = vmatprep.mubr.msk.f32.mxu1 %vm12692_vm1, %v12689_v13 }
0x1a7b   :  { %v5611_v6 = vpop.f32.mrb[66].mxu1 }
0x1a7c   :  { %v11795_v21 = vpop.f32.mrb[67].mxu1  ;;  %v6133_v22 = vsel %vm228_vm2, %v5611_v6, -inf }
0x1a7d   :  { %6134 = vmax.xlane.f32.xlu0 %v6133_v22 }
0x1a7f   :  { %v5685_v12 = vpop.f32.mrb[68].mxu1 }
0x1a80   :  { %v11800_v63 = vpop.f32.mrb[69].mxu1  ;;  %v6136_v14 = vsel %vm228_vm2, %v5685_v12, -inf }
0x1a81   :  { %6137 = vmax.xlane.f32.xlu1 %v6136_v14 }
0x1af2   :  { %v5833_v60 = vpop.f32.mrb[70].mxu1 }
0x1af3   :  { %v11810_v0 = vpop.f32.mrb[71].mxu1  ;;  %v6142_v15 = vsel %vm228_vm2, %v5833_v60, -inf }
0x1af6   :  { %v5759_v61 = vpop.f32.mrb[54].mxu0 }
0x1af7   :  { %v11805_v3 = vpop.f32.mrb[55].mxu0  ;;  %v6139_v1 = vsel %vm228_vm2, %v5759_v61, -inf }
0x1af8   :  { %6140 = vmax.xlane.f32.xlu0 %v6139_v1 }
0x1afa   :  { %v5907_v23 = vpop.f32.mrb[56].mxu0  ;;  %v5981_v24 = vpop.f32.mrb[72].mxu1 }
0x1afb   :  { %v11815_v25 = vpop.f32.mrb[57].mxu0  ;;  %v11820_v26 = vpop.f32.mrb[73].mxu1  ;;  %v6145_v27 = vsel %vm228_vm2, %v5907_v23, -inf  ;;  %v6148_v19 = vsel %vm228_vm2, %v5981_v24, -inf }
0x1afc   :  { %6143 = vmax.xlane.f32.xlu0 %v6142_v15  ;;  %6146 = vmax.xlane.f32.xlu1 %v6145_v27 }
0x1afe   :  { %v6055_v18 = vpop.f32.mrb[58].mxu0 }
0x1aff   :  { %v11825_v20 = vpop.f32.mrb[59].mxu0  ;;  %v6151_v17 = vsel %vm228_vm2, %v6055_v18, -inf }
0x1b00   :  { %6149 = vmax.xlane.f32.xlu0 %v6148_v19  ;;  %6152 = vmax.xlane.f32.xlu1 %v6151_v17 }
0x1b02   :  { %v6129_v28 = vpop.f32.mrb[74].mxu1 }
0x1b03   :  { %v11830_v29 = vpop.f32.mrb[75].mxu1  ;;  %v6154_v30 = vsel %vm228_vm2, %v6129_v28, -inf }
0x1b04   :  { %6155 = vmax.xlane.f32.xlu0 %v6154_v30 }
0x1b0a   :  { %v6135_v31 = vpop.xlane.xlu0 %6134 }
0x1b0b   :  { %v6157_v32 = vsub.f32 %v5611_v6, %v6135_v31 }
0x1b0d   :  { %v6165_v36 = vmul.f32 1.442695, %v6157_v32 }
0x1b0e   :  { %v6138_v33 = vpop.xlane.xlu1 %6137 }
0x1b0f   :  { %v6158_v35 = vsub.f32 %v5685_v12, %v6138_v33 }
0x1b11   :  { %6221 = vrot.lane.b32.xlu1 %v13488_v52, %s12694_s12  ;;  %v6167_v34 = vmul.f32 1.442695, %v6158_v35 }
0x1b13   :  { %12518 = vpow2.f32 %v6167_v34 }
0x1b14   :  { %12520 = vpow2.f32 %v6165_v36 }
0x1b15   :  { %6373 = vrot.lane.b32.xlu1 %v13522_v56, %s12694_s12 }
0x1b19   :  { %6449 = vrot.lane.b32.xlu1 %v13520_v55, %s12694_s12 }
0x1b1a   :  { %6297 = vrot.lane.b32.xlu0 %v13486_v9, %s12694_s12 }
0x1b1d   :  { %6601 = vrot.lane.b32.xlu1 %v13532_v58, %s12694_s12  ;;  %v13588_v38 = vpop.eup %12518 }
0x1b1e   :  { %6525 = vrot.lane.b32.xlu0 %v13530_v57, %s12694_s12  ;;  %v6184_v42 = vsel %vm228_vm2, %v13588_v38, 0.0  ;;  %v13592_v39 = vpop.eup %12520 }
0x1b1f   :  { %v6181_v45 = vsel %vm228_vm2, %v13592_v39, 0.0 }
0x1b3d   :  { %6185 = vadd.xlane.f32.xlu0 %v6184_v42 }
0x1b41   :  { %6182 = vadd.xlane.f32.xlu1 %v6181_v45 }
0x1b85   :  { %v6141_v44 = vpop.xlane.xlu0 %6140 }
0x1b86   :  { %v6159_v49 = vsub.f32 %v5759_v61, %v6141_v44 }
0x1b88   :  { %v6169_v4 = vmul.f32 1.442695, %v6159_v49 }
0x1b89   :  { %v6147_v9 = vpop.xlane.xlu1 %6146  ;;  %v6144_v51 = vpop.xlane.xlu0 %6143 }
0x1b8a   :  { %12522 = vpow2.f32 %v6169_v4  ;;  %v6161_v52 = vsub.f32 %v5907_v23, %v6147_v9  ;;  %v6160_v53 = vsub.f32 %v5833_v60, %v6144_v51 }
0x1b8c   :  { %v6173_v54 = vmul.f32 1.442695, %v6161_v52  ;;  %v6171_v50 = vmul.f32 1.442695, %v6160_v53 }
0x1b8d   :  { %v6153_v41 = vpop.xlane.xlu1 %6152  ;;  %v6150_v46 = vpop.xlane.xlu0 %6149 }
0x1b8e   :  { %12524 = vpow2.f32 %v6173_v54  ;;  %v6163_v55 = vsub.f32 %v6055_v18, %v6153_v41  ;;  %v6162_v56 = vsub.f32 %v5981_v24, %v6150_v46  ;;  %v6859_v41 = vld [vmem:[#allocation2 + $0x280] sm:$0xff]  ;;  %v6860_v46 = vld [vmem:[#allocation2 + $0x288] sm:$0xff] }
0x1b8f   :  { %12526 = vpow2.f32 %v6171_v50 }
0x1b90   :  { %v6177_v57 = vmul.f32 1.442695, %v6163_v55  ;;  %v6175_v58 = vmul.f32 1.442695, %v6162_v56  ;;  %v12280_v55 = vpack.c.bf16 %v6860_v46, %v6859_v41  ;;  %v6861_v56 = vld [vmem:[#allocation2 + $0x290] sm:$0xff]  ;;  %v7086_v41 = vld [vmem:[#allocation2 + $0x2e8] sm:$0xff] }
0x1b91   :  { %v6222_v59 = vpop.permute.xlu1 %6221  ;;  %v6156_v37 = vpop.xlane.xlu0 %6155 }
0x1b92   :  { %12528 = vpow2.f32 %v6177_v57  ;;  %v6164_v7 = vsub.f32 %v6129_v28, %v6156_v37  ;;  %11832 = vmatpush3.msra.mxu0 %v6222_v59  ;;  %v6862_v57 = vld [vmem:[#allocation2 + $0x298] sm:$0xff] }
0x1b93   :  { %12530 = vpow2.f32 %v6175_v58  ;;  %11841 = vmatprep.subr.mxu0 %v12689_v13  ;;  %v12284_v58 = vpack.c.bf16 %v6862_v57, %v6861_v56  ;;  %v7088_v56 = vld [vmem:[#allocation2 + $0x2f8] sm:$0xff] }
0x1b94   :  { %v12523_v47 = vpop.eup %12522  ;;  %v6179_v5 = vmul.f32 1.442695, %v6164_v7 }
0x1b95   :  { %v6298_v2 = vpop.permute.xlu0 %6297  ;;  %v6187_v6 = vsel %vm228_vm2, %v12523_v47, 0.0  ;;  %v6374_v23 = vpop.permute.xlu1 %6373 }
0x1b96   :  { %12532 = vpow2.f32 %v6179_v5  ;;  %6188 = vadd.xlane.f32.xlu1 %v6187_v6  ;;  %11837 = vmatpush3.msra.mxu1 %v6298_v2 }
0x1b97   :  { %11846 = vmatprep.subr.mxu1 %v12689_v13 }
0x1b98   :  { %v12525_v21 = vpop.eup %12524 }
0x1b99   :  { %v12527_v22 = vpop.eup %12526  ;;  %v6193_v12 = vsel %vm228_vm2, %v12525_v21, 0.0  ;;  %v6450_v24 = vpop.permute.xlu1 %6449 }
0x1b9a   :  { %6194 = vadd.xlane.f32.xlu1 %v6193_v12  ;;  %v6190_v63 = vsel %vm228_vm2, %v12527_v22, 0.0  ;;  %v6526_v25 = vpop.permute.xlu0 %6525 }
0x1b9b   :  { %6191 = vadd.xlane.f32.xlu0 %v6190_v63 }
0x1b9c   :  { %v12529_v14 = vpop.eup %12528 }
0x1b9d   :  { %v13601_v60 = vpop.eup %12530  ;;  %v6199_v0 = vsel %vm228_vm2, %v12529_v14, 0.0  ;;  %v6602_v26 = vpop.permute.xlu1 %6601 }
0x1b9e   :  { %6200 = vadd.xlane.f32.xlu1 %v6199_v0  ;;  %v6196_v61 = vsel %vm228_vm2, %v13601_v60, 0.0 }
0x1b9f   :  { %6197 = vadd.xlane.f32.xlu0 %v6196_v61 }
0x1ba0   :  { %v13606_v3 = vpop.eup %12532 }
0x1ba1   :  { %v6202_v1 = vsel %vm228_vm2, %v13606_v3, 0.0 }
0x1ba3   :  { %6203 = vadd.xlane.f32.xlu0 %v6202_v1 }
0x1baf   :  { %6753 = vrot.lane.b32.xlu1 %v13557_v62, %s12694_s12 }
0x1bb9   :  { %6677 = vrot.lane.b32.xlu0 %v13534_v11, %s12694_s12 }
0x1bca   :  { %v6186_v15 = vpop.xlane.xlu0 %6185 }
0x1bcb   :  { %12534 = vrcp.f32 %v6186_v15 }
0x1bce   :  { %v6183_v27 = vpop.xlane.xlu1 %6182 }
0x1bcf   :  { %12536 = vrcp.f32 %v6183_v27 }
0x1bd5   :  { %v12535_v18 = vpop.eup %12534 }
0x1bd6   :  { %v6214_v20 = vmul.f32 %v12535_v18, %v13588_v38 }
0x1bd8   :  { %11839 = vmatmul.mubr.msk.f32.vlgmr.msra.gmra.mrb[76].mxu1 %vm228_vm2, %v6214_v20  ;;  %v10964_v20 = vld [vmem:[#allocation2 + $0x2a0] ss:$0 sm:$0xff] }
0x1bd9   :  { %v12537_v19 = vpop.eup %12536  ;;  %11847 = vmatpush3.msra.mxu1 %v6450_v24  ;;  %11848 = vmatprep.mubr.msk.f32.mxu1 %vm12692_vm1, %v12689_v13 }
0x1bda   :  { %v6213_v11 = vmul.f32 %v12537_v19, %v13592_v39  ;;  %11856 = vmatprep.subr.mxu1 %v12689_v13 }
0x1bdc   :  { %11834 = vmatmul.mubr.msk.f32.vlgmr.msra.gmra.mrb[60].mxu0 %vm228_vm2, %v6213_v11 }
0x1bdd   :  { %11842 = vmatpush3.msra.mxu0 %v6374_v23  ;;  %11843 = vmatprep.mubr.msk.f32.mxu0 %vm12692_vm1, %v12689_v13 }
0x1bde   :  { %11851 = vmatprep.subr.mxu0 %v12689_v13 }
0x1c23   :  { %v6189_v62 = vpop.xlane.xlu1 %6188 }
0x1c24   :  { %12538 = vrcp.f32 %v6189_v62 }
0x1c27   :  { %v6195_v17 = vpop.xlane.xlu1 %6194 }
0x1c28   :  { %12540 = vrcp.f32 %v6195_v17  ;;  %v6192_v28 = vpop.xlane.xlu0 %6191 }
0x1c29   :  { %12542 = vrcp.f32 %v6192_v28 }
0x1c2b   :  { %v6201_v29 = vpop.xlane.xlu1 %6200 }
0x1c2c   :  { %12544 = vrcp.f32 %v6201_v29  ;;  %v6198_v30 = vpop.xlane.xlu0 %6197 }
0x1c2d   :  { %12546 = vrcp.f32 %v6198_v30 }
0x1c2e   :  { %v12539_v33 = vpop.eup %12538 }
0x1c2f   :  { %v6215_v35 = vmul.f32 %v12539_v33, %v12523_v47  ;;  %v6754_v4 = vpop.permute.xlu1 %6753 }
0x1c30   :  { %v6204_v31 = vpop.xlane.xlu0 %6203 }
0x1c31   :  { %12548 = vrcp.f32 %v6204_v31  ;;  %11844 = vmatmul.mubr.msk.f32.vlgmr.msra.gmra.mrb[62].mxu0 %vm228_vm2, %v6215_v35 }
0x1c32   :  { %v12541_v32 = vpop.eup %12540  ;;  %11852 = vmatpush3.msra.mxu0 %v6526_v25  ;;  %11853 = vmatprep.mubr.msk.f32.mxu0 %vm12692_vm1, %v12689_v13 }
0x1c33   :  { %v12543_v34 = vpop.eup %12542  ;;  %11861 = vmatprep.subr.mxu0 %v12689_v13  ;;  %v6217_v36 = vmul.f32 %v12541_v32, %v12525_v21 }
0x1c34   :  { %v6678_v38 = vpop.permute.xlu0 %6677  ;;  %v6216_v42 = vmul.f32 %v12543_v34, %v12527_v22 }
0x1c35   :  { %11854 = vmatmul.mubr.msk.f32.vlgmr.msra.gmra.mrb[64].mxu0 %vm228_vm2, %v6217_v36 }
0x1c36   :  { %v12545_v39 = vpop.eup %12544  ;;  %11849 = vmatmul.mubr.msk.f32.vlgmr.msra.gmra.mrb[78].mxu1 %vm228_vm2, %v6216_v42  ;;  %11862 = vmatpush3.msra.mxu0 %v6678_v38 }
0x1c37   :  { %v12547_v45 = vpop.eup %12546  ;;  %11857 = vmatpush3.msra.mxu1 %v6602_v26  ;;  %11858 = vmatprep.mubr.msk.f32.mxu1 %vm12692_vm1, %v12689_v13  ;;  %v6219_v44 = vmul.f32 %v12545_v39, %v12529_v14 }
0x1c38   :  { %11863 = vmatprep.mubr.msk.f32.mxu0 %vm12692_vm1, %v12689_v13  ;;  %11866 = vmatprep.subr.mxu1 %v12689_v13  ;;  %v6218_v49 = vmul.f32 %v12547_v45, %v13601_v60 }
0x1c39   :  { %11864 = vmatmul.mubr.msk.f32.vlgmr.msra.gmra.mrb[66].mxu0 %vm228_vm2, %v6219_v44  ;;  %12281 = vmatprep.subr.bf16.mxu0 %v12280_v55  ;;  %v6992_v44 = vld [vmem:[#allocation2 + $0x2b0] sm:$0xff] }
0x1c3a   :  { %11859 = vmatmul.mubr.msk.f32.vlgmr.msra.gmra.mrb[80].mxu1 %vm228_vm2, %v6218_v49  ;;  %12283 = vmatpush3.bf16.msra.mxu0 %v12280_v55  ;;  %v6993_v49 = vld [vmem:[#allocation2 + $0x2b8] sm:$0xff]  ;;  %v7087_v55 = vld [vmem:[#allocation2 + $0x2f0] sm:$0xff] }
0x1c3b   :  { %v12549_v9 = vpop.eup %12548  ;;  %11867 = vmatpush3.msra.mxu1 %v6754_v4  ;;  %11868 = vmatprep.mubr.msk.f32.mxu1 %vm12692_vm1, %v12689_v13  ;;  %v12304_v57 = vpack.c.bf16 %v7088_v56, %v7087_v55 }
0x1c3c   :  { %v6220_v51 = vmul.f32 %v12549_v9, %v13606_v3  ;;  %12285 = vmatprep.subr.bf16.mxu0 %v12284_v58  ;;  %v6994_v9 = vld [vmem:[#allocation2 + $0x2c0] sm:$0xff] }
0x1c3e   :  { %11869 = vmatmul.mubr.msk.f32.vlgmr.msra.gmra.mrb[82].mxu1 %vm228_vm2, %v6220_v51  ;;  %12287 = vmatpush3.bf16.msra.mxu0 %v12284_v58  ;;  %v12292_v51 = vpack.c.bf16 %v6994_v9, %v6993_v49  ;;  %v7220_v49 = vld [vmem:[#allocation2 + $0x350] sm:$0xff] }
0x1cab   :  { %v6369_v52 = vpop.f32.mrb[76].mxu1 }
0x1cac   :  { %v11840_v53 = vpop.f32.mrb[77].mxu1 }
0x1cad   :  { %v7084_v53 = vld [vmem:[#allocation2 + $0x2d8] sm:$0xff] }
0x1caf   :  { %v6293_v54 = vpop.f32.mrb[60].mxu0 }
0x1cb0   :  { %v11835_v50 = vpop.f32.mrb[61].mxu0 }
0x1d04   :  { %v6445_v59 = vpop.f32.mrb[62].mxu0 }
0x1d05   :  { %v11845_v37 = vpop.f32.mrb[63].mxu0  ;;  %6831 = vrot.lane.b32.xlu0 %v6445_v59, %s12688_s29 }
0x1d08   :  { %v6597_v7 = vpop.f32.mrb[64].mxu0 }
0x1d09   :  { %v6521_v47 = vpop.f32.mrb[78].mxu1  ;;  %6839 = vrot.lane.b32.xlu0 %v6597_v7, %s12697_s15  ;;  %v11855_v5 = vpop.f32.mrb[65].mxu0 }
0x1d0a   :  { %6833 = vrot.lane.b32.xlu1 %v6521_v47, %s12688_s29  ;;  %v11850_v2 = vpop.f32.mrb[79].mxu1 }
0x1d0c   :  { %v6749_v6 = vpop.f32.mrb[66].mxu0 }
0x1d0d   :  { %v6673_v21 = vpop.f32.mrb[80].mxu1  ;;  %6847 = vrot.lane.b32.xlu0 %v6749_v6, %s12698_s16  ;;  %v11865_v22 = vpop.f32.mrb[67].mxu0  ;;  %v10967_v6 = vld [vmem:[#allocation2 + $0x328] ss:$0 sm:$0xff] }
0x1d0e   :  { %6841 = vrot.lane.b32.xlu1 %v6673_v21, %s12697_s15  ;;  %v11860_v12 = vpop.f32.mrb[81].mxu1  ;;  %v10968_v22 = vld [vmem:[#allocation2 + $0x330] ss:$0 sm:$0xff] }
0x1d11   :  { %v6825_v63 = vpop.f32.mrb[82].mxu1 }
0x1d12   :  { %6849 = vrot.lane.b32.xlu1 %v6825_v63, %s12698_s16  ;;  %v11870_v14 = vpop.f32.mrb[83].mxu1 }
0x1d77   :  { %v6832_v60 = vpop.permute.xlu0 %6831 }
0x1d78   :  { %v6853_v3 = vsel %vm228_vm2, %v6293_v54, %v6832_v60  ;;  %v7085_v54 = vld [vmem:[#allocation2 + $0x2e0] sm:$0xff] }
0x1d79   :  { %v12300_v46 = vpack.c.bf16 %v7086_v41, %v7085_v54 }
0x1d7b   :  { %v6840_v0 = vpop.permute.xlu0 %6839 }
0x1d7c   :  { %v6834_v61 = vpop.permute.xlu1 %6833  ;;  %v6855_v1 = vsel %vm1557_vm3, %v6853_v3, %v6840_v0  ;;  %v7089_v3 = vld [vmem:[#allocation2 + $0x300] sm:$0xff] }
0x1d7d   :  { %v6854_v26 = vsel %vm228_vm2, %v6369_v52, %v6834_v61  ;;  %v7083_v52 = vld [vmem:[#allocation2 + $0x2d0] sm:$0xff] }
0x1d7e   :  { %v12296_v50 = vpack.c.bf16 %v7084_v53, %v7083_v52 }
0x1d7f   :  { %v6848_v23 = vpop.permute.xlu0 %6847 }
0x1d80   :  { %v6842_v24 = vpop.permute.xlu1 %6841  ;;  %v6857_v25 = vsel %vm1560_vm4, %v6855_v1, %v6848_v23  ;;  %12297 = vmatprep.subr.bf16.mxu0 %v12296_v50  ;;  %v7090_v1 = vld [vmem:[#allocation2 + $0x308] sm:$0xff] }
0x1d81   :  { %11879 = vmatprep.mubr.msk.f32.mxu0 %vm120_vm0, %v6857_v25  ;;  %v6856_v15 = vsel %vm1557_vm3, %v6854_v26, %v6842_v24  ;;  %v12308_v23 = vpack.c.bf16 %v7090_v1, %v7089_v3  ;;  %v10969_v24 = vld [vmem:[#allocation2 + $0x2c8] ss:$0 sm:$0xff] }
0x1d84   :  { %v6850_v27 = vpop.permute.xlu1 %6849 }
0x1d85   :  { %v6858_v18 = vsel %vm1560_vm4, %v6856_v15, %v6850_v27 }
0x1d86   :  { %11880 = vmatmul.mubr.msk.f32.vlgmr.msra.gmra.mrb[68].mxu0 %vm120_vm0, %v6858_v18 }
0x1d87   :  { %12299 = vmatpush3.bf16.msra.mxu0 %v12296_v50 }
0x1d88   :  { %12301 = vmatprep.subr.bf16.mxu0 %v12300_v46 }
0x1d8b   :  { %12303 = vmatpush3.bf16.msra.mxu0 %v12300_v46 }
0x1d8c   :  { %12305 = vmatprep.subr.bf16.mxu0 %v12304_v57 }
0x1d8f   :  { %12307 = vmatpush3.bf16.msra.mxu0 %v12304_v57  ;;  %v10975_v57 = vld [vmem:[#allocation2 + $0x338] ss:$0 sm:$0xff] }
0x1d90   :  { %12309 = vmatprep.subr.bf16.mxu0 %v12308_v23 }
0x1d93   :  { %12311 = vmatpush3.bf16.msra.mxu0 %v12308_v23 }
0x1d94   :  { %11933 = vmatprep.subr.mxu0 %v12689_v13 }
0x1e59   :  { %v11881_v19 = vpop.f32.mrb[68].mxu0 }
0x1e5a   :  { %v6946_v11 = vadd.f32 %v11881_v19, %v10964_v20  ;;  %v6940_v62 = vpop.f32.mrb[69].mxu0  ;;  %v10972_v19 = vld [vmem:[#allocation2 + $0x310] ss:$0 sm:$0xff] }
0x1e5b   :  { %v6941_v17 = vadd.f32 %v10964_v20, %v6940_v62 }
0x1e5c   :  { %v6950_v28 = vadd.f32 %v6946_v11, %v13480_v48 }
0x1e5d   :  { %v6949_v29 = vadd.f32 %v6941_v17, %v13469_v40  ;;  %v6991_v40 = vld [vmem:[#allocation2 + $0x2a8] sm:$0xff] }
0x1e5e   :  { %v6954_v30 = vsel %vm120_vm0, %v6950_v28, 0.0  ;;  %v12288_v4 = vpack.c.bf16 %v6992_v44, %v6991_v40  ;;  %v7219_v44 = vld [vmem:[#allocation2 + $0x348] sm:$0xff] }
0x1e5f   :  { %6955 = vadd.xlane.f32.xlu1 %v6954_v30  ;;  %v6951_v33 = vsel %vm120_vm0, %v6949_v29, 0.0  ;;  %v12312_v9 = vpack.c.bf16 %v7220_v49, %v7219_v44 }
0x1e60   :  { %6952 = vadd.xlane.f32.xlu0 %v6951_v33  ;;  %12289 = vmatprep.subr.bf16.mxu1 %v12288_v4 }
0x1e61   :  { %12291 = vmatpush3.bf16.msra.mxu1 %v12288_v4  ;;  %v7221_v4 = vld [vmem:[#allocation2 + $0x358] sm:$0xff] }
0x1e62   :  { %12293 = vmatprep.subr.bf16.mxu1 %v12292_v51 }
0x1e65   :  { %12295 = vmatpush3.bf16.msra.mxu1 %v12292_v51  ;;  %v7222_v51 = vld [vmem:[#allocation2 + $0x360] sm:$0xff] }
0x1e66   :  { %v12316_v52 = vpack.c.bf16 %v7222_v51, %v7221_v4  ;;  %12313 = vmatprep.subr.bf16.mxu1 %v12312_v9 }
0x1eec   :  { %v6956_v35 = vpop.xlane.xlu1 %6955 }
0x1eed   :  { %v6958_v31 = vmul.f32 0.03125, %v6956_v35  ;;  %v6953_v32 = vpop.xlane.xlu0 %6952 }
0x1eee   :  { %v6957_v34 = vmul.f32 0.03125, %v6953_v32 }
0x1eef   :  { %v6960_v36 = vsub.f32 %v6950_v28, %v6958_v31 }
0x1ef0   :  { %v6959_v38 = vsub.f32 %v6949_v29, %v6957_v34 }
0x1ef1   :  { %v6962_v45 = vmul.f32 %v6960_v36, %v6960_v36 }
0x1ef2   :  { %v6961_v42 = vmul.f32 %v6959_v38, %v6959_v38 }
0x1ef3   :  { %v6966_v48 = vsel %vm120_vm0, %v6962_v45, 0.0 }
0x1ef4   :  { %v6963_v39 = vsel %vm120_vm0, %v6961_v42, 0.0 }
0x1ef5   :  { %6964 = vadd.xlane.f32.xlu0 %v6963_v39 }
0x1ef9   :  { %6967 = vadd.xlane.f32.xlu0 %v6966_v48 }
0x1f82   :  { %v6965_v58 = vpop.xlane.xlu0 %6964 }
0x1f83   :  { %v6969_v59 = vmul.f32 0.03125, %v6965_v58 }
0x1f85   :  { %v6971_v37 = vadd.f32 1e-05, %v6969_v59 }
0x1f86   :  { %v6968_v7 = vpop.xlane.xlu0 %6967 }
0x1f87   :  { %12550 = vrsqrt.f32 %v6971_v37  ;;  %v6970_v47 = vmul.f32 0.03125, %v6968_v7 }
0x1f89   :  { %v6972_v5 = vadd.f32 1e-05, %v6970_v47  ;;  %v10976_v47 = vld [vmem:[#allocation2 + $0x340] ss:$0 sm:$0xff] }
0x1f8b   :  { %12552 = vrsqrt.f32 %v6972_v5 }
0x1f91   :  { %v12551_v2 = vpop.eup %12550 }
0x1f92   :  { %v6975_v21 = vmul.f32 %v12551_v2, %v6959_v38 }
0x1f94   :  { %v6982_v12 = vmul.f32 %v10967_v6, %v6975_v21  ;;  %v10977_v21 = vld [vmem:[#allocation2 + $0x368] ss:$0 sm:$0xff] }
0x1f95   :  { %v12553_v63 = vpop.eup %12552 }
0x1f96   :  { %v6976_v14 = vmul.f32 %v12553_v63, %v6960_v36  ;;  %v6989_v60 = vadd.f32 %v10968_v22, %v6982_v12 }
0x1f98   :  { %v6983_v0 = vmul.f32 %v10967_v6, %v6976_v14  ;;  %11890 = vmatprep.mubr.msk.f32.mxu1 %vm120_vm0, %v6989_v60 }
0x1f9a   :  { %v6990_v61 = vadd.f32 %v10968_v22, %v6983_v0 }
0x1f9c   :  { %11891 = vmatmul.mubr.msk.f32.vlgmr.msra.gmra.mrb[84].mxu1 %vm120_vm0, %v6990_v61 }
0x1f9d   :  { %12315 = vmatpush3.bf16.msra.mxu1 %v12312_v9 }
0x1f9e   :  { %12317 = vmatprep.subr.bf16.mxu1 %v12316_v52 }
0x1fa1   :  { %12319 = vmatpush3.bf16.msra.mxu1 %v12316_v52 }
0x1fa2   :  { %11923 = vmatprep.subr.mxu1 %v12689_v13 }
0x206f   :  { %v11892_v25 = vpop.f32.mrb[84].mxu1 }
0x2070   :  { %v7078_v26 = vadd.f32 %v11892_v25, %v10969_v24  ;;  %v7072_v15 = vpop.f32.mrb[85].mxu1 }
0x2071   :  { %v7073_v27 = vadd.f32 %v10969_v24, %v7072_v15 }
0x2072   :  { %v7082_v20 = vmax.f32 %v7078_v26, 0.0 }
0x2073   :  { %v7081_v18 = vmax.f32 %v7073_v27, 0.0 }
0x2075   :  { %11909 = vmatprep.mubr.msk.f32.mxu0 %vm1801_vm5, %v7081_v18 }
0x2076   :  { %11910 = vmatmul.mubr.msk.f32.vlgmr.msra.gmra.mrb[70].mxu0 %vm1801_vm5, %v7082_v20 }
0x2077   :  { %11935 = vmatprep.mubr.msk.f32.mxu0 %vm12692_vm1, %v12689_v13 }
0x2149   :  { %v11911_v11 = vpop.f32.mrb[70].mxu0 }
0x214a   :  { %v7174_v62 = vadd.f32 %v11911_v11, %v10972_v19  ;;  %v7168_v17 = vpop.f32.mrb[71].mxu0 }
0x214b   :  { %v7169_v28 = vadd.f32 %v10972_v19, %v7168_v17 }
0x214c   :  { %v7178_v29 = vadd.f32 %v7174_v62, %v6990_v61 }
0x214d   :  { %v7177_v30 = vadd.f32 %v7169_v28, %v6989_v60 }
0x214e   :  { %v7182_v33 = vsel %vm120_vm0, %v7178_v29, 0.0 }
0x214f   :  { %7183 = vadd.xlane.f32.xlu0 %v7182_v33  ;;  %v7179_v35 = vsel %vm120_vm0, %v7177_v30, 0.0 }
0x2150   :  { %7180 = vadd.xlane.f32.xlu1 %v7179_v35 }
0x21dc   :  { %v7184_v31 = vpop.xlane.xlu0 %7183 }
0x21dd   :  { %v7186_v32 = vmul.f32 0.03125, %v7184_v31  ;;  %v7181_v34 = vpop.xlane.xlu1 %7180 }
0x21de   :  { %v7185_v36 = vmul.f32 0.03125, %v7181_v34 }
0x21df   :  { %v7188_v38 = vsub.f32 %v7178_v29, %v7186_v32 }
0x21e0   :  { %v7187_v42 = vsub.f32 %v7177_v30, %v7185_v36 }
0x21e1   :  { %v7190_v39 = vmul.f32 %v7188_v38, %v7188_v38 }
0x21e2   :  { %v7189_v45 = vmul.f32 %v7187_v42, %v7187_v42 }
0x21e3   :  { %v7194_v48 = vsel %vm120_vm0, %v7190_v39, 0.0 }
0x21e4   :  { %7195 = vadd.xlane.f32.xlu0 %v7194_v48  ;;  %v7191_v40 = vsel %vm120_vm0, %v7189_v45, 0.0 }
0x21e5   :  { %7192 = vadd.xlane.f32.xlu1 %v7191_v40 }
0x2271   :  { %v7196_v53 = vpop.xlane.xlu0 %7195 }
0x2272   :  { %v7198_v54 = vmul.f32 0.03125, %v7196_v53  ;;  %v7193_v50 = vpop.xlane.xlu1 %7192 }
0x2273   :  { %v7197_v41 = vmul.f32 0.03125, %v7193_v50 }
0x2274   :  { %v7200_v46 = vadd.f32 1e-05, %v7198_v54 }
0x2275   :  { %v7199_v55 = vadd.f32 1e-05, %v7197_v41 }
0x2276   :  { %12554 = vrsqrt.f32 %v7200_v46 }
0x2277   :  { %12556 = vrsqrt.f32 %v7199_v55 }
0x2280   :  { %v12555_v56 = vpop.eup %12554 }
0x2281   :  { %v12557_v58 = vpop.eup %12556  ;;  %v7204_v59 = vmul.f32 %v12555_v56, %v7188_v38 }
0x2282   :  { %v7203_v37 = vmul.f32 %v12557_v58, %v7187_v42 }
0x2283   :  { %v7211_v7 = vmul.f32 %v10975_v57, %v7204_v59 }
0x2284   :  { %v7210_v5 = vmul.f32 %v10975_v57, %v7203_v37 }
0x2285   :  { %v13676_v6 = vadd.f32 %v10976_v47, %v7211_v7 }
0x2286   :  { %v13674_v2 = vadd.f32 %v10976_v47, %v7210_v5 }
0x2288   :  { %11920 = vmatprep.mubr.msk.f32.mxu1 %vm120_vm0, %v13674_v2 }
0x2289   :  { %11921 = vmatmul.mubr.msk.f32.vlgmr.msra.gmra.mrb[86].mxu1 %vm120_vm0, %v13676_v6 }
0x228a   :  { %11925 = vmatprep.mubr.msk.f32.mxu1 %vm12692_vm1, %v12689_v13 }
0x235c   :  { %v11922_v22 = vpop.f32.mrb[86].mxu1 }
0x235d   :  { %v13684_v12 = vadd.f32 %v11922_v22, %v10977_v21  ;;  %v7300_v63 = vpop.f32.mrb[87].mxu1 }
0x235e   :  { %v13686_v14 = vadd.f32 %v10977_v21, %v7300_v63 }
0x235f   :  { %7313 = vrot.lane.b32.xlu0 %v13684_v12, %s12691_s10 }
0x2360   :  { %7311 = vrot.lane.b32.xlu1 %v13686_v14, %s12691_s10 }
0x2363   :  { %7319 = vrot.lane.b32.xlu0 %v13686_v14, %s12693_s11 }
0x2364   :  { %7315 = vrot.lane.b32.xlu1 %v13686_v14, %s12690_s0 }
0x2367   :  { %7323 = vrot.lane.b32.xlu0 %v13686_v14, %s12694_s12 }
0x2368   :  { %7317 = vrot.lane.b32.xlu1 %v13684_v12, %s12690_s0 }
0x236c   :  { %7321 = vrot.lane.b32.xlu1 %v13684_v12, %s12693_s11 }
0x2370   :  { %7399 = vrot.lane.b32.xlu1 %v13684_v12, %s12694_s12 }
0x23d1   :  { %v13704_v60 = vpop.permute.xlu0 %7313 }
0x23d2   :  { %7551 = vrot.lane.b32.xlu1 %v13704_v60, %s12694_s12  ;;  %v13708_v0 = vpop.permute.xlu1 %7311 }
0x23d3   :  { %7475 = vrot.lane.b32.xlu0 %v13708_v0, %s12694_s12 }
0x23d5   :  { %v13712_v61 = vpop.permute.xlu0 %7319 }
0x23d6   :  { %v13714_v3 = vpop.permute.xlu1 %7315 }
0x23d7   :  { %7627 = vrot.lane.b32.xlu0 %v13714_v3, %s12694_s12 }
0x23d9   :  { %v7324_v1 = vpop.permute.xlu0 %7323 }
0x23da   :  { %11924 = vmatpush3.xpose.msk.msra.mxu1 %vm228_vm2, %v7324_v1  ;;  %v13719_v23 = vpop.permute.xlu1 %7317 }
0x23db   :  { %7779 = vrot.lane.b32.xlu0 %v13712_v61, %s12694_s12  ;;  %7703 = vrot.lane.b32.xlu1 %v13719_v23, %s12694_s12 }
0x23dc   :  { %11928 = vmatprep.subr.mxu1 %v12689_v13 }
0x23dd   :  { %11926 = vmatmul.mubr.msk.f32.vlgmr.msra.gmra.mrb[88].mxu1 %vm228_vm2, %v13686_v14 }
0x23de   :  { %v13728_v24 = vpop.permute.xlu1 %7321  ;;  %11930 = vmatprep.mubr.msk.f32.mxu1 %vm12692_vm1, %v12689_v13 }
0x23df   :  { %7855 = vrot.lane.b32.xlu1 %v13728_v24, %s12694_s12 }
0x23e2   :  { %v7400_v25 = vpop.permute.xlu1 %7399 }
0x23e3   :  { %11929 = vmatpush3.xpose.msk.msra.mxu1 %vm228_vm2, %v7400_v25 }
0x23e4   :  { %11938 = vmatprep.subr.mxu1 %v12689_v13 }
0x23e6   :  { %11931 = vmatmul.mubr.msk.f32.vlgmr.msra.gmra.mrb[90].mxu1 %vm228_vm2, %v13684_v12 }
0x23e7   :  { %11940 = vmatprep.mubr.msk.f32.mxu1 %vm12692_vm1, %v12689_v13 }
0x2444   :  { %v7552_v26 = vpop.permute.xlu1 %7551 }
0x2445   :  { %v7476_v15 = vpop.permute.xlu0 %7475  ;;  %11939 = vmatpush3.xpose.msk.msra.mxu1 %vm228_vm2, %v7552_v26 }
0x2446   :  { %11934 = vmatpush3.xpose.msk.msra.mxu0 %vm228_vm2, %v7476_v15  ;;  %11948 = vmatprep.subr.mxu1 %v12689_v13 }
0x2447   :  { %11943 = vmatprep.subr.mxu0 %v12689_v13 }
0x2448   :  { %11941 = vmatmul.mubr.msk.f32.vlgmr.msra.gmra.mrb[92].mxu1 %vm228_vm2, %v13704_v60 }
0x2449   :  { %11936 = vmatmul.mubr.msk.f32.vlgmr.msra.gmra.mrb[72].mxu0 %vm228_vm2, %v13708_v0  ;;  %v7628_v27 = vpop.permute.xlu0 %7627  ;;  %11950 = vmatprep.mubr.msk.f32.mxu1 %vm12692_vm1, %v12689_v13 }
0x244a   :  { %11944 = vmatpush3.xpose.msk.msra.mxu0 %vm228_vm2, %v7628_v27  ;;  %11945 = vmatprep.mubr.msk.f32.mxu0 %vm12692_vm1, %v12689_v13 }
0x244b   :  { %11953 = vmatprep.subr.mxu0 %v12689_v13 }
0x244d   :  { %11946 = vmatmul.mubr.msk.f32.vlgmr.msra.gmra.mrb[74].mxu0 %vm228_vm2, %v13714_v3  ;;  %v7780_v18 = vpop.permute.xlu0 %7779  ;;  %v7704_v20 = vpop.permute.xlu1 %7703 }
0x244e   :  { %11949 = vmatpush3.xpose.msk.msra.mxu1 %vm228_vm2, %v7704_v20  ;;  %11954 = vmatpush3.xpose.msk.msra.mxu0 %vm228_vm2, %v7780_v18 }
0x244f   :  { %11955 = vmatprep.mubr.msk.f32.mxu0 %vm12692_vm1, %v12689_v13  ;;  %11958 = vmatprep.subr.mxu1 %v12689_v13 }
0x2450   :  { %11963 = vmatprep.subr.mxu0 %v12689_v13 }
0x2451   :  { %11951 = vmatmul.mubr.msk.f32.vlgmr.msra.gmra.mrb[94].mxu1 %vm228_vm2, %v13719_v23  ;;  %11956 = vmatmul.mubr.msk.f32.vlgmr.msra.gmra.mrb[76].mxu0 %vm228_vm2, %v13712_v61  ;;  %v7856_v19 = vpop.permute.xlu1 %7855 }
0x2452   :  { %11959 = vmatpush3.xpose.msk.msra.mxu1 %vm228_vm2, %v7856_v19  ;;  %11960 = vmatprep.mubr.msk.f32.mxu1 %vm12692_vm1, %v12689_v13 }
0x2453   :  { %11968 = vmatprep.subr.mxu1 %v12689_v13  ;;  %11965 = vmatprep.mubr.msk.f32.mxu0 %vm12692_vm1, %v12689_v13 }
0x2455   :  { %11961 = vmatmul.mubr.msk.f32.vlgmr.msra.gmra.mrb[96].mxu1 %vm228_vm2, %v13728_v24 }
0x2456   :  { %11970 = vmatprep.mubr.msk.f32.mxu1 %vm12692_vm1, %v12689_v13 }
0x24b0   :  { %v7395_v11 = vpop.f32.mrb[88].mxu1 }
0x24b1   :  { %v7396_v62 = vadd.f32 %v7395_v11, %v13329_v16  ;;  %v11927_v17 = vpop.f32.mrb[89].mxu1 }
0x24b3   :  { %v7931_v28 = vsel %vm228_vm2, %v7396_v62, -inf }
0x24b4   :  { %7932 = vmax.xlane.f32.xlu0 %v7931_v28 }
0x24b9   :  { %v7471_v29 = vpop.f32.mrb[90].mxu1 }
0x24ba   :  { %v7472_v30 = vadd.f32 %v7471_v29, %v13335_v10  ;;  %v11932_v33 = vpop.f32.mrb[91].mxu1 }
0x24bc   :  { %v7934_v35 = vsel %vm228_vm2, %v7472_v30, -inf }
0x24bd   :  { %7935 = vmax.xlane.f32.xlu1 %v7934_v35 }
0x251b   :  { %v7623_v31 = vpop.f32.mrb[92].mxu1 }
0x251c   :  { %v7547_v32 = vpop.f32.mrb[72].mxu0  ;;  %v11942_v34 = vpop.f32.mrb[93].mxu1  ;;  %v7624_v42 = vadd.f32 %v7623_v31, %v13335_v10 }
0x251d   :  { %v7548_v36 = vadd.f32 %v7547_v32, %v13329_v16  ;;  %v11937_v38 = vpop.f32.mrb[73].mxu0 }
0x251e   :  { %v7940_v49 = vsel %vm228_vm2, %v7624_v42, -inf }
0x251f   :  { %v7937_v39 = vsel %vm228_vm2, %v7548_v36, -inf }
0x2520   :  { %7938 = vmax.xlane.f32.xlu0 %v7937_v39  ;;  %v7699_v45 = vpop.f32.mrb[74].mxu0 }
0x2521   :  { %v7700_v48 = vadd.f32 %v7699_v45, %v13329_v16  ;;  %v11947_v40 = vpop.f32.mrb[75].mxu0 }
0x2523   :  { %v7943_v44 = vsel %vm228_vm2, %v7700_v48, -inf }
0x2524   :  { %v7851_v4 = vpop.f32.mrb[76].mxu0  ;;  %7944 = vmax.xlane.f32.xlu1 %v7943_v44  ;;  %7941 = vmax.xlane.f32.xlu0 %v7940_v49  ;;  %v7775_v9 = vpop.f32.mrb[94].mxu1 }
0x2525   :  { %v7852_v51 = vadd.f32 %v7851_v4, %v13329_v16  ;;  %v7776_v52 = vadd.f32 %v7775_v9, %v13335_v10  ;;  %v11952_v53 = vpop.f32.mrb[95].mxu1  ;;  %v11957_v54 = vpop.f32.mrb[77].mxu0 }
0x2527   :  { %v7949_v50 = vsel %vm228_vm2, %v7852_v51, -inf  ;;  %v7946_v41 = vsel %vm228_vm2, %v7776_v52, -inf }
0x2528   :  { %7950 = vmax.xlane.f32.xlu1 %v7949_v50  ;;  %7947 = vmax.xlane.f32.xlu0 %v7946_v41  ;;  %v7927_v46 = vpop.f32.mrb[96].mxu1 }
0x2529   :  { %v7928_v55 = vadd.f32 %v7927_v46, %v13335_v10  ;;  %v11962_v56 = vpop.f32.mrb[97].mxu1 }
0x252b   :  { %v7952_v57 = vsel %vm228_vm2, %v7928_v55, -inf }
0x252c   :  { %7953 = vmax.xlane.f32.xlu0 %v7952_v57 }
0x2539   :  { %8019 = vrot.lane.b32.xlu1 %v13686_v14, %s12696_s2 }
0x253d   :  { %8171 = vrot.lane.b32.xlu1 %v13708_v0, %s12696_s2 }
0x2541   :  { %8247 = vrot.lane.b32.xlu1 %v13704_v60, %s12696_s2  ;;  %v7933_v58 = vpop.xlane.xlu0 %7932 }
0x2542   :  { %8095 = vrot.lane.b32.xlu0 %v13684_v12, %s12696_s2  ;;  %v7955_v59 = vsub.f32 %v7396_v62, %v7933_v58 }
0x2544   :  { %v7963_v7 = vmul.f32 1.442695, %v7955_v59 }
0x2545   :  { %8399 = vrot.lane.b32.xlu1 %v13719_v23, %s12696_s2 }
0x2546   :  { %8323 = vrot.lane.b32.xlu0 %v13714_v3, %s12696_s2 }
0x254a   :  { %v7936_v16 = vpop.xlane.xlu1 %7935 }
0x254b   :  { %v7956_v10 = vsub.f32 %v7472_v30, %v7936_v16 }
0x254d   :  { %v7965_v37 = vmul.f32 1.442695, %v7956_v10 }
0x254f   :  { %12558 = vpow2.f32 %v7965_v37 }
0x2550   :  { %12560 = vpow2.f32 %v7963_v7 }
0x2559   :  { %v13804_v47 = vpop.eup %12558 }
0x255a   :  { %v7982_v5 = vsel %vm228_vm2, %v13804_v47, 0.0  ;;  %v13808_v21 = vpop.eup %12560 }
0x255b   :  { %v7979_v22 = vsel %vm228_vm2, %v13808_v21, 0.0 }
0x2565   :  { %7983 = vadd.xlane.f32.xlu0 %v7982_v5 }
0x2569   :  { %7980 = vadd.xlane.f32.xlu1 %v7979_v22 }
0x25ad   :  { %v7939_v12 = vpop.xlane.xlu0 %7938 }
0x25ae   :  { %v7957_v63 = vsub.f32 %v7548_v36, %v7939_v12 }
0x25b0   :  { %v7967_v14 = vmul.f32 1.442695, %v7957_v63 }
0x25b1   :  { %v7942_v60 = vpop.xlane.xlu0 %7941  ;;  %v7945_v0 = vpop.xlane.xlu1 %7944 }
0x25b2   :  { %12562 = vpow2.f32 %v7967_v14  ;;  %v7958_v3 = vsub.f32 %v7624_v42, %v7942_v60  ;;  %v7959_v1 = vsub.f32 %v7700_v48, %v7945_v0 }
0x25b4   :  { %v7969_v23 = vmul.f32 1.442695, %v7958_v3  ;;  %v7971_v25 = vmul.f32 1.442695, %v7959_v1 }
0x25b5   :  { %v7948_v26 = vpop.xlane.xlu0 %7947  ;;  %v7951_v15 = vpop.xlane.xlu1 %7950 }
0x25b6   :  { %12564 = vpow2.f32 %v7969_v23  ;;  %v7960_v27 = vsub.f32 %v7776_v52, %v7948_v26  ;;  %v7961_v18 = vsub.f32 %v7852_v51, %v7951_v15  ;;  %v8657_v23 = vld [vmem:[#allocation2 + $0x370] sm:$0xff]  ;;  %v8659_v15 = vld [vmem:[#allocation2 + $0x380] sm:$0xff] }
0x25b7   :  { %12566 = vpow2.f32 %v7971_v25  ;;  %v8658_v25 = vld [vmem:[#allocation2 + $0x378] sm:$0xff] }
0x25b8   :  { %v7973_v20 = vmul.f32 1.442695, %v7960_v27  ;;  %v7975_v19 = vmul.f32 1.442695, %v7961_v18  ;;  %v12320_v26 = vpack.c.bf16 %v8658_v25, %v8657_v23  ;;  %v8660_v27 = vld [vmem:[#allocation2 + $0x388] sm:$0xff] }
0x25b9   :  { %v7954_v11 = vpop.xlane.xlu0 %7953  ;;  %v8020_v62 = vpop.permute.xlu1 %8019  ;;  %v12324_v18 = vpack.c.bf16 %v8660_v27, %v8659_v15  ;;  %v8791_v25 = vld [vmem:[#allocation2 + $0x3a8] sm:$0xff] }
0x25ba   :  { %12568 = vpow2.f32 %v7973_v20  ;;  %v7962_v17 = vsub.f32 %v7928_v55, %v7954_v11  ;;  %11964 = vmatpush3.msra.mxu0 %v8020_v62  ;;  %v8893_v20 = vld [vmem:[#allocation2 + $0x3c0] sm:$0xff] }
0x25bb   :  { %12570 = vpow2.f32 %v7975_v19  ;;  %11973 = vmatprep.subr.mxu0 %v12689_v13  ;;  %v8894_v19 = vld [vmem:[#allocation2 + $0x3c8] sm:$0xff] }
0x25bc   :  { %v12563_v28 = vpop.eup %12562  ;;  %v7977_v29 = vmul.f32 1.442695, %v7962_v17  ;;  %v12336_v62 = vpack.c.bf16 %v8894_v19, %v8893_v20 }
0x25bd   :  { %v8096_v30 = vpop.permute.xlu0 %8095  ;;  %v7985_v33 = vsel %vm228_vm2, %v12563_v28, 0.0  ;;  %v8172_v40 = vpop.permute.xlu1 %8171 }
0x25be   :  { %12572 = vpow2.f32 %v7977_v29  ;;  %7986 = vadd.xlane.f32.xlu1 %v7985_v33  ;;  %11969 = vmatpush3.msra.mxu1 %v8096_v30 }
0x25bf   :  { %11978 = vmatprep.subr.mxu1 %v12689_v13 }
0x25c0   :  { %v12565_v35 = vpop.eup %12564 }
0x25c1   :  { %v12567_v31 = vpop.eup %12566  ;;  %v7988_v32 = vsel %vm228_vm2, %v12565_v35, 0.0  ;;  %v8248_v44 = vpop.permute.xlu1 %8247 }
0x25c2   :  { %7989 = vadd.xlane.f32.xlu0 %v7988_v32  ;;  %v7991_v34 = vsel %vm228_vm2, %v12567_v31, 0.0  ;;  %v8324_v49 = vpop.permute.xlu0 %8323 }
0x25c3   :  { %7992 = vadd.xlane.f32.xlu1 %v7991_v34 }
0x25c4   :  { %v12569_v36 = vpop.eup %12568 }
0x25c5   :  { %v12571_v38 = vpop.eup %12570  ;;  %v7994_v42 = vsel %vm228_vm2, %v12569_v36, 0.0  ;;  %v8400_v4 = vpop.permute.xlu1 %8399 }
0x25c6   :  { %7995 = vadd.xlane.f32.xlu0 %v7994_v42  ;;  %v7997_v39 = vsel %vm228_vm2, %v12571_v38, 0.0 }
0x25c7   :  { %7998 = vadd.xlane.f32.xlu1 %v7997_v39 }
0x25c8   :  { %v13819_v45 = vpop.eup %12572 }
0x25c9   :  { %v8000_v48 = vsel %vm228_vm2, %v13819_v45, 0.0 }
0x25ca   :  { %8001 = vadd.xlane.f32.xlu0 %v8000_v48 }
0x25d8   :  { %8551 = vrot.lane.b32.xlu1 %v13728_v24, %s12696_s2 }
0x25e0   :  { %8475 = vrot.lane.b32.xlu0 %v13712_v61, %s12696_s2 }
0x25f2   :  { %v7984_v9 = vpop.xlane.xlu0 %7983 }
0x25f3   :  { %12574 = vrcp.f32 %v7984_v9  ;;  %v8896_v9 = vld [vmem:[#allocation2 + $0x3d8] sm:$0xff] }
0x25f6   :  { %v7981_v51 = vpop.xlane.xlu1 %7980 }
0x25f7   :  { %12576 = vrcp.f32 %v7981_v51 }
0x25fd   :  { %v12575_v52 = vpop.eup %12574 }
0x25fe   :  { %v8012_v53 = vmul.f32 %v12575_v52, %v13804_v47 }
0x2600   :  { %11971 = vmatmul.mubr.msk.f32.vlgmr.msra.gmra.mrb[98].mxu1 %vm228_vm2, %v8012_v53 }
0x2601   :  { %v12577_v54 = vpop.eup %12576  ;;  %11979 = vmatpush3.msra.mxu1 %v8248_v44  ;;  %11980 = vmatprep.mubr.msk.f32.mxu1 %vm12692_vm1, %v12689_v13 }
0x2602   :  { %v8011_v61 = vmul.f32 %v12577_v54, %v13808_v21  ;;  %11988 = vmatprep.subr.mxu1 %v12689_v13 }
0x2604   :  { %11966 = vmatmul.mubr.msk.f32.vlgmr.msra.gmra.mrb[78].mxu0 %vm228_vm2, %v8011_v61 }
0x2605   :  { %11974 = vmatpush3.msra.mxu0 %v8172_v40  ;;  %11975 = vmatprep.mubr.msk.f32.mxu0 %vm12692_vm1, %v12689_v13 }
0x2606   :  { %11983 = vmatprep.subr.mxu0 %v12689_v13 }
0x264b   :  { %v7987_v24 = vpop.xlane.xlu1 %7986 }
0x264c   :  { %12578 = vrcp.f32 %v7987_v24 }
0x264f   :  { %v7990_v50 = vpop.xlane.xlu0 %7989 }
0x2650   :  { %12580 = vrcp.f32 %v7990_v50  ;;  %v7993_v41 = vpop.xlane.xlu1 %7992  ;;  %v11004_v50 = vld [vmem:[#allocation2 + $0x390] ss:$0 sm:$0xff] }
0x2651   :  { %12582 = vrcp.f32 %v7993_v41 }
0x2653   :  { %v7996_v46 = vpop.xlane.xlu0 %7995 }
0x2654   :  { %12584 = vrcp.f32 %v7996_v46  ;;  %v7999_v55 = vpop.xlane.xlu1 %7998 }
0x2655   :  { %12586 = vrcp.f32 %v7999_v55 }
0x2656   :  { %v12579_v56 = vpop.eup %12578 }
0x2657   :  { %v8013_v57 = vmul.f32 %v12579_v56, %v12563_v28  ;;  %v8002_v16 = vpop.xlane.xlu0 %8001 }
0x2658   :  { %12588 = vrcp.f32 %v8002_v16  ;;  %v8552_v12 = vpop.permute.xlu1 %8551 }
0x2659   :  { %11976 = vmatmul.mubr.msk.f32.vlgmr.msra.gmra.mrb[80].mxu0 %vm228_vm2, %v8013_v57 }
0x265a   :  { %v12581_v10 = vpop.eup %12580  ;;  %11984 = vmatpush3.msra.mxu0 %v8324_v49  ;;  %11985 = vmatprep.mubr.msk.f32.mxu0 %vm12692_vm1, %v12689_v13 }
0x265b   :  { %v12583_v58 = vpop.eup %12582  ;;  %v8014_v59 = vmul.f32 %v12581_v10, %v12565_v35  ;;  %11993 = vmatprep.subr.mxu0 %v12689_v13  ;;  %v8476_v7 = vpop.permute.xlu0 %8475 }
0x265c   :  { %v8015_v37 = vmul.f32 %v12583_v58, %v12567_v31 }
0x265d   :  { %11981 = vmatmul.mubr.msk.f32.vlgmr.msra.gmra.mrb[100].mxu1 %vm228_vm2, %v8014_v59  ;;  %v11012_v59 = vld [vmem:[#allocation2 + $0x3e0] ss:$0 sm:$0xff] }
0x265e   :  { %v12585_v47 = vpop.eup %12584  ;;  %11986 = vmatmul.mubr.msk.f32.vlgmr.msra.gmra.mrb[82].mxu0 %vm228_vm2, %v8015_v37  ;;  %11989 = vmatpush3.msra.mxu1 %v8400_v4  ;;  %v8895_v4 = vld [vmem:[#allocation2 + $0x3d0] sm:$0xff] }
0x265f   :  { %v12587_v5 = vpop.eup %12586  ;;  %v8016_v21 = vmul.f32 %v12585_v47, %v12569_v36  ;;  %11994 = vmatpush3.msra.mxu0 %v8476_v7  ;;  %11990 = vmatprep.mubr.msk.f32.mxu1 %vm12692_vm1, %v12689_v13  ;;  %v12340_v61 = vpack.c.bf16 %v8896_v9, %v8895_v4 }
0x2660   :  { %v8017_v22 = vmul.f32 %v12587_v5, %v12571_v38  ;;  %11995 = vmatprep.mubr.msk.f32.mxu0 %vm12692_vm1, %v12689_v13  ;;  %11998 = vmatprep.subr.mxu1 %v12689_v13 }
0x2661   :  { %11991 = vmatmul.mubr.msk.f32.vlgmr.msra.gmra.mrb[102].mxu1 %vm228_vm2, %v8016_v21  ;;  %12321 = vmatprep.subr.bf16.mxu0 %v12320_v26 }
0x2662   :  { %v12589_v63 = vpop.eup %12588  ;;  %11996 = vmatmul.mubr.msk.f32.vlgmr.msra.gmra.mrb[84].mxu0 %vm228_vm2, %v8017_v22  ;;  %11999 = vmatpush3.msra.mxu1 %v8552_v12 }
0x2663   :  { %v8018_v14 = vmul.f32 %v12589_v63, %v13819_v45  ;;  %12000 = vmatprep.mubr.msk.f32.mxu1 %vm12692_vm1, %v12689_v13  ;;  %12323 = vmatpush3.bf16.msra.mxu0 %v12320_v26  ;;  %v8792_v26 = vld [vmem:[#allocation2 + $0x3b0] sm:$0xff] }
0x2664   :  { %12325 = vmatprep.subr.bf16.mxu0 %v12324_v18  ;;  %v12332_v15 = vpack.c.bf16 %v8792_v26, %v8791_v25 }
0x2665   :  { %12001 = vmatmul.mubr.msk.f32.vlgmr.msra.gmra.mrb[104].mxu1 %vm228_vm2, %v8018_v14 }
0x2667   :  { %12327 = vmatpush3.bf16.msra.mxu0 %v12324_v18 }
0x2668   :  { %12337 = vmatprep.subr.bf16.mxu0 %v12336_v62 }
0x26d3   :  { %v8167_v60 = vpop.f32.mrb[98].mxu1 }
0x26d4   :  { %v11972_v0 = vpop.f32.mrb[99].mxu1 }
0x26d7   :  { %v8091_v3 = vpop.f32.mrb[78].mxu0 }
0x26d8   :  { %v11967_v1 = vpop.f32.mrb[79].mxu0 }
0x26d9   :  { %v8790_v1 = vld [vmem:[#allocation2 + $0x3a0] sm:$0xff] }
0x272c   :  { %v8243_v11 = vpop.f32.mrb[80].mxu0 }
0x272d   :  { %8629 = vrot.lane.b32.xlu0 %v8243_v11, %s12688_s29  ;;  %v11977_v17 = vpop.f32.mrb[81].mxu0 }
0x2730   :  { %v8319_v28 = vpop.f32.mrb[100].mxu1 }
0x2731   :  { %v8395_v29 = vpop.f32.mrb[82].mxu0  ;;  %8631 = vrot.lane.b32.xlu1 %v8319_v28, %s12688_s29  ;;  %v11982_v30 = vpop.f32.mrb[101].mxu1  ;;  %v11007_v28 = vld [vmem:[#allocation2 + $0x480] ss:$0 sm:$0xff] }
0x2732   :  { %8637 = vrot.lane.b32.xlu0 %v8395_v29, %s12697_s15  ;;  %v11987_v33 = vpop.f32.mrb[83].mxu0  ;;  %v11008_v30 = vld [vmem:[#allocation2 + $0x488] ss:$0 sm:$0xff] }
0x2734   :  { %v8471_v35 = vpop.f32.mrb[102].mxu1 }
0x2735   :  { %v8547_v31 = vpop.f32.mrb[84].mxu0  ;;  %8639 = vrot.lane.b32.xlu1 %v8471_v35, %s12697_s15  ;;  %v11992_v32 = vpop.f32.mrb[103].mxu1 }
0x2736   :  { %8645 = vrot.lane.b32.xlu0 %v8547_v31, %s12698_s16  ;;  %v11997_v34 = vpop.f32.mrb[85].mxu0 }
0x2738   :  { %v8623_v36 = vpop.f32.mrb[104].mxu1 }
0x2739   :  { %8647 = vrot.lane.b32.xlu1 %v8623_v36, %s12698_s16  ;;  %v12002_v38 = vpop.f32.mrb[105].mxu1 }
0x273a   :  { %v11009_v38 = vld [vmem:[#allocation2 + $0x3b8] ss:$0 sm:$0xff] }
0x279f   :  { %v8630_v42 = vpop.permute.xlu0 %8629 }
0x27a0   :  { %v8651_v48 = vsel %vm228_vm2, %v8091_v3, %v8630_v42  ;;  %v8789_v3 = vld [vmem:[#allocation2 + $0x398] sm:$0xff] }
0x27a1   :  { %v12328_v23 = vpack.c.bf16 %v8790_v1, %v8789_v3 }
0x27a3   :  { %v8632_v39 = vpop.permute.xlu1 %8631  ;;  %12329 = vmatprep.subr.bf16.mxu1 %v12328_v23 }
0x27a4   :  { %v8638_v45 = vpop.permute.xlu0 %8637  ;;  %v8652_v52 = vsel %vm228_vm2, %v8167_v60, %v8632_v39  ;;  %12331 = vmatpush3.bf16.msra.mxu1 %v12328_v23 }
0x27a5   :  { %v8653_v44 = vsel %vm1557_vm3, %v8651_v48, %v8638_v45  ;;  %12333 = vmatprep.subr.bf16.mxu1 %v12332_v15 }
0x27a7   :  { %v8640_v40 = vpop.permute.xlu1 %8639 }
0x27a8   :  { %v8646_v49 = vpop.permute.xlu0 %8645  ;;  %v8654_v53 = vsel %vm1557_vm3, %v8652_v52, %v8640_v40  ;;  %12335 = vmatpush3.bf16.msra.mxu1 %v12332_v15 }
0x27a9   :  { %v8655_v51 = vsel %vm1560_vm4, %v8653_v44, %v8646_v49  ;;  %12036 = vmatprep.subr.mxu1 %v12689_v13 }
0x27aa   :  { %12011 = vmatprep.mubr.msk.f32.mxu0 %vm120_vm0, %v8655_v51 }
0x27ab   :  { %v8648_v54 = vpop.permute.xlu1 %8647 }
0x27ac   :  { %v8656_v24 = vsel %vm1560_vm4, %v8654_v53, %v8648_v54 }
0x27ad   :  { %12012 = vmatmul.mubr.msk.f32.vlgmr.msra.gmra.mrb[86].mxu0 %vm120_vm0, %v8656_v24 }
0x27ae   :  { %12339 = vmatpush3.bf16.msra.mxu0 %v12336_v62  ;;  %12033 = vmatprep.mubr.msk.f32.mxu0 %vm120_vm0, %v13463_v8 }
0x27af   :  { %12341 = vmatprep.subr.bf16.mxu0 %v12340_v61 }
0x27b2   :  { %12343 = vmatpush3.bf16.msra.mxu0 %v12340_v61 }
0x27b3   :  { %12046 = vmatprep.subr.mxu0 %v12689_v13 }
0x27b5   :  { %12034 = vmatmul.mubr.msk.f32.vlgmr.msra.gmra.mrb[88].mxu0 %vm120_vm0, %v13473_v43 }
0x27b6   :  { %12048 = vmatprep.mubr.msk.f32.mxu0 %vm12692_vm1, %v12689_v13 }
0x2880   :  { %v12013_v41 = vpop.f32.mrb[86].mxu0 }
0x2881   :  { %v8744_v46 = vadd.f32 %v12013_v41, %v11004_v50  ;;  %v8738_v55 = vpop.f32.mrb[87].mxu0 }
0x2882   :  { %v8739_v56 = vadd.f32 %v11004_v50, %v8738_v55 }
0x2883   :  { %v8748_v57 = vadd.f32 %v8744_v46, %v13676_v6 }
0x2884   :  { %v8747_v16 = vadd.f32 %v8739_v56, %v13674_v2 }
0x2885   :  { %v8752_v8 = vsel %vm120_vm0, %v8748_v57, 0.0 }
0x2886   :  { %8753 = vadd.xlane.f32.xlu1 %v8752_v8  ;;  %v8749_v10 = vsel %vm120_vm0, %v8747_v16, 0.0 }
0x2887   :  { %8750 = vadd.xlane.f32.xlu0 %v8749_v10 }
0x2888   :  { %v12035_v58 = vpop.f32.mrb[88].mxu0 }
0x2889   :  { %v8968_v43 = vpop.f32.mrb[89].mxu0  ;;  %v13883_v7 = vadd.f32 %v12035_v58, %v11012_v59 }
0x288a   :  { %v13879_v37 = vadd.f32 %v11012_v59, %v8968_v43 }
0x2897   :  { %8979 = vrot.lane.b32.xlu1 %v13879_v37, %s12691_s10 }
0x289b   :  { %8985 = vrot.lane.b32.xlu1 %v13883_v7, %s12690_s0 }
0x2913   :  { %v8754_v2 = vpop.xlane.xlu1 %8753 }
0x2914   :  { %v8756_v6 = vmul.f32 0.03125, %v8754_v2  ;;  %v8751_v47 = vpop.xlane.xlu0 %8750 }
0x2915   :  { %v8755_v5 = vmul.f32 0.03125, %v8751_v47 }
0x2916   :  { %v8758_v21 = vsub.f32 %v8748_v57, %v8756_v6 }
0x2917   :  { %v8757_v22 = vsub.f32 %v8747_v16, %v8755_v5  ;;  %v13887_v12 = vpop.permute.xlu1 %8979 }
0x2918   :  { %12047 = vmatpush3.xpose.msk.msra.mxu0 %vm228_vm2, %v13887_v12  ;;  %v8760_v60 = vmul.f32 %v8758_v21, %v8758_v21 }
0x2919   :  { %v8759_v63 = vmul.f32 %v8757_v22, %v8757_v22  ;;  %12056 = vmatprep.subr.mxu0 %v12689_v13 }
0x291a   :  { %v8764_v0 = vsel %vm120_vm0, %v8760_v60, 0.0 }
0x291b   :  { %v8761_v14 = vsel %vm120_vm0, %v8759_v63, 0.0  ;;  %v13936_v44 = vpop.permute.xlu1 %8985 }
0x291c   :  { %8762 = vadd.xlane.f32.xlu0 %v8761_v14 }
0x2920   :  { %8765 = vadd.xlane.f32.xlu0 %v8764_v0 }
0x2936   :  { %8981 = vrot.lane.b32.xlu0 %v13883_v7, %s12691_s10 }
0x293a   :  { %8983 = vrot.lane.b32.xlu0 %v13879_v37, %s12690_s0 }
0x293e   :  { %8987 = vrot.lane.b32.xlu0 %v13879_v37, %s12693_s11 }
0x29a9   :  { %v8763_v27 = vpop.xlane.xlu0 %8762 }
0x29aa   :  { %v8767_v18 = vmul.f32 0.03125, %v8763_v27 }
0x29ac   :  { %v8769_v20 = vadd.f32 1e-05, %v8767_v18 }
0x29ad   :  { %v8766_v19 = vpop.xlane.xlu0 %8765 }
0x29ae   :  { %12590 = vrsqrt.f32 %v8769_v20  ;;  %v8768_v11 = vmul.f32 0.03125, %v8766_v19 }
0x29b0   :  { %v8770_v62 = vadd.f32 1e-05, %v8768_v11 }
0x29b1   :  { %v13923_v40 = vpop.permute.xlu0 %8981 }
0x29b2   :  { %12592 = vrsqrt.f32 %v8770_v62 }
0x29b5   :  { %v13938_v49 = vpop.permute.xlu0 %8983 }
0x29b8   :  { %v12591_v17 = vpop.eup %12590 }
0x29b9   :  { %v8773_v29 = vmul.f32 %v12591_v17, %v8757_v22  ;;  %v13941_v9 = vpop.permute.xlu0 %8987 }
0x29bb   :  { %v8780_v33 = vmul.f32 %v11007_v28, %v8773_v29 }
0x29bc   :  { %v12593_v35 = vpop.eup %12592 }
0x29bd   :  { %v8774_v31 = vmul.f32 %v12593_v35, %v8758_v21  ;;  %v13901_v32 = vadd.f32 %v11008_v30, %v8780_v33 }
0x29bf   :  { %v8781_v34 = vmul.f32 %v11007_v28, %v8774_v31  ;;  %12022 = vmatprep.mubr.msk.f32.mxu1 %vm120_vm0, %v13901_v32 }
0x29c1   :  { %v13905_v36 = vadd.f32 %v11008_v30, %v8781_v34 }
0x29c3   :  { %12023 = vmatmul.mubr.msk.f32.vlgmr.msra.gmra.mrb[106].mxu1 %vm120_vm0, %v13905_v36 }
0x29c4   :  { %12037 = vmatpush3.xpose.msk.msra.mxu1 %vm228_vm2, %v13879_v37  ;;  %12038 = vmatprep.mubr.msk.f32.mxu1 %vm12692_vm1, %v12689_v13 }
0x29c5   :  { %12041 = vmatprep.subr.mxu1 %v12689_v13 }
0x2a96   :  { %v12024_v42 = vpop.f32.mrb[106].mxu1 }
0x2a97   :  { %v8876_v39 = vadd.f32 %v12024_v42, %v11009_v38  ;;  %v8870_v45 = vpop.f32.mrb[107].mxu1 }
0x2a98   :  { %v8871_v48 = vadd.f32 %v11009_v38, %v8870_v45 }
0x2a99   :  { %8883 = vrot.lane.b32.xlu1 %v8876_v39, %s12691_s10 }
0x2a9a   :  { %8885 = vrot.lane.b32.xlu0 %v8871_v48, %s12690_s0  ;;  %12039 = vmatmul.mubr.msk.f32.vlgmr.msra.gmra.mrb[108].mxu1 %vm228_vm2, %v8871_v48 }
0x2a9b   :  { %12042 = vmatpush3.xpose.msk.msra.mxu1 %vm228_vm2, %v13883_v7  ;;  %12043 = vmatprep.mubr.msk.f32.mxu1 %vm12692_vm1, %v12689_v13 }
0x2a9c   :  { %12051 = vmatprep.subr.mxu1 %v12689_v13 }
0x2a9d   :  { %8881 = vrot.lane.b32.xlu1 %v8871_v48, %s12691_s10 }
0x2a9e   :  { %8889 = vrot.lane.b32.xlu0 %v8871_v48, %s12693_s11  ;;  %12044 = vmatmul.mubr.msk.f32.vlgmr.msra.gmra.mrb[110].mxu1 %vm228_vm2, %v8876_v39 }
0x2a9f   :  { %12052 = vmatpush3.xpose.msk.msra.mxu1 %vm228_vm2, %v13923_v40  ;;  %12053 = vmatprep.mubr.msk.f32.mxu1 %vm12692_vm1, %v12689_v13 }
0x2aa0   :  { %12061 = vmatprep.subr.mxu1 %v12689_v13 }
0x2aa1   :  { %8887 = vrot.lane.b32.xlu1 %v8876_v39, %s12690_s0 }
0x2aa5   :  { %8989 = vrot.lane.b32.xlu1 %v13883_v7, %s12693_s11 }
0x2aa9   :  { %8891 = vrot.lane.b32.xlu1 %v8876_v39, %s12693_s11 }
0x2b0b   :  { %v8884_v4 = vpop.permute.xlu1 %8883 }
0x2b0c   :  { %12054 = vmatmul.mubr.msk.f32.vlgmr.msra.gmra.mrb[112].mxu1 %vm228_vm2, %v8884_v4  ;;  %v8886_v52 = vpop.permute.xlu0 %8885 }
0x2b0d   :  { %12062 = vmatpush3.xpose.msk.msra.mxu1 %vm228_vm2, %v13936_v44  ;;  %12063 = vmatprep.mubr.msk.f32.mxu1 %vm12692_vm1, %v12689_v13 }
0x2b0e   :  { %12071 = vmatprep.subr.mxu1 %v12689_v13 }
0x2b0f   :  { %v8882_v51 = vpop.permute.xlu1 %8881 }
0x2b10   :  { %12049 = vmatmul.mubr.msk.f32.vlgmr.msra.gmra.mrb[90].mxu0 %vm228_vm2, %v8882_v51  ;;  %v8890_v54 = vpop.permute.xlu0 %8889 }
0x2b11   :  { %12057 = vmatpush3.xpose.msk.msra.mxu0 %vm228_vm2, %v13938_v49  ;;  %12058 = vmatprep.mubr.msk.f32.mxu0 %vm12692_vm1, %v12689_v13 }
0x2b12   :  { %12066 = vmatprep.subr.mxu0 %v12689_v13 }
0x2b13   :  { %v8888_v53 = vpop.permute.xlu1 %8887 }
0x2b14   :  { %12059 = vmatmul.mubr.msk.f32.vlgmr.msra.gmra.mrb[92].mxu0 %vm228_vm2, %v8886_v52  ;;  %12064 = vmatmul.mubr.msk.f32.vlgmr.msra.gmra.mrb[114].mxu1 %vm228_vm2, %v8888_v53 }
0x2b15   :  { %12067 = vmatpush3.xpose.msk.msra.mxu0 %vm228_vm2, %v13941_v9  ;;  %12068 = vmatprep.mubr.msk.f32.mxu0 %vm12692_vm1, %v12689_v13 }
0x2b16   :  { %12073 = vmatprep.mubr.msk.f32.mxu1 %vm12692_vm1, %v12689_v13  ;;  %12076 = vmatprep.subr.mxu0 %v12689_v13 }
0x2b17   :  { %v13963_v61 = vpop.permute.xlu1 %8989 }
0x2b18   :  { %12069 = vmatmul.mubr.msk.f32.vlgmr.msra.gmra.mrb[94].mxu0 %vm228_vm2, %v8890_v54  ;;  %12072 = vmatpush3.xpose.msk.msra.mxu1 %vm228_vm2, %v13963_v61 }
0x2b19   :  { %12081 = vmatprep.subr.mxu1 %v12689_v13  ;;  %12078 = vmatprep.mubr.msk.f32.mxu0 %vm12692_vm1, %v12689_v13 }
0x2b1b   :  { %v8892_v24 = vpop.permute.xlu1 %8891 }
0x2b1c   :  { %12074 = vmatmul.mubr.msk.f32.vlgmr.msra.gmra.mrb[116].mxu1 %vm228_vm2, %v8892_v24 }
0x2b1d   :  { %12083 = vmatprep.mubr.msk.f32.mxu1 %vm12692_vm1, %v12689_v13 }
0x2b6d   :  { %v9061_v50 = vpop.f32.mrb[108].mxu1 }
0x2b6e   :  { %v12040_v41 = vpop.f32.mrb[109].mxu1  ;;  %v9583_v46 = vsel %vm228_vm2, %v9061_v50, -inf }
0x2b6f   :  { %9584 = vmax.xlane.f32.xlu0 %v9583_v46 }
0x2b71   :  { %v9135_v55 = vpop.f32.mrb[110].mxu1 }
0x2b72   :  { %v12045_v56 = vpop.f32.mrb[111].mxu1  ;;  %v9586_v57 = vsel %vm228_vm2, %v9135_v55, -inf }
0x2b73   :  { %9587 = vmax.xlane.f32.xlu1 %v9586_v57 }
0x2bdf   :  { %v9283_v16 = vpop.f32.mrb[112].mxu1 }
0x2be0   :  { %v12055_v8 = vpop.f32.mrb[113].mxu1  ;;  %v9592_v5 = vsel %vm228_vm2, %v9283_v16, -inf }
0x2be3   :  { %v9209_v10 = vpop.f32.mrb[90].mxu0 }
0x2be4   :  { %v12050_v58 = vpop.f32.mrb[91].mxu0  ;;  %v9589_v43 = vsel %vm228_vm2, %v9209_v10, -inf }
0x2be5   :  { %9590 = vmax.xlane.f32.xlu0 %v9589_v43 }
0x2be7   :  { %v9357_v59 = vpop.f32.mrb[92].mxu0  ;;  %v9431_v2 = vpop.f32.mrb[114].mxu1 }
0x2be8   :  { %v12060_v6 = vpop.f32.mrb[93].mxu0  ;;  %v12065_v47 = vpop.f32.mrb[115].mxu1  ;;  %v9595_v21 = vsel %vm228_vm2, %v9357_v59, -inf  ;;  %v9598_v14 = vsel %vm228_vm2, %v9431_v2, -inf }
0x2be9   :  { %9593 = vmax.xlane.f32.xlu0 %v9592_v5  ;;  %9596 = vmax.xlane.f32.xlu1 %v9595_v21 }
0x2beb   :  { %v9505_v22 = vpop.f32.mrb[94].mxu0 }
0x2bec   :  { %v12070_v63 = vpop.f32.mrb[95].mxu0  ;;  %v9601_v60 = vsel %vm228_vm2, %v9505_v22, -inf }
0x2bed   :  { %9599 = vmax.xlane.f32.xlu0 %v9598_v14  ;;  %9602 = vmax.xlane.f32.xlu1 %v9601_v60 }
0x2bef   :  { %v9579_v0 = vpop.f32.mrb[116].mxu1 }
0x2bf0   :  { %v12075_v3 = vpop.f32.mrb[117].mxu1  ;;  %v9604_v1 = vsel %vm228_vm2, %v9579_v0, -inf }
0x2bf1   :  { %9605 = vmax.xlane.f32.xlu0 %v9604_v1 }
0x2bfc   :  { %v9585_v26 = vpop.xlane.xlu0 %9584 }
0x2bfd   :  { %v9607_v15 = vsub.f32 %v9061_v50, %v9585_v26 }
0x2bfe   :  { %9671 = vrot.lane.b32.xlu1 %v13879_v37, %s12694_s12 }
0x2bff   :  { %v9615_v27 = vmul.f32 1.442695, %v9607_v15 }
0x2c00   :  { %v9588_v23 = vpop.xlane.xlu1 %9587 }
0x2c01   :  { %v9608_v25 = vsub.f32 %v9135_v55, %v9588_v23 }
0x2c02   :  { %9823 = vrot.lane.b32.xlu1 %v13887_v12, %s12694_s12 }
0x2c03   :  { %v9617_v37 = vmul.f32 1.442695, %v9608_v25 }
0x2c05   :  { %12594 = vpow2.f32 %v9617_v37 }
0x2c06   :  { %9899 = vrot.lane.b32.xlu1 %v13923_v40, %s12694_s12  ;;  %12596 = vpow2.f32 %v9615_v27 }
0x2c07   :  { %9747 = vrot.lane.b32.xlu0 %v13883_v7, %s12694_s12 }
0x2c0a   :  { %10051 = vrot.lane.b32.xlu1 %v13936_v44, %s12694_s12 }
0x2c0b   :  { %9975 = vrot.lane.b32.xlu0 %v13938_v49, %s12694_s12 }
0x2c0f   :  { %v13994_v12 = vpop.eup %12594 }
0x2c10   :  { %v9634_v18 = vsel %vm228_vm2, %v13994_v12, 0.0  ;;  %v13998_v7 = vpop.eup %12596 }
0x2c11   :  { %v9631_v20 = vsel %vm228_vm2, %v13998_v7, 0.0 }
0x2c2a   :  { %9635 = vadd.xlane.f32.xlu0 %v9634_v18 }
0x2c2e   :  { %9632 = vadd.xlane.f32.xlu1 %v9631_v20 }
0x2c72   :  { %v9591_v19 = vpop.xlane.xlu0 %9590 }
0x2c73   :  { %v9609_v11 = vsub.f32 %v9209_v10, %v9591_v19 }
0x2c75   :  { %v9619_v62 = vmul.f32 1.442695, %v9609_v11 }
0x2c76   :  { %v9597_v17 = vpop.xlane.xlu1 %9596  ;;  %v9594_v28 = vpop.xlane.xlu0 %9593 }
0x2c77   :  { %12598 = vpow2.f32 %v9619_v62  ;;  %v9611_v29 = vsub.f32 %v9357_v59, %v9597_v17  ;;  %v9610_v30 = vsub.f32 %v9283_v16, %v9594_v28 }
0x2c79   :  { %v9623_v33 = vmul.f32 1.442695, %v9611_v29  ;;  %v9621_v35 = vmul.f32 1.442695, %v9610_v30  ;;  %v10309_v29 = vld [vmem:[#allocation2 + $0x3e8] sm:$0xff]  ;;  %v10310_v30 = vld [vmem:[#allocation2 + $0x3f0] sm:$0xff] }
0x2c7a   :  { %v9603_v31 = vpop.xlane.xlu1 %9602  ;;  %v9600_v34 = vpop.xlane.xlu0 %9599 }
0x2c7b   :  { %12600 = vpow2.f32 %v9623_v33  ;;  %v9613_v38 = vsub.f32 %v9505_v22, %v9603_v31  ;;  %v9612_v42 = vsub.f32 %v9431_v2, %v9600_v34  ;;  %v12344_v33 = vpack.c.bf16 %v10310_v30, %v10309_v29  ;;  %v10312_v31 = vld [vmem:[#allocation2 + $0x400] sm:$0xff] }
0x2c7c   :  { %12602 = vpow2.f32 %v9621_v35  ;;  %v10311_v35 = vld [vmem:[#allocation2 + $0x3f8] sm:$0xff] }
0x2c7d   :  { %v9627_v39 = vmul.f32 1.442695, %v9613_v38  ;;  %v9625_v45 = vmul.f32 1.442695, %v9612_v42  ;;  %v12348_v34 = vpack.c.bf16 %v10312_v31, %v10311_v35 }
0x2c7e   :  { %v9672_v48 = vpop.permute.xlu1 %9671  ;;  %v9606_v40 = vpop.xlane.xlu0 %9605 }
0x2c7f   :  { %12604 = vpow2.f32 %v9627_v39  ;;  %v9614_v44 = vsub.f32 %v9579_v0, %v9606_v40  ;;  %12077 = vmatpush3.msra.mxu0 %v9672_v48 }
0x2c80   :  { %12606 = vpow2.f32 %v9625_v45  ;;  %12086 = vmatprep.subr.mxu0 %v12689_v13 }
0x2c81   :  { %v12599_v49 = vpop.eup %12598  ;;  %v9629_v4 = vmul.f32 1.442695, %v9614_v44 }
0x2c82   :  { %v9748_v51 = vpop.permute.xlu0 %9747  ;;  %v9637_v52 = vsel %vm228_vm2, %v12599_v49, 0.0  ;;  %v9824_v8 = vpop.permute.xlu1 %9823 }
0x2c83   :  { %12608 = vpow2.f32 %v9629_v4  ;;  %9638 = vadd.xlane.f32.xlu1 %v9637_v52  ;;  %12082 = vmatpush3.msra.mxu1 %v9748_v51 }
0x2c84   :  { %12091 = vmatprep.subr.mxu1 %v12689_v13 }
0x2c85   :  { %v12601_v53 = vpop.eup %12600 }
0x2c86   :  { %v12603_v54 = vpop.eup %12602  ;;  %v9643_v24 = vsel %vm228_vm2, %v12601_v53, 0.0  ;;  %v9900_v10 = vpop.permute.xlu1 %9899 }
0x2c87   :  { %9644 = vadd.xlane.f32.xlu1 %v9643_v24  ;;  %v9640_v50 = vsel %vm228_vm2, %v12603_v54, 0.0  ;;  %v9976_v58 = vpop.permute.xlu0 %9975 }
0x2c88   :  { %9641 = vadd.xlane.f32.xlu0 %v9640_v50 }
0x2c89   :  { %v12605_v41 = vpop.eup %12604 }
0x2c8a   :  { %v12607_v46 = vpop.eup %12606  ;;  %v9649_v55 = vsel %vm228_vm2, %v12605_v41, 0.0  ;;  %v10052_v43 = vpop.permute.xlu1 %10051 }
0x2c8b   :  { %9650 = vadd.xlane.f32.xlu1 %v9649_v55  ;;  %v9646_v56 = vsel %vm228_vm2, %v12607_v46, 0.0 }
0x2c8c   :  { %9647 = vadd.xlane.f32.xlu0 %v9646_v56 }
0x2c8d   :  { %v14009_v57 = vpop.eup %12608 }
0x2c8e   :  { %v9652_v16 = vsel %vm228_vm2, %v14009_v57, 0.0 }
0x2c90   :  { %9653 = vadd.xlane.f32.xlu0 %v9652_v16 }
0x2c9c   :  { %10203 = vrot.lane.b32.xlu1 %v13963_v61, %s12694_s12 }
0x2ca6   :  { %10127 = vrot.lane.b32.xlu0 %v13941_v9, %s12694_s12 }
0x2cb7   :  { %v9636_v59 = vpop.xlane.xlu0 %9635 }
0x2cb8   :  { %12610 = vrcp.f32 %v9636_v59 }
0x2cbb   :  { %v9633_v2 = vpop.xlane.xlu1 %9632 }
0x2cbc   :  { %12612 = vrcp.f32 %v9633_v2 }
0x2cc2   :  { %v12611_v6 = vpop.eup %12610 }
0x2cc3   :  { %v9664_v47 = vmul.f32 %v12611_v6, %v13994_v12 }
0x2cc5   :  { %12084 = vmatmul.mubr.msk.f32.vlgmr.msra.gmra.mrb[118].mxu1 %vm228_vm2, %v9664_v47 }
0x2cc6   :  { %v12613_v5 = vpop.eup %12612  ;;  %12092 = vmatpush3.msra.mxu1 %v9900_v10  ;;  %12093 = vmatprep.mubr.msk.f32.mxu1 %vm12692_vm1, %v12689_v13 }
0x2cc7   :  { %v9663_v9 = vmul.f32 %v12613_v5, %v13998_v7  ;;  %12101 = vmatprep.subr.mxu1 %v12689_v13 }
0x2cc9   :  { %12079 = vmatmul.mubr.msk.f32.vlgmr.msra.gmra.mrb[96].mxu0 %vm228_vm2, %v9663_v9 }
0x2cca   :  { %12087 = vmatpush3.msra.mxu0 %v9824_v8  ;;  %12088 = vmatprep.mubr.msk.f32.mxu0 %vm12692_vm1, %v12689_v13 }
0x2ccb   :  { %12096 = vmatprep.subr.mxu0 %v12689_v13 }
0x2d10   :  { %v9639_v61 = vpop.xlane.xlu1 %9638 }
0x2d11   :  { %12614 = vrcp.f32 %v9639_v61 }
0x2d14   :  { %v9645_v21 = vpop.xlane.xlu1 %9644 }
0x2d15   :  { %12616 = vrcp.f32 %v9645_v21  ;;  %v9642_v22 = vpop.xlane.xlu0 %9641 }
0x2d16   :  { %12618 = vrcp.f32 %v9642_v22 }
0x2d18   :  { %v9651_v63 = vpop.xlane.xlu1 %9650 }
0x2d19   :  { %12620 = vrcp.f32 %v9651_v63  ;;  %v9648_v14 = vpop.xlane.xlu0 %9647 }
0x2d1a   :  { %12622 = vrcp.f32 %v9648_v14 }
0x2d1b   :  { %v12615_v60 = vpop.eup %12614 }
0x2d1c   :  { %v9665_v0 = vmul.f32 %v12615_v60, %v12599_v49  ;;  %v10204_v7 = vpop.permute.xlu1 %10203 }
0x2d1d   :  { %v9654_v3 = vpop.xlane.xlu0 %9653 }
0x2d1e   :  { %12624 = vrcp.f32 %v9654_v3  ;;  %12089 = vmatmul.mubr.msk.f32.vlgmr.msra.gmra.mrb[98].mxu0 %vm228_vm2, %v9665_v0 }
0x2d1f   :  { %v12617_v1 = vpop.eup %12616  ;;  %12097 = vmatpush3.msra.mxu0 %v9976_v58  ;;  %12098 = vmatprep.mubr.msk.f32.mxu0 %vm12692_vm1, %v12689_v13  ;;  %v11039_v58 = vld [vmem:[#allocation2 + $0x408] ss:$0 sm:$0xff] }
0x2d20   :  { %v12619_v23 = vpop.eup %12618  ;;  %v9667_v25 = vmul.f32 %v12617_v1, %v12601_v53  ;;  %12106 = vmatprep.subr.mxu0 %v12689_v13 }
0x2d21   :  { %v9666_v26 = vmul.f32 %v12619_v23, %v12603_v54  ;;  %v10128_v15 = vpop.permute.xlu0 %10127 }
0x2d22   :  { %12099 = vmatmul.mubr.msk.f32.vlgmr.msra.gmra.mrb[100].mxu0 %vm228_vm2, %v9667_v25  ;;  %v10442_v25 = vld [vmem:[#allocation2 + $0x418] sm:$0xff] }
0x2d23   :  { %v12621_v37 = vpop.eup %12620  ;;  %12094 = vmatmul.mubr.msk.f32.vlgmr.msra.gmra.mrb[120].mxu1 %vm228_vm2, %v9666_v26  ;;  %12107 = vmatpush3.msra.mxu0 %v10128_v15  ;;  %v10443_v15 = vld [vmem:[#allocation2 + $0x420] sm:$0xff] }
0x2d24   :  { %v12623_v27 = vpop.eup %12622  ;;  %v9669_v12 = vmul.f32 %v12621_v37, %v12605_v41  ;;  %12102 = vmatpush3.msra.mxu1 %v10052_v43  ;;  %12103 = vmatprep.mubr.msk.f32.mxu1 %vm12692_vm1, %v12689_v13  ;;  %v10444_v37 = vld [vmem:[#allocation2 + $0x428] sm:$0xff] }
0x2d25   :  { %v9668_v18 = vmul.f32 %v12623_v27, %v12607_v46  ;;  %12108 = vmatprep.mubr.msk.f32.mxu0 %vm12692_vm1, %v12689_v13  ;;  %12111 = vmatprep.subr.mxu1 %v12689_v13  ;;  %v12356_v27 = vpack.c.bf16 %v10444_v37, %v10443_v15  ;;  %v11050_v15 = vld [vmem:[#allocation2 + $0x4a0] ss:$0 sm:$0xff] }
0x2d26   :  { %12109 = vmatmul.mubr.msk.f32.vlgmr.msra.gmra.mrb[102].mxu0 %vm228_vm2, %v9669_v12  ;;  %12345 = vmatprep.subr.bf16.mxu0 %v12344_v33  ;;  %v10533_v12 = vld [vmem:[#allocation2 + $0x438] sm:$0xff] }
0x2d27   :  { %12104 = vmatmul.mubr.msk.f32.vlgmr.msra.gmra.mrb[122].mxu1 %vm228_vm2, %v9668_v18  ;;  %12347 = vmatpush3.bf16.msra.mxu0 %v12344_v33  ;;  %v10534_v18 = vld [vmem:[#allocation2 + $0x440] sm:$0xff] }
0x2d28   :  { %v12625_v20 = vpop.eup %12624  ;;  %12112 = vmatpush3.msra.mxu1 %v10204_v7  ;;  %12113 = vmatprep.mubr.msk.f32.mxu1 %vm12692_vm1, %v12689_v13  ;;  %v10535_v7 = vld [vmem:[#allocation2 + $0x448] sm:$0xff] }
0x2d29   :  { %v9670_v19 = vmul.f32 %v12625_v20, %v14009_v57  ;;  %12349 = vmatprep.subr.bf16.mxu0 %v12348_v34  ;;  %v12360_v20 = vpack.c.bf16 %v10534_v18, %v10533_v12  ;;  %v11051_v12 = vld [vmem:[#allocation2 + $0x4a8] ss:$0 sm:$0xff] }
0x2d2b   :  { %12114 = vmatmul.mubr.msk.f32.vlgmr.msra.gmra.mrb[124].mxu1 %vm228_vm2, %v9670_v19  ;;  %12351 = vmatpush3.bf16.msra.mxu0 %v12348_v34  ;;  %v10536_v19 = vld [vmem:[#allocation2 + $0x450] sm:$0xff] }
0x2d2c   :  { %12361 = vmatprep.subr.bf16.mxu0 %v12360_v20 }
0x2d98   :  { %v9819_v11 = vpop.f32.mrb[118].mxu1 }
0x2d99   :  { %v12085_v62 = vpop.f32.mrb[119].mxu1 }
0x2d9a   :  { %v10537_v62 = vld [vmem:[#allocation2 + $0x458] sm:$0xff] }
0x2d9c   :  { %v9743_v17 = vpop.f32.mrb[96].mxu0 }
0x2d9d   :  { %v12080_v28 = vpop.f32.mrb[97].mxu0 }
0x2df1   :  { %v9895_v38 = vpop.f32.mrb[98].mxu0 }
0x2df2   :  { %v12090_v13 = vpop.f32.mrb[99].mxu0  ;;  %10281 = vrot.lane.b32.xlu0 %v9895_v38, %s12688_s29 }
0x2df3   :  { %v11042_v13 = vld [vmem:[#allocation2 + $0x490] ss:$0 sm:$0xff] }
0x2df5   :  { %v10047_v42 = vpop.f32.mrb[100].mxu0 }
0x2df6   :  { %v9971_v39 = vpop.f32.mrb[120].mxu1  ;;  %10289 = vrot.lane.b32.xlu0 %v10047_v42, %s12697_s15  ;;  %v12100_v45 = vpop.f32.mrb[101].mxu0 }
0x2df7   :  { %10283 = vrot.lane.b32.xlu1 %v9971_v39, %s12688_s29  ;;  %v12095_v48 = vpop.f32.mrb[121].mxu1  ;;  %v11043_v39 = vld [vmem:[#allocation2 + $0x498] ss:$0 sm:$0xff] }
0x2df9   :  { %v10199_v40 = vpop.f32.mrb[102].mxu0 }
0x2dfa   :  { %v10123_v44 = vpop.f32.mrb[122].mxu1  ;;  %10297 = vrot.lane.b32.xlu0 %v10199_v40, %s12698_s16  ;;  %v12110_v49 = vpop.f32.mrb[103].mxu0 }
0x2dfb   :  { %10291 = vrot.lane.b32.xlu1 %v10123_v44, %s12697_s15  ;;  %v12105_v4 = vpop.f32.mrb[123].mxu1 }
0x2dfe   :  { %v10275_v51 = vpop.f32.mrb[124].mxu1 }
0x2dff   :  { %10299 = vrot.lane.b32.xlu1 %v10275_v51, %s12698_s16  ;;  %v12115_v52 = vpop.f32.mrb[125].mxu1  ;;  %v10539_v51 = vld [vmem:[#allocation2 + $0x468] sm:$0xff] }
0x2e00   :  { %v10540_v52 = vld [vmem:[#allocation2 + $0x470] sm:$0xff] }
0x2e64   :  { %v10282_v53 = vpop.permute.xlu0 %10281 }
0x2e65   :  { %v10303_v50 = vsel %vm228_vm2, %v9743_v17, %v10282_v53  ;;  %v10538_v17 = vld [vmem:[#allocation2 + $0x460] sm:$0xff]  ;;  %v12372_v53 = vpack.c.bf16 %v10540_v52, %v10539_v51 }
0x2e66   :  { %v12368_v28 = vpack.c.bf16 %v10538_v17, %v10537_v62 }
0x2e68   :  { %v10290_v54 = vpop.permute.xlu0 %10289 }
0x2e69   :  { %v10284_v24 = vpop.permute.xlu1 %10283  ;;  %v10305_v41 = vsel %vm1557_vm3, %v10303_v50, %v10290_v54  ;;  %v11044_v54 = vld [vmem:[#allocation2 + $0x430] ss:$0 sm:$0xff] }
0x2e6a   :  { %v10304_v57 = vsel %vm228_vm2, %v9819_v11, %v10284_v24  ;;  %v12364_v11 = vpack.c.bf16 %v10536_v19, %v10535_v7 }
0x2e6c   :  { %v10298_v46 = vpop.permute.xlu0 %10297 }
0x2e6d   :  { %v10292_v55 = vpop.permute.xlu1 %10291  ;;  %v10307_v56 = vsel %vm1560_vm4, %v10305_v41, %v10298_v46 }
0x2e6e   :  { %12124 = vmatprep.mubr.msk.f32.mxu0 %vm120_vm0, %v10307_v56  ;;  %v10306_v16 = vsel %vm1557_vm3, %v10304_v57, %v10292_v55  ;;  %v11047_v57 = vld [vmem:[#allocation2 + $0x478] ss:$0 sm:$0xff] }
0x2e71   :  { %v10300_v8 = vpop.permute.xlu1 %10299 }
0x2e72   :  { %v10308_v10 = vsel %vm1560_vm4, %v10306_v16, %v10300_v8 }
0x2e73   :  { %12125 = vmatmul.mubr.msk.f32.vlgmr.msra.gmra.mrb[104].mxu0 %vm120_vm0, %v10308_v10 }
0x2e74   :  { %12363 = vmatpush3.bf16.msra.mxu0 %v12360_v20 }
0x2e75   :  { %12365 = vmatprep.subr.bf16.mxu0 %v12364_v11 }
0x2e78   :  { %12367 = vmatpush3.bf16.msra.mxu0 %v12364_v11 }
0x2e79   :  { %12369 = vmatprep.subr.bf16.mxu0 %v12368_v28 }
0x2e7c   :  { %12371 = vmatpush3.bf16.msra.mxu0 %v12368_v28 }
0x2e7d   :  { %12373 = vmatprep.subr.bf16.mxu0 %v12372_v53 }
0x2e80   :  { %12375 = vmatpush3.bf16.msra.mxu0 %v12372_v53 }
0x2f46   :  { %v12126_v43 = vpop.f32.mrb[104].mxu0 }
0x2f47   :  { %v10396_v59 = vadd.f32 %v12126_v43, %v11039_v58  ;;  %v10390_v2 = vpop.f32.mrb[105].mxu0 }
0x2f48   :  { %v10391_v6 = vadd.f32 %v11039_v58, %v10390_v2 }
0x2f49   :  { %v10400_v47 = vadd.f32 %v10396_v59, %v13905_v36 }
0x2f4a   :  { %v10399_v5 = vadd.f32 %v10391_v6, %v13901_v32  ;;  %v10441_v32 = vld [vmem:[#allocation2 + $0x410] sm:$0xff] }
0x2f4b   :  { %v10404_v9 = vsel %vm120_vm0, %v10400_v47, 0.0  ;;  %v12352_v26 = vpack.c.bf16 %v10442_v25, %v10441_v32 }
0x2f4c   :  { %10405 = vadd.xlane.f32.xlu1 %v10404_v9  ;;  %v10401_v61 = vsel %vm120_vm0, %v10399_v5, 0.0 }
0x2f4d   :  { %10402 = vadd.xlane.f32.xlu0 %v10401_v61  ;;  %12353 = vmatprep.subr.bf16.mxu1 %v12352_v26 }
0x2f4e   :  { %12355 = vmatpush3.bf16.msra.mxu1 %v12352_v26 }
0x2f4f   :  { %12357 = vmatprep.subr.bf16.mxu1 %v12356_v27 }
0x2f52   :  { %12359 = vmatpush3.bf16.msra.mxu1 %v12356_v27 }
0x2fd9   :  { %v10406_v21 = vpop.xlane.xlu1 %10405 }
0x2fda   :  { %v10408_v22 = vmul.f32 0.03125, %v10406_v21  ;;  %v10403_v63 = vpop.xlane.xlu0 %10402 }
0x2fdb   :  { %v10407_v14 = vmul.f32 0.03125, %v10403_v63 }
0x2fdc   :  { %v10410_v60 = vsub.f32 %v10400_v47, %v10408_v22 }
0x2fdd   :  { %v10409_v0 = vsub.f32 %v10399_v5, %v10407_v14 }
0x2fde   :  { %v10412_v23 = vmul.f32 %v10410_v60, %v10410_v60 }
0x2fdf   :  { %v10411_v3 = vmul.f32 %v10409_v0, %v10409_v0 }
0x2fe0   :  { %v10416_v36 = vsel %vm120_vm0, %v10412_v23, 0.0 }
0x2fe1   :  { %v10413_v1 = vsel %vm120_vm0, %v10411_v3, 0.0 }
0x2fe2   :  { %10414 = vadd.xlane.f32.xlu0 %v10413_v1 }
0x2fe6   :  { %10417 = vadd.xlane.f32.xlu0 %v10416_v36 }
0x306f   :  { %v10415_v29 = vpop.xlane.xlu0 %10414 }
0x3070   :  { %v10419_v30 = vmul.f32 0.03125, %v10415_v29 }
0x3072   :  { %v10421_v33 = vadd.f32 1e-05, %v10419_v30 }
0x3073   :  { %v10418_v35 = vpop.xlane.xlu0 %10417 }
0x3074   :  { %12626 = vrsqrt.f32 %v10421_v33  ;;  %v10420_v31 = vmul.f32 0.03125, %v10418_v35 }
0x3076   :  { %v10422_v34 = vadd.f32 1e-05, %v10420_v31 }
0x3078   :  { %12628 = vrsqrt.f32 %v10422_v34 }
0x307e   :  { %v12627_v38 = vpop.eup %12626 }
0x307f   :  { %v10425_v42 = vmul.f32 %v12627_v38, %v10409_v0 }
0x3081   :  { %v10432_v45 = vmul.f32 %v11042_v13, %v10425_v42 }
0x3082   :  { %v12629_v48 = vpop.eup %12628 }
0x3083   :  { %v10426_v40 = vmul.f32 %v12629_v48, %v10410_v60  ;;  %v10439_v44 = vadd.f32 %v11043_v39, %v10432_v45  ;;  %v10710_v45 = vld [vmem:[#allocation2 + $0x4c8] sm:$0xff] }
0x3085   :  { %v10433_v49 = vmul.f32 %v11042_v13, %v10426_v40  ;;  %12135 = vmatprep.mubr.msk.f32.mxu1 %vm120_vm0, %v10439_v44  ;;  %v10711_v40 = vld [vmem:[#allocation2 + $0x4d0] sm:$0xff] }
0x3087   :  { %v10440_v4 = vadd.f32 %v11043_v39, %v10433_v49  ;;  %v10709_v39 = vld [vmem:[#allocation2 + $0x4c0] sm:$0xff] }
0x3088   :  { %v12376_v48 = vpack.c.bf16 %v10710_v45, %v10709_v39 }
0x3089   :  { %12136 = vmatmul.mubr.msk.f32.vlgmr.msra.gmra.mrb[126].mxu1 %vm120_vm0, %v10440_v4 }
0x308a   :  { %12377 = vmatprep.subr.bf16.mxu1 %v12376_v48 }
0x308b   :  { %12379 = vmatpush3.bf16.msra.mxu1 %v12376_v48 }
0x315c   :  { %v12137_v24 = vpop.f32.mrb[126].mxu1 }
0x315d   :  { %v10528_v50 = vadd.f32 %v12137_v24, %v11044_v54  ;;  %v10522_v41 = vpop.f32.mrb[127].mxu1 }
0x315e   :  { %v10523_v46 = vadd.f32 %v11044_v54, %v10522_v41  ;;  %v11052_v41 = vld [vmem:[#allocation2 + $0x4b0] ss:$0 sm:$0xff] }
0x315f   :  { %v10532_v56 = vmax.f32 %v10528_v50, 0.0 }
0x3160   :  { %v10531_v55 = vmax.f32 %v10523_v46, 0.0 }
0x3162   :  { %12154 = vmatprep.mubr.msk.f32.mxu0 %vm1801_vm5, %v10531_v55 }
0x3163   :  { %12155 = vmatmul.mubr.msk.f32.vlgmr.msra.gmra.mrb[106].mxu0 %vm1801_vm5, %v10532_v56 }
0x3236   :  { %v12156_v16 = vpop.f32.mrb[106].mxu0 }
0x3237   :  { %v10624_v8 = vadd.f32 %v12156_v16, %v11047_v57  ;;  %v10618_v10 = vpop.f32.mrb[107].mxu0  ;;  %v11053_v16 = vld [vmem:[#allocation2 + $0x4b8] ss:$0 sm:$0xff] }
0x3238   :  { %v10619_v58 = vadd.f32 %v11047_v57, %v10618_v10 }
0x3239   :  { %v10628_v43 = vadd.f32 %v10624_v8, %v10440_v4 }
0x323a   :  { %v10627_v59 = vadd.f32 %v10619_v58, %v10439_v44  ;;  %v10712_v44 = vld [vmem:[#allocation2 + $0x4d8] sm:$0xff] }
0x323b   :  { %v10632_v2 = vsel %vm120_vm0, %v10628_v43, 0.0  ;;  %v12380_v49 = vpack.c.bf16 %v10712_v44, %v10711_v40 }
0x323c   :  { %10633 = vadd.xlane.f32.xlu0 %v10632_v2  ;;  %v10629_v6 = vsel %vm120_vm0, %v10627_v59, 0.0 }
0x323d   :  { %10630 = vadd.xlane.f32.xlu1 %v10629_v6  ;;  %12381 = vmatprep.subr.bf16.mxu1 %v12380_v49 }
0x323e   :  { %12383 = vmatpush3.bf16.msra.mxu1 %v12380_v49 }
0x32c9   :  { %v10634_v47 = vpop.xlane.xlu0 %10633 }
0x32ca   :  { %v10636_v5 = vmul.f32 0.03125, %v10634_v47  ;;  %v10631_v9 = vpop.xlane.xlu1 %10630 }
0x32cb   :  { %v10635_v61 = vmul.f32 0.03125, %v10631_v9 }
0x32cc   :  { %v10638_v21 = vsub.f32 %v10628_v43, %v10636_v5  ;;  %v11054_v43 = vld [vmem:[#allocation2 + $0x4e0] ss:$0 sm:$0xff] }
0x32cd   :  { %v10637_v22 = vsub.f32 %v10627_v59, %v10635_v61 }
0x32ce   :  { %v10640_v63 = vmul.f32 %v10638_v21, %v10638_v21 }
0x32cf   :  { %v10639_v14 = vmul.f32 %v10637_v22, %v10637_v22 }
0x32d0   :  { %v10644_v60 = vsel %vm120_vm0, %v10640_v63, 0.0 }
0x32d1   :  { %10645 = vadd.xlane.f32.xlu0 %v10644_v60  ;;  %v10641_v0 = vsel %vm120_vm0, %v10639_v14, 0.0 }
0x32d2   :  { %10642 = vadd.xlane.f32.xlu1 %v10641_v0 }
0x335e   :  { %v10646_v3 = vpop.xlane.xlu0 %10645 }
0x335f   :  { %v10648_v1 = vmul.f32 0.03125, %v10646_v3  ;;  %v10643_v23 = vpop.xlane.xlu1 %10642 }
0x3360   :  { %v10647_v36 = vmul.f32 0.03125, %v10643_v23 }
0x3361   :  { %v10650_v32 = vadd.f32 1e-05, %v10648_v1 }
0x3362   :  { %v10649_v25 = vadd.f32 1e-05, %v10647_v36 }
0x3363   :  { %12630 = vrsqrt.f32 %v10650_v32 }
0x3364   :  { %12632 = vrsqrt.f32 %v10649_v25 }
0x336d   :  { %v12631_v26 = vpop.eup %12630 }
0x336e   :  { %v12633_v37 = vpop.eup %12632  ;;  %v10654_v27 = vmul.f32 %v12631_v26, %v10638_v21 }
0x336f   :  { %v10653_v18 = vmul.f32 %v12633_v37, %v10637_v22 }
0x3370   :  { %v10661_v7 = vmul.f32 %v11050_v15, %v10654_v27 }
0x3371   :  { %v10660_v20 = vmul.f32 %v11050_v15, %v10653_v18 }
0x3372   :  { %v10668_v19 = vadd.f32 %v11051_v12, %v10661_v7 }
0x3373   :  { %v10667_v11 = vadd.f32 %v11051_v12, %v10660_v20 }
0x3374   :  { %v10672_v62 = vsel %vm120_vm0, %v10668_v19, 0.0 }
0x3375   :  { %10673 = vadd.xlane.f32.xlu0 %v10672_v62  ;;  %v10669_v17 = vsel %vm120_vm0, %v10667_v11, 0.0 }
0x3376   :  { %10670 = vadd.xlane.f32.xlu1 %v10669_v17 }
0x3402   :  { %v10674_v28 = vpop.xlane.xlu0 %10673 }
0x3403   :  { %v10676_v29 = vmul.f32 0.03125, %v10674_v28  ;;  %v10671_v30 = vpop.xlane.xlu1 %10670 }
0x3404   :  { %v10675_v33 = vmul.f32 0.03125, %v10671_v30 }
0x3405   :  { %v10678_v35 = vsub.f32 %v10668_v19, %v10676_v29 }
0x3406   :  { %v10677_v31 = vsub.f32 %v10667_v11, %v10675_v33 }
0x3407   :  { %v10680_v34 = vmul.f32 %v10678_v35, %v10678_v35 }
0x3408   :  { %v10679_v38 = vmul.f32 %v10677_v31, %v10677_v31 }
0x3409   :  { %v10684_v13 = vsel %vm120_vm0, %v10680_v34, 0.0 }
0x340a   :  { %10685 = vadd.xlane.f32.xlu0 %v10684_v13  ;;  %v10681_v42 = vsel %vm120_vm0, %v10679_v38, 0.0 }
0x340b   :  { %10682 = vadd.xlane.f32.xlu1 %v10681_v42 }
0x3497   :  { %v10686_v4 = vpop.xlane.xlu0 %10685 }
0x3498   :  { %v10688_v51 = vmul.f32 0.03125, %v10686_v4  ;;  %v10683_v52 = vpop.xlane.xlu1 %10682 }
0x3499   :  { %v10687_v53 = vmul.f32 0.03125, %v10683_v52 }
0x349a   :  { %v10690_v54 = vadd.f32 1e-05, %v10688_v51 }
0x349b   :  { %v10689_v24 = vadd.f32 1e-05, %v10687_v53 }
0x349c   :  { %12634 = vrsqrt.f32 %v10690_v54 }
0x349d   :  { %12636 = vrsqrt.f32 %v10689_v24 }
0x34a6   :  { %v12635_v50 = vpop.eup %12634 }
0x34a7   :  { %v12637_v46 = vpop.eup %12636  ;;  %v10694_v55 = vmul.f32 %v12635_v50, %v10678_v35 }
0x34a8   :  { %v10693_v56 = vmul.f32 %v12637_v46, %v10677_v31 }
0x34a9   :  { %v10701_v57 = vmul.f32 %v11052_v41, %v10694_v55 }
0x34aa   :  { %v10700_v8 = vmul.f32 %v11052_v41, %v10693_v56 }
0x34ab   :  { %v10708_v58 = vadd.f32 %v11053_v16, %v10701_v57 }
0x34ac   :  { %v10707_v10 = vadd.f32 %v11053_v16, %v10700_v8 }
0x34ae   :  { %12165 = vmatprep.mubr.msk.f32.mxu1 %vm120_vm0, %v10707_v10 }
0x34af   :  { %12166 = vmatmul.mubr.msk.f32.vlgmr.msra.gmra.mrb[128].mxu1 %vm120_vm0, %v10708_v58 }
0x3582   :  { %v12167_v59 = vpop.f32.mrb[128].mxu1 }
0x3583   :  { %v10796_v2 = vadd.f32 %v12167_v59, %v11054_v43  ;;  %v10790_v6 = vpop.f32.mrb[129].mxu1 }
0x3584   :  { %v10791_v47 = vadd.f32 %v11054_v43, %v10790_v6 }
0x3585   :  { %10800 = vst.msk [vmem:[#allocation5 + $0x8] sm:$0xff] %vm1557_vm3, %v10796_v2 }
0x3586   :  { %10799 = vst.msk [vmem:[#allocation5] sm:$0xff] %vm1557_vm3, %v10791_v47 }
0x3587   :  { %12671 = shalt.err (!%p12668_p12)
}
0x3588   :  { %s12672_s26 = scalar_lea.hbm %s14100_s5, 256 }
0x3589   :  { %p12673_p13 = scmp.ne.s32.totalorder %s14100_s5, %s12672_s26  ;;  %p12676_p0 = scmp.lt.u32.totalorder %s12672_s26, %s14100_s5 }
0x358b   :  { %p12678_p1 = pnand %p12676_p0, %p12673_p13 }
0x358d   :  { %12681 = shalt.err (!%p12678_p1)
}
0x358e   :  { %10812 = dma.vmem_to_hbm [thread:$0]  %s10807_s22, 256, %s14100_s5, [#allocation4], %s12687_s28, %s12687_s28, %s12688_s29  }
0x358f   :  { %12684 = dma.done.wait [#allocation4], 256  }
0x3590   :  { %12685 = vsyncadd [#allocation4], 4294967040 }
0x3591   :  { %10816 = vsyncpa [#allocation3], 1 }
0x3592   :  { %10817 = vsyncpa [#allocation4], 1 }

</bundles_post_ra>
